<compile_context>
chip_gen: v7x
topology: tpu7x:2x2x1
jax: 0.10.0
libtpu: 0.0.40
codegen_flags: <defaults>
</compile_context>

<pallas_src>
import functools

import jax
import jax.numpy as jnp
from jax.experimental import pallas as pl
from jax.experimental.pallas import tpu as pltpu

# ----------------------- small synthetic config -----------------------
B = 2                     # batch
C = 3                     # RGB
IMG_H = IMG_W = 32
PATCH = 16                # vision_stride_size for ViT-B-16
HR = (IMG_H - PATCH) // PATCH + 1    # h_resolution = 2
WR = (IMG_W - PATCH) // PATCH + 1    # w_resolution = 2
NUM_PATCHES = HR * WR
SEQ = NUM_PATCHES + 1     # +1 class token
D = 128                   # stands in for in_planes = 768 (multiple of 128 -> lane dense)
D_PROJ = 64               # stands in for in_planes_proj = 512
HEADS = 4
HEAD_DIM = D // HEADS
MLP = 4 * D
LAYERS = 2
NUM_CLASSES = 8
CPP = C * PATCH * PATCH   # flattened patch dim
N_TOK = B * SEQ           # flattened token count
EPS = 1e-5


def _ln(x, g, b, eps):
    """Row-wise LayerNorm in f32 (VPU), affine params broadcast from (1, D)."""
    mean = jnp.mean(x, axis=-1, keepdims=True)
    var = jnp.mean(jnp.square(x - mean), axis=-1, keepdims=True)
    return (x - mean) * jax.lax.rsqrt(var + eps) * g + b


# ==================== fused kernels ====================
def _embed_kernel(patch_ref, convw_ref, base_ref, g_ref, b_ref, o_ref,
                  *, eps, batch, num_patches):
    # patch_ref: (B*NUM_PATCHES, CPP); conv (kernel==stride) as one whole-batch matmul.
    tok = jnp.dot(patch_ref[...].astype(jnp.bfloat16), convw_ref[...],
                  preferred_element_type=jnp.float32)          # (B*P, D)
    base = base_ref[...]                                       # (SEQ, D)
    cls_row = base[0:1, :]                                     # cls_emb + pos_emb[0]
    pos_rest = base[1:, :]                                     # pos_emb[1:]
    rows = []
    for b in range(batch):                                     # static, tiny
        rows.append(cls_row)
        rows.append(tok[b * num_patches:(b + 1) * num_patches, :] + pos_rest)
    x = jnp.concatenate(rows, axis=0)                          # (B*SEQ, D)
    o_ref[...] = _ln(x, g_ref[...], b_ref[...], eps)


def _layers_kernel(x_ref, ln1g_ref, ln1b_ref, wqkv_ref, bqkv_ref, wo_ref, bo_ref,
                   ln2g_ref, ln2b_ref, wfc1_ref, bfc1_ref, wfc2_ref, bfc2_ref,
                   o_ref, acc_ref, *, batch, seq, heads, head_dim, eps):
    """One grid step == one transformer layer; activations stay in acc_ref (VMEM)."""
    l = pl.program_id(0)

    @pl.when(l == 0)
    def _():
        acc_ref[...] = x_ref[...]

    x = acc_ref[...]                               # (B*SEQ, D) f32, resident in VMEM
    d = heads * head_dim
    scale = 1.0 / float(head_dim) ** 0.5

    # ---- attention sub-block: x = x + attn(ln_1(x)) ----
    h = _ln(x, ln1g_ref[0], ln1b_ref[0], eps)
    qkv = jnp.dot(h.astype(jnp.bfloat16), wqkv_ref[0],
                  preferred_element_type=jnp.float32) + bqkv_ref[0]     # (B*SEQ, 3D)
    per_image = []
    for b in range(batch):                         # static unrolled batch loop
        r0 = b * seq
        q = qkv[r0:r0 + seq, 0:d]                  # 128-lane aligned slices
        k = qkv[r0:r0 + seq, d:2 * d]
        v = qkv[r0:r0 + seq, 2 * d:3 * d]
        heads_out = []
        for hd in range(heads):                    # static unrolled head loop
            lo = hd * head_dim
            qh = q[:, lo:lo + head_dim]
            kh = k[:, lo:lo + head_dim]
            vh = v[:, lo:lo + head_dim]
            s = jax.lax.dot_general(qh.astype(jnp.bfloat16), kh.astype(jnp.bfloat16),
                                    (((1,), (1,)), ((), ())),
                                    preferred_element_type=jnp.float32) * scale
            s = s - jnp.max(s, axis=-1, keepdims=True)
            p = jnp.exp(s)
            p = p * pl.reciprocal(jnp.sum(p, axis=-1, keepdims=True), approx=True)
            heads_out.append(jnp.dot(p.astype(jnp.bfloat16), vh.astype(jnp.bfloat16),
                                     preferred_element_type=jnp.float32))
        # head merge = lane concat (XLU), so the output projection is ONE dot below
        per_image.append(jnp.concatenate(heads_out, axis=-1))           # (SEQ, D)
    attn = jnp.concatenate(per_image, axis=0)                           # (B*SEQ, D)
    x = x + jnp.dot(attn.astype(jnp.bfloat16), wo_ref[0],
                    preferred_element_type=jnp.float32) + bo_ref[0]

    # ---- MLP sub-block: x = x + mlp(ln_2(x)), QuickGELU ----
    h2 = _ln(x, ln2g_ref[0], ln2b_ref[0], eps)
    h2 = jnp.dot(h2.astype(jnp.bfloat16), wfc1_ref[0],
                 preferred_element_type=jnp.float32) + bfc1_ref[0]
    h2 = h2 * jax.nn.sigmoid(1.702 * h2)           # CLIP QuickGELU
    h2 = jnp.dot(h2.astype(jnp.bfloat16), wfc2_ref[0],
                 preferred_element_type=jnp.float32) + bfc2_ref[0]
    x = x + h2

    acc_ref[...] = x

    @pl.when(l == pl.num_programs(0) - 1)
    def _():
        o_ref[...] = x


def _head_kernel(x_ref, lng_ref, lnb_ref, proj_ref, bng_ref, bnb_ref, bnpg_ref,
                 bnpb_ref, w_ref, wp_ref,
                 s_ref, sp_ref, f_ref, fp_ref, *, batch, seq, eps):
    # Fused: ln_post + visual projection (CLS rows only) + training-mode BatchNorm1d
    # (batch stats, biased variance) + both bias-free classifiers.
    x = x_ref[...]                                                       # (B*SEQ, D)
    cls_rows = jnp.concatenate([x[b * seq:b * seq + 1, :] for b in range(batch)],
                               axis=0)                                   # (B, D)
    f = _ln(cls_rows, lng_ref[...], lnb_ref[...], eps)                   # img_feature
    fp = jnp.dot(f.astype(jnp.bfloat16), proj_ref[...],
                 preferred_element_type=jnp.float32)                     # img_feature_proj
    f_ref[...] = f
    fp_ref[...] = fp

    m = jnp.mean(f, axis=0, keepdims=True)
    v = jnp.mean(jnp.square(f - m), axis=0, keepdims=True)
    feat = (f - m) * jax.lax.rsqrt(v + eps) * bng_ref[...] + bnb_ref[...]
    s_ref[...] = jnp.dot(feat.astype(jnp.bfloat16), w_ref[...],
                         preferred_element_type=jnp.float32)

    mp = jnp.mean(fp, axis=0, keepdims=True)
    vp = jnp.mean(jnp.square(fp - mp), axis=0, keepdims=True)
    featp = (fp - mp) * jax.lax.rsqrt(vp + eps) * bnpg_ref[...] + bnpb_ref[...]
    sp_ref[...] = jnp.dot(featp.astype(jnp.bfloat16), wp_ref[...],
                          preferred_element_type=jnp.float32)


# ==================== pallas_call wrappers ====================
def embed(patches_flat, conv1_w, base, ln_g, ln_b):
    return pl.pallas_call(
        functools.partial(_embed_kernel, eps=EPS, batch=B, num_patches=NUM_PATCHES),
        out_shape=jax.ShapeDtypeStruct((N_TOK, D), jnp.float32),
        grid=(1,),
        in_specs=[
            pl.BlockSpec((B * NUM_PATCHES, CPP), lambda i: (0, 0)),
            pl.BlockSpec((CPP, D), lambda i: (0, 0)),
            pl.BlockSpec((SEQ, D), lambda i: (0, 0)),
            pl.BlockSpec((1, D), lambda i: (0, 0)),
            pl.BlockSpec((1, D), lambda i: (0, 0)),
        ],
        out_specs=pl.BlockSpec((N_TOK, D), lambda i: (0, 0)),
    )(patches_flat, conv1_w, base, ln_g, ln_b)


def transformer_layers(stk, x_tok):
    """All LAYERS layers in one pallas_call; weights streamed per grid step."""
    return pl.pallas_call(
        functools.partial(_layers_kernel, batch=B, seq=SEQ, heads=HEADS,
                          head_dim=HEAD_DIM, eps=EPS),
        out_shape=jax.ShapeDtypeStruct((N_TOK, D), jnp.float32),
        grid=(LAYERS,),
        in_specs=[
            pl.BlockSpec((N_TOK, D), lambda l: (0, 0)),            # x (fetched once)
            pl.BlockSpec((1, 1, D), lambda l: (l, 0, 0)),          # ln1_g
            pl.BlockSpec((1, 1, D), lambda l: (l, 0, 0)),          # ln1_b
            pl.BlockSpec((1, D, 3 * D), lambda l: (l, 0, 0)),      # w_qkv (bf16)
            pl.BlockSpec((1, 1, 3 * D), lambda l: (l, 0, 0)),      # b_qkv
            pl.BlockSpec((1, D, D), lambda l: (l, 0, 0)),          # w_o   (bf16)
            pl.BlockSpec((1, 1, D), lambda l: (l, 0, 0)),          # b_o
            pl.BlockSpec((1, 1, D), lambda l: (l, 0, 0)),          # ln2_g
            pl.BlockSpec((1, 1, D), lambda l: (l, 0, 0)),          # ln2_b
            pl.BlockSpec((1, D, MLP), lambda l: (l, 0, 0)),        # w_fc1 (bf16)
            pl.BlockSpec((1, 1, MLP), lambda l: (l, 0, 0)),        # b_fc1
            pl.BlockSpec((1, MLP, D), lambda l: (l, 0, 0)),        # w_fc2 (bf16)
            pl.BlockSpec((1, 1, D), lambda l: (l, 0, 0)),          # b_fc2
        ],
        out_specs=pl.BlockSpec((N_TOK, D), lambda l: (0, 0)),
        scratch_shapes=[pltpu.VMEM((N_TOK, D), jnp.float32)],      # resident activations
        compiler_params=pltpu.CompilerParams(dimension_semantics=("arbitrary",)),
    )(x_tok, stk["ln1_g"], stk["ln1_b"], stk["w_qkv"], stk["b_qkv"], stk["w_o"],
      stk["b_o"], stk["ln2_g"], stk["ln2_b"], stk["w_fc1"], stk["b_fc1"],
      stk["w_fc2"], stk["b_fc2"])


def head(x_tok, params):
    return pl.pallas_call(
        functools.partial(_head_kernel, batch=B, seq=SEQ, eps=EPS),
        out_shape=(jax.ShapeDtypeStruct((B, NUM_CLASSES), jnp.float32),
                   jax.ShapeDtypeStruct((B, NUM_CLASSES), jnp.float32),
                   jax.ShapeDtypeStruct((B, D), jnp.float32),
                   jax.ShapeDtypeStruct((B, D_PROJ), jnp.float32)),
        grid=(1,),
        in_specs=[
            pl.BlockSpec((N_TOK, D), lambda i: (0, 0)),
            pl.BlockSpec((1, D), lambda i: (0, 0)),
            pl.BlockSpec((1, D), lambda i: (0, 0)),
            pl.BlockSpec((D, D_PROJ), lambda i: (0, 0)),
            pl.BlockSpec((1, D), lambda i: (0, 0)),
            pl.BlockSpec((1, D), lambda i: (0, 0)),
            pl.BlockSpec((1, D_PROJ), lambda i: (0, 0)),
            pl.BlockSpec((1, D_PROJ), lambda i: (0, 0)),
            pl.BlockSpec((D, NUM_CLASSES), lambda i: (0, 0)),
            pl.BlockSpec((D_PROJ, NUM_CLASSES), lambda i: (0, 0)),
        ],
        out_specs=[pl.BlockSpec((B, NUM_CLASSES), lambda i: (0, 0)),
                   pl.BlockSpec((B, NUM_CLASSES), lambda i: (0, 0)),
                   pl.BlockSpec((B, D), lambda i: (0, 0)),
                   pl.BlockSpec((B, D_PROJ), lambda i: (0, 0))],
    )(x_tok, params["ln_post_g"], params["ln_post_b"], params["proj"],
      params["bn_g"], params["bn_b"], params["bnp_g"], params["bnp_b"],
      params["cls_w_t"], params["clsp_w_t"])


# ==================== model (thin JAX glue) ====================
def model_forward(params, x):
    """Default (training-mode, ViT) path of Model.forward.  x: (B, C, H, W) NCHW."""
    Bn = x.shape[0]
    # patch-embedding conv (kernel == stride) as a matmul over flattened (C, ph, pw)
    # patches, whole batch flattened to (B*NUM_PATCHES, CPP).
    patches = (x.reshape(Bn, C, HR, PATCH, WR, PATCH)
                 .transpose(0, 2, 4, 1, 3, 5)
                 .reshape(Bn * NUM_PATCHES, CPP))
    x_tok = embed(patches, params["conv1_w"], params["base"],
                  params["ln_pre_g"], params["ln_pre_b"])
    x_tok = transformer_layers(params["layers"], x_tok)
    cls_score, cls_score_proj, img_feature, img_feature_proj = head(x_tok, params)
    return ([cls_score, cls_score_proj],
            [img_feature, img_feature_proj],
            img_feature_proj)


# ==================== deterministic parameter init ====================
def init_params(key):
    ks = jax.random.split(key, 16)

    def nrm(k, shape, std=0.02, dtype=jnp.float32):
        return (std * jax.random.normal(k, shape)).astype(dtype)

    bf = jnp.bfloat16
    cls_emb = nrm(ks[1], (1, D))
    pos_emb = nrm(ks[2], (SEQ, D), 0.01)
    params = {
        # flattened (D, C, 16, 16) conv weight, stored (CPP, D) bf16 for the MXU
        "conv1_w": nrm(ks[0], (CPP, D), dtype=bf),
        # precomputed once: [cls_emb + pos_emb[0] ; pos_emb[1:]]
        "base": jnp.concatenate([cls_emb + pos_emb[0:1], pos_emb[1:]], axis=0),
        "ln_pre_g": jnp.ones((1, D), jnp.float32), "ln_pre_b": jnp.zeros((1, D), jnp.float32),
        "ln_post_g": jnp.ones((1, D), jnp.float32), "ln_post_b": jnp.zeros((1, D), jnp.float32),
        "proj": nrm(ks[3], (D, D_PROJ), dtype=bf),
        # weights_init_kaiming on BatchNorm -> weight=1, bias=0
        "bn_g": jnp.ones((1, D), jnp.float32), "bn_b": jnp.zeros((1, D), jnp.float32),
        "bnp_g": jnp.ones((1, D_PROJ), jnp.float32), "bnp_b": jnp.zeros((1, D_PROJ), jnp.float32),
        # weights_init_classifier -> normal(std=0.001), no bias; pre-transposed, bf16
        "cls_w_t": nrm(ks[4], (D, NUM_CLASSES), 0.001, dtype=bf),
        "clsp_w_t": nrm(ks[5], (D_PROJ, NUM_CLASSES), 0.001, dtype=bf),
    }
    # per-layer weights stacked with a leading (LAYERS,) dim for layer streaming
    wq, wo, w1, w2 = [], [], [], []
    for l in range(LAYERS):
        lk = jax.random.split(ks[6 + l], 4)
        wq.append(nrm(lk[0], (D, 3 * D), dtype=bf))
        wo.append(nrm(lk[1], (D, D), dtype=bf))
        w1.append(nrm(lk[2], (D, MLP), dtype=bf))
        w2.append(nrm(lk[3], (MLP, D), dtype=bf))
    params["layers"] = dict(
        ln1_g=jnp.ones((LAYERS, 1, D), jnp.float32),
        ln1_b=jnp.zeros((LAYERS, 1, D), jnp.float32),
        w_qkv=jnp.stack(wq), b_qkv=jnp.zeros((LAYERS, 1, 3 * D), jnp.float32),
        w_o=jnp.stack(wo), b_o=jnp.zeros((LAYERS, 1, D), jnp.float32),
        ln2_g=jnp.ones((LAYERS, 1, D), jnp.float32),
        ln2_b=jnp.zeros((LAYERS, 1, D), jnp.float32),
        w_fc1=jnp.stack(w1), b_fc1=jnp.zeros((LAYERS, 1, MLP), jnp.float32),
        w_fc2=jnp.stack(w2), b_fc2=jnp.zeros((LAYERS, 1, D), jnp.float32),
    )
    return params


if __name__ == "__main__":
    key = jax.random.PRNGKey(0)
    pkey, xkey = jax.random.split(key)
    params = init_params(pkey)
    x = jax.random.normal(xkey, (B, C, IMG_H, IMG_W), dtype=jnp.float32)  # NCHW like PyTorch

    fwd = jax.jit(model_forward)
    scores, feats, feat_proj = fwd(params, x)
    jax.block_until_ready((scores, feats, feat_proj))

    assert scores[0].shape == (B, NUM_CLASSES)
    assert scores[1].shape == (B, NUM_CLASSES)
    assert feats[0].shape == (B, D)
    assert feats[1].shape == (B, D_PROJ)
    assert feat_proj.shape == (B, D_PROJ)
    assert all(bool(jnp.all(jnp.isfinite(t))) for t in
               [scores[0], scores[1], feats[0], feats[1], feat_proj])
    print("KERNEL_OK")
</pallas_src>

<mosaic_0001>
module attributes {stable_mosaic.version = 11 : i64} {
  func.func @_embed_kernel(%arg0: i32, %arg1: memref<8x768xf32, #tpu.memory_space<vmem>>, %arg2: memref<768x128xbf16, #tpu.memory_space<vmem>>, %arg3: memref<5x128xf32, #tpu.memory_space<vmem>>, %arg4: memref<1x128xf32, #tpu.memory_space<vmem>>, %arg5: memref<1x128xf32, #tpu.memory_space<vmem>>, %arg6: memref<10x128xf32, #tpu.memory_space<vmem>>) attributes {dimension_semantics = [#tpu.dimension_semantics<arbitrary>], iteration_bounds = array<i64: 1>, scalar_prefetch = 0 : i64, scratch_operands = 0 : i64, tpu.core_type = #tpu.core_type<tc>, window_params = [{pipeline_mode = #tpu.pipeline_mode<synchronous>, transform_indices = @transform_0, window_bounds = array<i64: 8, 768>}, {pipeline_mode = #tpu.pipeline_mode<synchronous>, transform_indices = @transform_1, window_bounds = array<i64: 768, 128>}, {pipeline_mode = #tpu.pipeline_mode<synchronous>, transform_indices = @transform_2, window_bounds = array<i64: 5, 128>}, {pipeline_mode = #tpu.pipeline_mode<synchronous>, transform_indices = @transform_3, window_bounds = array<i64: 1, 128>}, {pipeline_mode = #tpu.pipeline_mode<synchronous>, transform_indices = @transform_4, window_bounds = array<i64: 1, 128>}, {pipeline_mode = #tpu.pipeline_mode<synchronous>, transform_indices = @transform_5, window_bounds = array<i64: 10, 128>}]} {
    %c0 = arith.constant 0 : index
    %c0_0 = arith.constant 0 : index
    %0 = vector.load %arg1[%c0, %c0_0] : memref<8x768xf32, #tpu.memory_space<vmem>>, vector<8x768xf32>
    %1 = arith.truncf %0 : vector<8x768xf32> to vector<8x768xbf16>
    %c0_1 = arith.constant 0 : index
    %c0_2 = arith.constant 0 : index
    %2 = vector.load %arg2[%c0_1, %c0_2] : memref<768x128xbf16, #tpu.memory_space<vmem>>, vector<768x128xbf16>
    %cst = arith.constant dense<0.000000e+00> : vector<8x128xf32>
    %3 = tpu.matmul %1, %2, %cst {dimension_numbers = #tpu.dot_dimension_numbers<[1], [0], [0], [1], [0, 0, 1, 1], [], []>} : vector<8x768xbf16>, vector<768x128xbf16>, vector<8x128xf32> -> vector<8x128xf32>
    %c0_3 = arith.constant 0 : index
    %c0_4 = arith.constant 0 : index
    %4 = vector.load %arg3[%c0_3, %c0_4] : memref<5x128xf32, #tpu.memory_space<vmem>>, vector<5x128xf32>
    %5 = vector.extract_strided_slice %4 {offsets = [0, 0], sizes = [1, 128], strides = [1, 1]} : vector<5x128xf32> to vector<1x128xf32>
    %6 = vector.extract_strided_slice %4 {offsets = [1, 0], sizes = [4, 128], strides = [1, 1]} : vector<5x128xf32> to vector<4x128xf32>
    %7 = vector.extract_strided_slice %3 {offsets = [0, 0], sizes = [4, 128], strides = [1, 1]} : vector<8x128xf32> to vector<4x128xf32>
    %8 = arith.addf %7, %6 : vector<4x128xf32>
    %9 = vector.extract_strided_slice %3 {offsets = [4, 0], sizes = [4, 128], strides = [1, 1]} : vector<8x128xf32> to vector<4x128xf32>
    %10 = arith.addf %9, %6 : vector<4x128xf32>
    %11 = tpu.concatenate %5, %8, %5, %10 in 0 : vector<1x128xf32>, vector<4x128xf32>, vector<1x128xf32>, vector<4x128xf32> -> vector<10x128xf32>
    %c0_5 = arith.constant 0 : index
    %c0_6 = arith.constant 0 : index
    %12 = vector.load %arg4[%c0_5, %c0_6] : memref<1x128xf32, #tpu.memory_space<vmem>>, vector<1x128xf32>
    %c0_7 = arith.constant 0 : index
    %c0_8 = arith.constant 0 : index
    %13 = vector.load %arg5[%c0_7, %c0_8] : memref<1x128xf32, #tpu.memory_space<vmem>>, vector<1x128xf32>
    %cst_9 = arith.constant dense<0.000000e+00> : vector<10xf32>
    %14 = vector.multi_reduction <add>, %11, %cst_9 [1] : vector<10x128xf32> to vector<10xf32>
    %15 = vector.shape_cast %14 : vector<10xf32> to vector<10x1xf32>
    %cst_10 = arith.constant 1.280000e+02 : f32
    %16 = vector.broadcast %cst_10 : f32 to vector<10x1xf32>
    %17 = arith.divf %15, %16 : vector<10x1xf32>
    %18 = vector.broadcast %17 : vector<10x1xf32> to vector<10x128xf32>
    %19 = arith.subf %11, %18 : vector<10x128xf32>
    %20 = arith.mulf %19, %19 : vector<10x128xf32>
    %cst_11 = arith.constant dense<0.000000e+00> : vector<10xf32>
    %21 = vector.multi_reduction <add>, %20, %cst_11 [1] : vector<10x128xf32> to vector<10xf32>
    %22 = vector.shape_cast %21 : vector<10xf32> to vector<10x1xf32>
    %cst_12 = arith.constant 1.280000e+02 : f32
    %23 = vector.broadcast %cst_12 : f32 to vector<10x1xf32>
    %24 = arith.divf %22, %23 : vector<10x1xf32>
    %25 = vector.broadcast %17 : vector<10x1xf32> to vector<10x128xf32>
    %26 = arith.subf %11, %25 : vector<10x128xf32>
    %cst_13 = arith.constant 9.99999974E-6 : f32
    %27 = vector.broadcast %cst_13 : f32 to vector<10x1xf32>
    %28 = arith.addf %24, %27 : vector<10x1xf32>
    %29 = math.rsqrt %28 : vector<10x1xf32>
    %30 = vector.broadcast %29 : vector<10x1xf32> to vector<10x128xf32>
    %31 = arith.mulf %26, %30 : vector<10x128xf32>
    %32 = vector.broadcast %12 : vector<1x128xf32> to vector<10x128xf32>
    %33 = arith.mulf %31, %32 : vector<10x128xf32>
    %34 = vector.broadcast %13 : vector<1x128xf32> to vector<10x128xf32>
    %35 = arith.addf %33, %34 : vector<10x128xf32>
    %c0_14 = arith.constant 0 : index
    %c0_15 = arith.constant 0 : index
    %36 = vector.load %arg6[%c0_14, %c0_15] : memref<10x128xf32, #tpu.memory_space<vmem>>, vector<10x128xf32>
    tpu.vector_store %arg6[%c0_14, %c0_15], %35 {strides = array<i32>} : memref<10x128xf32, #tpu.memory_space<vmem>>, vector<10x128xf32>,
    return
  }
  func.func @transform_0(%arg0: i32) -> (i32, i32) {
    %c0_i32 = arith.constant 0 : i32
    %c0_i32_0 = arith.constant 0 : i32
    %c0_i32_1 = arith.constant 0 : i32
    return %c0_i32, %c0_i32_0 : i32, i32
  }
  func.func @transform_1(%arg0: i32) -> (i32, i32) {
    %c0_i32 = arith.constant 0 : i32
    %c0_i32_0 = arith.constant 0 : i32
    %c0_i32_1 = arith.constant 0 : i32
    return %c0_i32, %c0_i32_0 : i32, i32
  }
  func.func @transform_2(%arg0: i32) -> (i32, i32) {
    %c0_i32 = arith.constant 0 : i32
    %c0_i32_0 = arith.constant 0 : i32
    %c0_i32_1 = arith.constant 0 : i32
    return %c0_i32, %c0_i32_0 : i32, i32
  }
  func.func @transform_3(%arg0: i32) -> (i32, i32) {
    %c0_i32 = arith.constant 0 : i32
    %c0_i32_0 = arith.constant 0 : i32
    %c0_i32_1 = arith.constant 0 : i32
    return %c0_i32, %c0_i32_0 : i32, i32
  }
  func.func @transform_4(%arg0: i32) -> (i32, i32) {
    %c0_i32 = arith.constant 0 : i32
    %c0_i32_0 = arith.constant 0 : i32
    %c0_i32_1 = arith.constant 0 : i32
    return %c0_i32, %c0_i32_0 : i32, i32
  }
  func.func @transform_5(%arg0: i32) -> (i32, i32) {
    %c0_i32 = arith.constant 0 : i32
    %c0_i32_0 = arith.constant 0 : i32
    %c0_i32_1 = arith.constant 0 : i32
    return %c0_i32, %c0_i32_0 : i32, i32
  }
}

module attributes {stable_mosaic.version = 11 : i64} {
  func.func @_layers_kernel(%arg0: i32, %arg1: memref<10x128xf32, #tpu.memory_space<vmem>>, %arg2: memref<1x1x128xf32, #tpu.memory_space<vmem>>, %arg3: memref<1x1x128xf32, #tpu.memory_space<vmem>>, %arg4: memref<1x128x384xbf16, #tpu.memory_space<vmem>>, %arg5: memref<1x1x384xf32, #tpu.memory_space<vmem>>, %arg6: memref<1x128x128xbf16, #tpu.memory_space<vmem>>, %arg7: memref<1x1x128xf32, #tpu.memory_space<vmem>>, %arg8: memref<1x1x128xf32, #tpu.memory_space<vmem>>, %arg9: memref<1x1x128xf32, #tpu.memory_space<vmem>>, %arg10: memref<1x128x512xbf16, #tpu.memory_space<vmem>>, %arg11: memref<1x1x512xf32, #tpu.memory_space<vmem>>, %arg12: memref<1x512x128xbf16, #tpu.memory_space<vmem>>, %arg13: memref<1x1x128xf32, #tpu.memory_space<vmem>>, %arg14: memref<10x128xf32, #tpu.memory_space<vmem>>, %arg15: memref<10x128xf32, #tpu.memory_space<vmem>>) attributes {dimension_semantics = [#tpu.dimension_semantics<arbitrary>], iteration_bounds = array<i64: 2>, scalar_prefetch = 0 : i64, scratch_operands = 1 : i64, tpu.core_type = #tpu.core_type<tc>, window_params = [{pipeline_mode = #tpu.pipeline_mode<synchronous>, transform_indices = @transform_0, window_bounds = array<i64: 10, 128>}, {transform_indices = @transform_1, window_bounds = array<i64: 1, 1, 128>}, {transform_indices = @transform_2, window_bounds = array<i64: 1, 1, 128>}, {transform_indices = @transform_3, window_bounds = array<i64: 1, 128, 384>}, {transform_indices = @transform_4, window_bounds = array<i64: 1, 1, 384>}, {transform_indices = @transform_5, window_bounds = array<i64: 1, 128, 128>}, {transform_indices = @transform_6, window_bounds = array<i64: 1, 1, 128>}, {transform_indices = @transform_7, window_bounds = array<i64: 1, 1, 128>}, {transform_indices = @transform_8, window_bounds = array<i64: 1, 1, 128>}, {transform_indices = @transform_9, window_bounds = array<i64: 1, 128, 512>}, {transform_indices = @transform_10, window_bounds = array<i64: 1, 1, 512>}, {transform_indices = @transform_11, window_bounds = array<i64: 1, 512, 128>}, {transform_indices = @transform_12, window_bounds = array<i64: 1, 1, 128>}, {pipeline_mode = #tpu.pipeline_mode<synchronous>, transform_indices = @transform_13, window_bounds = array<i64: 10, 128>}]} {
    %c0_i32 = arith.constant 0 : i32
    %0 = arith.cmpi eq, %arg0, %c0_i32 : i32
    %1 = arith.extui %0 : i1 to i32
    %c0_i32_0 = arith.constant 0 : i32
    %2 = arith.cmpi ne, %1, %c0_i32_0 : i32
    scf.if %2 {
      %c0_96 = arith.constant 0 : index
      %c0_97 = arith.constant 0 : index
      %279 = vector.load %arg1[%c0_96, %c0_97] : memref<10x128xf32, #tpu.memory_space<vmem>>, vector<10x128xf32>
      %c0_98 = arith.constant 0 : index
      %c0_99 = arith.constant 0 : index
      %280 = vector.load %arg15[%c0_98, %c0_99] : memref<10x128xf32, #tpu.memory_space<vmem>>, vector<10x128xf32>
      tpu.vector_store %arg15[%c0_98, %c0_99], %279 {strides = array<i32>} : memref<10x128xf32, #tpu.memory_space<vmem>>, vector<10x128xf32>,
    } else {
    }
    %c0 = arith.constant 0 : index
    %c0_1 = arith.constant 0 : index
    %3 = vector.load %arg15[%c0, %c0_1] : memref<10x128xf32, #tpu.memory_space<vmem>>, vector<10x128xf32>
    %c0_2 = arith.constant 0 : index
    %c0_3 = arith.constant 0 : index
    %c0_4 = arith.constant 0 : index
    %4 = vector.load %arg2[%c0_2, %c0_3, %c0_4] : memref<1x1x128xf32, #tpu.memory_space<vmem>>, vector<1x1x128xf32>
    %5 = vector.shape_cast %4 : vector<1x1x128xf32> to vector<1x128xf32>
    %c0_5 = arith.constant 0 : index
    %c0_6 = arith.constant 0 : index
    %c0_7 = arith.constant 0 : index
    %6 = vector.load %arg3[%c0_5, %c0_6, %c0_7] : memref<1x1x128xf32, #tpu.memory_space<vmem>>, vector<1x1x128xf32>
    %7 = vector.shape_cast %6 : vector<1x1x128xf32> to vector<1x128xf32>
    %cst = arith.constant dense<0.000000e+00> : vector<10xf32>
    %8 = vector.multi_reduction <add>, %3, %cst [1] : vector<10x128xf32> to vector<10xf32>
    %9 = vector.shape_cast %8 : vector<10xf32> to vector<10x1xf32>
    %cst_8 = arith.constant 1.280000e+02 : f32
    %10 = vector.broadcast %cst_8 : f32 to vector<10x1xf32>
    %11 = arith.divf %9, %10 : vector<10x1xf32>
    %12 = vector.broadcast %11 : vector<10x1xf32> to vector<10x128xf32>
    %13 = arith.subf %3, %12 : vector<10x128xf32>
    %14 = arith.mulf %13, %13 : vector<10x128xf32>
    %cst_9 = arith.constant dense<0.000000e+00> : vector<10xf32>
    %15 = vector.multi_reduction <add>, %14, %cst_9 [1] : vector<10x128xf32> to vector<10xf32>
    %16 = vector.shape_cast %15 : vector<10xf32> to vector<10x1xf32>
    %cst_10 = arith.constant 1.280000e+02 : f32
    %17 = vector.broadcast %cst_10 : f32 to vector<10x1xf32>
    %18 = arith.divf %16, %17 : vector<10x1xf32>
    %19 = vector.broadcast %11 : vector<10x1xf32> to vector<10x128xf32>
    %20 = arith.subf %3, %19 : vector<10x128xf32>
    %cst_11 = arith.constant 9.99999974E-6 : f32
    %21 = vector.broadcast %cst_11 : f32 to vector<10x1xf32>
    %22 = arith.addf %18, %21 : vector<10x1xf32>
    %23 = math.rsqrt %22 : vector<10x1xf32>
    %24 = vector.broadcast %23 : vector<10x1xf32> to vector<10x128xf32>
    %25 = arith.mulf %20, %24 : vector<10x128xf32>
    %26 = vector.broadcast %5 : vector<1x128xf32> to vector<10x128xf32>
    %27 = arith.mulf %25, %26 : vector<10x128xf32>
    %28 = vector.broadcast %7 : vector<1x128xf32> to vector<10x128xf32>
    %29 = arith.addf %27, %28 : vector<10x128xf32>
    %30 = arith.truncf %29 : vector<10x128xf32> to vector<10x128xbf16>
    %c0_12 = arith.constant 0 : index
    %c0_13 = arith.constant 0 : index
    %c0_14 = arith.constant 0 : index
    %31 = vector.load %arg4[%c0_12, %c0_13, %c0_14] : memref<1x128x384xbf16, #tpu.memory_space<vmem>>, vector<1x128x384xbf16>
    %32 = vector.shape_cast %31 : vector<1x128x384xbf16> to vector<128x384xbf16>
    %cst_15 = arith.constant dense<0.000000e+00> : vector<10x384xf32>
    %33 = tpu.matmul %30, %32, %cst_15 {dimension_numbers = #tpu.dot_dimension_numbers<[1], [0], [0], [1], [0, 0, 1, 1], [], []>} : vector<10x128xbf16>, vector<128x384xbf16>, vector<10x384xf32> -> vector<10x384xf32>
    %c0_16 = arith.constant 0 : index
    %c0_17 = arith.constant 0 : index
    %c0_18 = arith.constant 0 : index
    %34 = vector.load %arg5[%c0_16, %c0_17, %c0_18] : memref<1x1x384xf32, #tpu.memory_space<vmem>>, vector<1x1x384xf32>
    %35 = vector.shape_cast %34 : vector<1x1x384xf32> to vector<1x384xf32>
    %36 = vector.broadcast %35 : vector<1x384xf32> to vector<10x384xf32>
    %37 = arith.addf %33, %36 : vector<10x384xf32>
    %38 = vector.extract_strided_slice %37 {offsets = [0, 0], sizes = [5, 128], strides = [1, 1]} : vector<10x384xf32> to vector<5x128xf32>
    %39 = vector.extract_strided_slice %37 {offsets = [0, 128], sizes = [5, 128], strides = [1, 1]} : vector<10x384xf32> to vector<5x128xf32>
    %40 = vector.extract_strided_slice %37 {offsets = [0, 256], sizes = [5, 128], strides = [1, 1]} : vector<10x384xf32> to vector<5x128xf32>
    %41 = vector.extract_strided_slice %38 {offsets = [0, 0], sizes = [5, 32], strides = [1, 1]} : vector<5x128xf32> to vector<5x32xf32>
    %42 = vector.extract_strided_slice %39 {offsets = [0, 0], sizes = [5, 32], strides = [1, 1]} : vector<5x128xf32> to vector<5x32xf32>
    %43 = vector.extract_strided_slice %40 {offsets = [0, 0], sizes = [5, 32], strides = [1, 1]} : vector<5x128xf32> to vector<5x32xf32>
    %44 = arith.truncf %41 : vector<5x32xf32> to vector<5x32xbf16>
    %45 = arith.truncf %42 : vector<5x32xf32> to vector<5x32xbf16>
    %cst_19 = arith.constant dense<0.000000e+00> : vector<5x5xf32>
    %46 = tpu.matmul %44, %45, %cst_19 {dimension_numbers = #tpu.dot_dimension_numbers<[1], [1], [0], [0], [0, 0, 1, 0], [], []>} : vector<5x32xbf16>, vector<5x32xbf16>, vector<5x5xf32> -> vector<5x5xf32>
    %cst_20 = arith.constant 0.176776692 : f32
    %47 = vector.broadcast %cst_20 : f32 to vector<5x5xf32>
    %48 = arith.mulf %46, %47 : vector<5x5xf32>
    %cst_21 = arith.constant dense<0xFF800000> : vector<5xf32>
    %49 = vector.multi_reduction <maximumf>, %48, %cst_21 [1] : vector<5x5xf32> to vector<5xf32>
    %50 = vector.shape_cast %49 : vector<5xf32> to vector<5x1xf32>
    %51 = vector.broadcast %50 : vector<5x1xf32> to vector<5x5xf32>
    %52 = arith.subf %48, %51 : vector<5x5xf32>
    %53 = math.exp %52 : vector<5x5xf32>
    %cst_22 = arith.constant dense<0.000000e+00> : vector<5xf32>
    %54 = vector.multi_reduction <add>, %53, %cst_22 [1] : vector<5x5xf32> to vector<5xf32>
    %55 = vector.shape_cast %54 : vector<5xf32> to vector<5x1xf32>
    %56 = tpu.reciprocal %55 {approx = true} : vector<5x1xf32> -> vector<5x1xf32>
    %57 = vector.broadcast %56 : vector<5x1xf32> to vector<5x5xf32>
    %58 = arith.mulf %53, %57 : vector<5x5xf32>
    %59 = arith.truncf %58 : vector<5x5xf32> to vector<5x5xbf16>
    %60 = arith.truncf %43 : vector<5x32xf32> to vector<5x32xbf16>
    %cst_23 = arith.constant dense<0.000000e+00> : vector<5x32xf32>
    %61 = tpu.matmul %59, %60, %cst_23 {dimension_numbers = #tpu.dot_dimension_numbers<[1], [0], [0], [1], [0, 0, 1, 1], [], []>} : vector<5x5xbf16>, vector<5x32xbf16>, vector<5x32xf32> -> vector<5x32xf32>
    %62 = vector.extract_strided_slice %38 {offsets = [0, 32], sizes = [5, 32], strides = [1, 1]} : vector<5x128xf32> to vector<5x32xf32>
    %63 = vector.extract_strided_slice %39 {offsets = [0, 32], sizes = [5, 32], strides = [1, 1]} : vector<5x128xf32> to vector<5x32xf32>
    %64 = vector.extract_strided_slice %40 {offsets = [0, 32], sizes = [5, 32], strides = [1, 1]} : vector<5x128xf32> to vector<5x32xf32>
    %65 = arith.truncf %62 : vector<5x32xf32> to vector<5x32xbf16>
    %66 = arith.truncf %63 : vector<5x32xf32> to vector<5x32xbf16>
    %cst_24 = arith.constant dense<0.000000e+00> : vector<5x5xf32>
    %67 = tpu.matmul %65, %66, %cst_24 {dimension_numbers = #tpu.dot_dimension_numbers<[1], [1], [0], [0], [0, 0, 1, 0], [], []>} : vector<5x32xbf16>, vector<5x32xbf16>, vector<5x5xf32> -> vector<5x5xf32>
    %cst_25 = arith.constant 0.176776692 : f32
    %68 = vector.broadcast %cst_25 : f32 to vector<5x5xf32>
    %69 = arith.mulf %67, %68 : vector<5x5xf32>
    %cst_26 = arith.constant dense<0xFF800000> : vector<5xf32>
    %70 = vector.multi_reduction <maximumf>, %69, %cst_26 [1] : vector<5x5xf32> to vector<5xf32>
    %71 = vector.shape_cast %70 : vector<5xf32> to vector<5x1xf32>
    %72 = vector.broadcast %71 : vector<5x1xf32> to vector<5x5xf32>
    %73 = arith.subf %69, %72 : vector<5x5xf32>
    %74 = math.exp %73 : vector<5x5xf32>
    %cst_27 = arith.constant dense<0.000000e+00> : vector<5xf32>
    %75 = vector.multi_reduction <add>, %74, %cst_27 [1] : vector<5x5xf32> to vector<5xf32>
    %76 = vector.shape_cast %75 : vector<5xf32> to vector<5x1xf32>
    %77 = tpu.reciprocal %76 {approx = true} : vector<5x1xf32> -> vector<5x1xf32>
    %78 = vector.broadcast %77 : vector<5x1xf32> to vector<5x5xf32>
    %79 = arith.mulf %74, %78 : vector<5x5xf32>
    %80 = arith.truncf %79 : vector<5x5xf32> to vector<5x5xbf16>
    %81 = arith.truncf %64 : vector<5x32xf32> to vector<5x32xbf16>
    %cst_28 = arith.constant dense<0.000000e+00> : vector<5x32xf32>
    %82 = tpu.matmul %80, %81, %cst_28 {dimension_numbers = #tpu.dot_dimension_numbers<[1], [0], [0], [1], [0, 0, 1, 1], [], []>} : vector<5x5xbf16>, vector<5x32xbf16>, vector<5x32xf32> -> vector<5x32xf32>
    %83 = vector.extract_strided_slice %38 {offsets = [0, 64], sizes = [5, 32], strides = [1, 1]} : vector<5x128xf32> to vector<5x32xf32>
    %84 = vector.extract_strided_slice %39 {offsets = [0, 64], sizes = [5, 32], strides = [1, 1]} : vector<5x128xf32> to vector<5x32xf32>
    %85 = vector.extract_strided_slice %40 {offsets = [0, 64], sizes = [5, 32], strides = [1, 1]} : vector<5x128xf32> to vector<5x32xf32>
    %86 = arith.truncf %83 : vector<5x32xf32> to vector<5x32xbf16>
    %87 = arith.truncf %84 : vector<5x32xf32> to vector<5x32xbf16>
    %cst_29 = arith.constant dense<0.000000e+00> : vector<5x5xf32>
    %88 = tpu.matmul %86, %87, %cst_29 {dimension_numbers = #tpu.dot_dimension_numbers<[1], [1], [0], [0], [0, 0, 1, 0], [], []>} : vector<5x32xbf16>, vector<5x32xbf16>, vector<5x5xf32> -> vector<5x5xf32>
    %cst_30 = arith.constant 0.176776692 : f32
    %89 = vector.broadcast %cst_30 : f32 to vector<5x5xf32>
    %90 = arith.mulf %88, %89 : vector<5x5xf32>
    %cst_31 = arith.constant dense<0xFF800000> : vector<5xf32>
    %91 = vector.multi_reduction <maximumf>, %90, %cst_31 [1] : vector<5x5xf32> to vector<5xf32>
    %92 = vector.shape_cast %91 : vector<5xf32> to vector<5x1xf32>
    %93 = vector.broadcast %92 : vector<5x1xf32> to vector<5x5xf32>
    %94 = arith.subf %90, %93 : vector<5x5xf32>
    %95 = math.exp %94 : vector<5x5xf32>
    %cst_32 = arith.constant dense<0.000000e+00> : vector<5xf32>
    %96 = vector.multi_reduction <add>, %95, %cst_32 [1] : vector<5x5xf32> to vector<5xf32>
    %97 = vector.shape_cast %96 : vector<5xf32> to vector<5x1xf32>
    %98 = tpu.reciprocal %97 {approx = true} : vector<5x1xf32> -> vector<5x1xf32>
    %99 = vector.broadcast %98 : vector<5x1xf32> to vector<5x5xf32>
    %100 = arith.mulf %95, %99 : vector<5x5xf32>
    %101 = arith.truncf %100 : vector<5x5xf32> to vector<5x5xbf16>
    %102 = arith.truncf %85 : vector<5x32xf32> to vector<5x32xbf16>
    %cst_33 = arith.constant dense<0.000000e+00> : vector<5x32xf32>
    %103 = tpu.matmul %101, %102, %cst_33 {dimension_numbers = #tpu.dot_dimension_numbers<[1], [0], [0], [1], [0, 0, 1, 1], [], []>} : vector<5x5xbf16>, vector<5x32xbf16>, vector<5x32xf32> -> vector<5x32xf32>
    %104 = vector.extract_strided_slice %38 {offsets = [0, 96], sizes = [5, 32], strides = [1, 1]} : vector<5x128xf32> to vector<5x32xf32>
    %105 = vector.extract_strided_slice %39 {offsets = [0, 96], sizes = [5, 32], strides = [1, 1]} : vector<5x128xf32> to vector<5x32xf32>
    %106 = vector.extract_strided_slice %40 {offsets = [0, 96], sizes = [5, 32], strides = [1, 1]} : vector<5x128xf32> to vector<5x32xf32>
    %107 = arith.truncf %104 : vector<5x32xf32> to vector<5x32xbf16>
    %108 = arith.truncf %105 : vector<5x32xf32> to vector<5x32xbf16>
    %cst_34 = arith.constant dense<0.000000e+00> : vector<5x5xf32>
    %109 = tpu.matmul %107, %108, %cst_34 {dimension_numbers = #tpu.dot_dimension_numbers<[1], [1], [0], [0], [0, 0, 1, 0], [], []>} : vector<5x32xbf16>, vector<5x32xbf16>, vector<5x5xf32> -> vector<5x5xf32>
    %cst_35 = arith.constant 0.176776692 : f32
    %110 = vector.broadcast %cst_35 : f32 to vector<5x5xf32>
    %111 = arith.mulf %109, %110 : vector<5x5xf32>
    %cst_36 = arith.constant dense<0xFF800000> : vector<5xf32>
    %112 = vector.multi_reduction <maximumf>, %111, %cst_36 [1] : vector<5x5xf32> to vector<5xf32>
    %113 = vector.shape_cast %112 : vector<5xf32> to vector<5x1xf32>
    %114 = vector.broadcast %113 : vector<5x1xf32> to vector<5x5xf32>
    %115 = arith.subf %111, %114 : vector<5x5xf32>
    %116 = math.exp %115 : vector<5x5xf32>
    %cst_37 = arith.constant dense<0.000000e+00> : vector<5xf32>
    %117 = vector.multi_reduction <add>, %116, %cst_37 [1] : vector<5x5xf32> to vector<5xf32>
    %118 = vector.shape_cast %117 : vector<5xf32> to vector<5x1xf32>
    %119 = tpu.reciprocal %118 {approx = true} : vector<5x1xf32> -> vector<5x1xf32>
    %120 = vector.broadcast %119 : vector<5x1xf32> to vector<5x5xf32>
    %121 = arith.mulf %116, %120 : vector<5x5xf32>
    %122 = arith.truncf %121 : vector<5x5xf32> to vector<5x5xbf16>
    %123 = arith.truncf %106 : vector<5x32xf32> to vector<5x32xbf16>
    %cst_38 = arith.constant dense<0.000000e+00> : vector<5x32xf32>
    %124 = tpu.matmul %122, %123, %cst_38 {dimension_numbers = #tpu.dot_dimension_numbers<[1], [0], [0], [1], [0, 0, 1, 1], [], []>} : vector<5x5xbf16>, vector<5x32xbf16>, vector<5x32xf32> -> vector<5x32xf32>
    %125 = tpu.concatenate %61, %82, %103, %124 in 1 : vector<5x32xf32>, vector<5x32xf32>, vector<5x32xf32>, vector<5x32xf32> -> vector<5x128xf32>
    %126 = vector.extract_strided_slice %37 {offsets = [5, 0], sizes = [5, 128], strides = [1, 1]} : vector<10x384xf32> to vector<5x128xf32>
    %127 = vector.extract_strided_slice %37 {offsets = [5, 128], sizes = [5, 128], strides = [1, 1]} : vector<10x384xf32> to vector<5x128xf32>
    %128 = vector.extract_strided_slice %37 {offsets = [5, 256], sizes = [5, 128], strides = [1, 1]} : vector<10x384xf32> to vector<5x128xf32>
    %129 = vector.extract_strided_slice %126 {offsets = [0, 0], sizes = [5, 32], strides = [1, 1]} : vector<5x128xf32> to vector<5x32xf32>
    %130 = vector.extract_strided_slice %127 {offsets = [0, 0], sizes = [5, 32], strides = [1, 1]} : vector<5x128xf32> to vector<5x32xf32>
    %131 = vector.extract_strided_slice %128 {offsets = [0, 0], sizes = [5, 32], strides = [1, 1]} : vector<5x128xf32> to vector<5x32xf32>
    %132 = arith.truncf %129 : vector<5x32xf32> to vector<5x32xbf16>
    %133 = arith.truncf %130 : vector<5x32xf32> to vector<5x32xbf16>
    %cst_39 = arith.constant dense<0.000000e+00> : vector<5x5xf32>
    %134 = tpu.matmul %132, %133, %cst_39 {dimension_numbers = #tpu.dot_dimension_numbers<[1], [1], [0], [0], [0, 0, 1, 0], [], []>} : vector<5x32xbf16>, vector<5x32xbf16>, vector<5x5xf32> -> vector<5x5xf32>
    %cst_40 = arith.constant 0.176776692 : f32
    %135 = vector.broadcast %cst_40 : f32 to vector<5x5xf32>
    %136 = arith.mulf %134, %135 : vector<5x5xf32>
    %cst_41 = arith.constant dense<0xFF800000> : vector<5xf32>
    %137 = vector.multi_reduction <maximumf>, %136, %cst_41 [1] : vector<5x5xf32> to vector<5xf32>
    %138 = vector.shape_cast %137 : vector<5xf32> to vector<5x1xf32>
    %139 = vector.broadcast %138 : vector<5x1xf32> to vector<5x5xf32>
    %140 = arith.subf %136, %139 : vector<5x5xf32>
    %141 = math.exp %140 : vector<5x5xf32>
    %cst_42 = arith.constant dense<0.000000e+00> : vector<5xf32>
    %142 = vector.multi_reduction <add>, %141, %cst_42 [1] : vector<5x5xf32> to vector<5xf32>
    %143 = vector.shape_cast %142 : vector<5xf32> to vector<5x1xf32>
    %144 = tpu.reciprocal %143 {approx = true} : vector<5x1xf32> -> vector<5x1xf32>
    %145 = vector.broadcast %144 : vector<5x1xf32> to vector<5x5xf32>
    %146 = arith.mulf %141, %145 : vector<5x5xf32>
    %147 = arith.truncf %146 : vector<5x5xf32> to vector<5x5xbf16>
    %148 = arith.truncf %131 : vector<5x32xf32> to vector<5x32xbf16>
    %cst_43 = arith.constant dense<0.000000e+00> : vector<5x32xf32>
    %149 = tpu.matmul %147, %148, %cst_43 {dimension_numbers = #tpu.dot_dimension_numbers<[1], [0], [0], [1], [0, 0, 1, 1], [], []>} : vector<5x5xbf16>, vector<5x32xbf16>, vector<5x32xf32> -> vector<5x32xf32>
    %150 = vector.extract_strided_slice %126 {offsets = [0, 32], sizes = [5, 32], strides = [1, 1]} : vector<5x128xf32> to vector<5x32xf32>
    %151 = vector.extract_strided_slice %127 {offsets = [0, 32], sizes = [5, 32], strides = [1, 1]} : vector<5x128xf32> to vector<5x32xf32>
    %152 = vector.extract_strided_slice %128 {offsets = [0, 32], sizes = [5, 32], strides = [1, 1]} : vector<5x128xf32> to vector<5x32xf32>
    %153 = arith.truncf %150 : vector<5x32xf32> to vector<5x32xbf16>
    %154 = arith.truncf %151 : vector<5x32xf32> to vector<5x32xbf16>
    %cst_44 = arith.constant dense<0.000000e+00> : vector<5x5xf32>
    %155 = tpu.matmul %153, %154, %cst_44 {dimension_numbers = #tpu.dot_dimension_numbers<[1], [1], [0], [0], [0, 0, 1, 0], [], []>} : vector<5x32xbf16>, vector<5x32xbf16>, vector<5x5xf32> -> vector<5x5xf32>
    %cst_45 = arith.constant 0.176776692 : f32
    %156 = vector.broadcast %cst_45 : f32 to vector<5x5xf32>
    %157 = arith.mulf %155, %156 : vector<5x5xf32>
    %cst_46 = arith.constant dense<0xFF800000> : vector<5xf32>
    %158 = vector.multi_reduction <maximumf>, %157, %cst_46 [1] : vector<5x5xf32> to vector<5xf32>
    %159 = vector.shape_cast %158 : vector<5xf32> to vector<5x1xf32>
    %160 = vector.broadcast %159 : vector<5x1xf32> to vector<5x5xf32>
    %161 = arith.subf %157, %160 : vector<5x5xf32>
    %162 = math.exp %161 : vector<5x5xf32>
    %cst_47 = arith.constant dense<0.000000e+00> : vector<5xf32>
    %163 = vector.multi_reduction <add>, %162, %cst_47 [1] : vector<5x5xf32> to vector<5xf32>
    %164 = vector.shape_cast %163 : vector<5xf32> to vector<5x1xf32>
    %165 = tpu.reciprocal %164 {approx = true} : vector<5x1xf32> -> vector<5x1xf32>
    %166 = vector.broadcast %165 : vector<5x1xf32> to vector<5x5xf32>
    %167 = arith.mulf %162, %166 : vector<5x5xf32>
    %168 = arith.truncf %167 : vector<5x5xf32> to vector<5x5xbf16>
    %169 = arith.truncf %152 : vector<5x32xf32> to vector<5x32xbf16>
    %cst_48 = arith.constant dense<0.000000e+00> : vector<5x32xf32>
    %170 = tpu.matmul %168, %169, %cst_48 {dimension_numbers = #tpu.dot_dimension_numbers<[1], [0], [0], [1], [0, 0, 1, 1], [], []>} : vector<5x5xbf16>, vector<5x32xbf16>, vector<5x32xf32> -> vector<5x32xf32>
    %171 = vector.extract_strided_slice %126 {offsets = [0, 64], sizes = [5, 32], strides = [1, 1]} : vector<5x128xf32> to vector<5x32xf32>
    %172 = vector.extract_strided_slice %127 {offsets = [0, 64], sizes = [5, 32], strides = [1, 1]} : vector<5x128xf32> to vector<5x32xf32>
    %173 = vector.extract_strided_slice %128 {offsets = [0, 64], sizes = [5, 32], strides = [1, 1]} : vector<5x128xf32> to vector<5x32xf32>
    %174 = arith.truncf %171 : vector<5x32xf32> to vector<5x32xbf16>
    %175 = arith.truncf %172 : vector<5x32xf32> to vector<5x32xbf16>
    %cst_49 = arith.constant dense<0.000000e+00> : vector<5x5xf32>
    %176 = tpu.matmul %174, %175, %cst_49 {dimension_numbers = #tpu.dot_dimension_numbers<[1], [1], [0], [0], [0, 0, 1, 0], [], []>} : vector<5x32xbf16>, vector<5x32xbf16>, vector<5x5xf32> -> vector<5x5xf32>
    %cst_50 = arith.constant 0.176776692 : f32
    %177 = vector.broadcast %cst_50 : f32 to vector<5x5xf32>
    %178 = arith.mulf %176, %177 : vector<5x5xf32>
    %cst_51 = arith.constant dense<0xFF800000> : vector<5xf32>
    %179 = vector.multi_reduction <maximumf>, %178, %cst_51 [1] : vector<5x5xf32> to vector<5xf32>
    %180 = vector.shape_cast %179 : vector<5xf32> to vector<5x1xf32>
    %181 = vector.broadcast %180 : vector<5x1xf32> to vector<5x5xf32>
    %182 = arith.subf %178, %181 : vector<5x5xf32>
    %183 = math.exp %182 : vector<5x5xf32>
    %cst_52 = arith.constant dense<0.000000e+00> : vector<5xf32>
    %184 = vector.multi_reduction <add>, %183, %cst_52 [1] : vector<5x5xf32> to vector<5xf32>
    %185 = vector.shape_cast %184 : vector<5xf32> to vector<5x1xf32>
    %186 = tpu.reciprocal %185 {approx = true} : vector<5x1xf32> -> vector<5x1xf32>
    %187 = vector.broadcast %186 : vector<5x1xf32> to vector<5x5xf32>
    %188 = arith.mulf %183, %187 : vector<5x5xf32>
    %189 = arith.truncf %188 : vector<5x5xf32> to vector<5x5xbf16>
    %190 = arith.truncf %173 : vector<5x32xf32> to vector<5x32xbf16>
    %cst_53 = arith.constant dense<0.000000e+00> : vector<5x32xf32>
    %191 = tpu.matmul %189, %190, %cst_53 {dimension_numbers = #tpu.dot_dimension_numbers<[1], [0], [0], [1], [0, 0, 1, 1], [], []>} : vector<5x5xbf16>, vector<5x32xbf16>, vector<5x32xf32> -> vector<5x32xf32>
    %192 = vector.extract_strided_slice %126 {offsets = [0, 96], sizes = [5, 32], strides = [1, 1]} : vector<5x128xf32> to vector<5x32xf32>
    %193 = vector.extract_strided_slice %127 {offsets = [0, 96], sizes = [5, 32], strides = [1, 1]} : vector<5x128xf32> to vector<5x32xf32>
    %194 = vector.extract_strided_slice %128 {offsets = [0, 96], sizes = [5, 32], strides = [1, 1]} : vector<5x128xf32> to vector<5x32xf32>
    %195 = arith.truncf %192 : vector<5x32xf32> to vector<5x32xbf16>
    %196 = arith.truncf %193 : vector<5x32xf32> to vector<5x32xbf16>
    %cst_54 = arith.constant dense<0.000000e+00> : vector<5x5xf32>
    %197 = tpu.matmul %195, %196, %cst_54 {dimension_numbers = #tpu.dot_dimension_numbers<[1], [1], [0], [0], [0, 0, 1, 0], [], []>} : vector<5x32xbf16>, vector<5x32xbf16>, vector<5x5xf32> -> vector<5x5xf32>
    %cst_55 = arith.constant 0.176776692 : f32
    %198 = vector.broadcast %cst_55 : f32 to vector<5x5xf32>
    %199 = arith.mulf %197, %198 : vector<5x5xf32>
    %cst_56 = arith.constant dense<0xFF800000> : vector<5xf32>
    %200 = vector.multi_reduction <maximumf>, %199, %cst_56 [1] : vector<5x5xf32> to vector<5xf32>
    %201 = vector.shape_cast %200 : vector<5xf32> to vector<5x1xf32>
    %202 = vector.broadcast %201 : vector<5x1xf32> to vector<5x5xf32>
    %203 = arith.subf %199, %202 : vector<5x5xf32>
    %204 = math.exp %203 : vector<5x5xf32>
    %cst_57 = arith.constant dense<0.000000e+00> : vector<5xf32>
    %205 = vector.multi_reduction <add>, %204, %cst_57 [1] : vector<5x5xf32> to vector<5xf32>
    %206 = vector.shape_cast %205 : vector<5xf32> to vector<5x1xf32>
    %207 = tpu.reciprocal %206 {approx = true} : vector<5x1xf32> -> vector<5x1xf32>
    %208 = vector.broadcast %207 : vector<5x1xf32> to vector<5x5xf32>
    %209 = arith.mulf %204, %208 : vector<5x5xf32>
    %210 = arith.truncf %209 : vector<5x5xf32> to vector<5x5xbf16>
    %211 = arith.truncf %194 : vector<5x32xf32> to vector<5x32xbf16>
    %cst_58 = arith.constant dense<0.000000e+00> : vector<5x32xf32>
    %212 = tpu.matmul %210, %211, %cst_58 {dimension_numbers = #tpu.dot_dimension_numbers<[1], [0], [0], [1], [0, 0, 1, 1], [], []>} : vector<5x5xbf16>, vector<5x32xbf16>, vector<5x32xf32> -> vector<5x32xf32>
    %213 = tpu.concatenate %149, %170, %191, %212 in 1 : vector<5x32xf32>, vector<5x32xf32>, vector<5x32xf32>, vector<5x32xf32> -> vector<5x128xf32>
    %214 = tpu.concatenate %125, %213 in 0 : vector<5x128xf32>, vector<5x128xf32> -> vector<10x128xf32>
    %215 = arith.truncf %214 : vector<10x128xf32> to vector<10x128xbf16>
    %c0_59 = arith.constant 0 : index
    %c0_60 = arith.constant 0 : index
    %c0_61 = arith.constant 0 : index
    %216 = vector.load %arg6[%c0_59, %c0_60, %c0_61] : memref<1x128x128xbf16, #tpu.memory_space<vmem>>, vector<1x128x128xbf16>
    %217 = vector.shape_cast %216 : vector<1x128x128xbf16> to vector<128x128xbf16>
    %cst_62 = arith.constant dense<0.000000e+00> : vector<10x128xf32>
    %218 = tpu.matmul %215, %217, %cst_62 {dimension_numbers = #tpu.dot_dimension_numbers<[1], [0], [0], [1], [0, 0, 1, 1], [], []>} : vector<10x128xbf16>, vector<128x128xbf16>, vector<10x128xf32> -> vector<10x128xf32>
    %219 = arith.addf %3, %218 : vector<10x128xf32>
    %c0_63 = arith.constant 0 : index
    %c0_64 = arith.constant 0 : index
    %c0_65 = arith.constant 0 : index
    %220 = vector.load %arg7[%c0_63, %c0_64, %c0_65] : memref<1x1x128xf32, #tpu.memory_space<vmem>>, vector<1x1x128xf32>
    %221 = vector.shape_cast %220 : vector<1x1x128xf32> to vector<1x128xf32>
    %222 = vector.broadcast %221 : vector<1x128xf32> to vector<10x128xf32>
    %223 = arith.addf %219, %222 : vector<10x128xf32>
    %c0_66 = arith.constant 0 : index
    %c0_67 = arith.constant 0 : index
    %c0_68 = arith.constant 0 : index
    %224 = vector.load %arg8[%c0_66, %c0_67, %c0_68] : memref<1x1x128xf32, #tpu.memory_space<vmem>>, vector<1x1x128xf32>
    %225 = vector.shape_cast %224 : vector<1x1x128xf32> to vector<1x128xf32>
    %c0_69 = arith.constant 0 : index
    %c0_70 = arith.constant 0 : index
    %c0_71 = arith.constant 0 : index
    %226 = vector.load %arg9[%c0_69, %c0_70, %c0_71] : memref<1x1x128xf32, #tpu.memory_space<vmem>>, vector<1x1x128xf32>
    %227 = vector.shape_cast %226 : vector<1x1x128xf32> to vector<1x128xf32>
    %cst_72 = arith.constant dense<0.000000e+00> : vector<10xf32>
    %228 = vector.multi_reduction <add>, %223, %cst_72 [1] : vector<10x128xf32> to vector<10xf32>
    %229 = vector.shape_cast %228 : vector<10xf32> to vector<10x1xf32>
    %cst_73 = arith.constant 1.280000e+02 : f32
    %230 = vector.broadcast %cst_73 : f32 to vector<10x1xf32>
    %231 = arith.divf %229, %230 : vector<10x1xf32>
    %232 = vector.broadcast %231 : vector<10x1xf32> to vector<10x128xf32>
    %233 = arith.subf %223, %232 : vector<10x128xf32>
    %234 = arith.mulf %233, %233 : vector<10x128xf32>
    %cst_74 = arith.constant dense<0.000000e+00> : vector<10xf32>
    %235 = vector.multi_reduction <add>, %234, %cst_74 [1] : vector<10x128xf32> to vector<10xf32>
    %236 = vector.shape_cast %235 : vector<10xf32> to vector<10x1xf32>
    %cst_75 = arith.constant 1.280000e+02 : f32
    %237 = vector.broadcast %cst_75 : f32 to vector<10x1xf32>
    %238 = arith.divf %236, %237 : vector<10x1xf32>
    %239 = vector.broadcast %231 : vector<10x1xf32> to vector<10x128xf32>
    %240 = arith.subf %223, %239 : vector<10x128xf32>
    %cst_76 = arith.constant 9.99999974E-6 : f32
    %241 = vector.broadcast %cst_76 : f32 to vector<10x1xf32>
    %242 = arith.addf %238, %241 : vector<10x1xf32>
    %243 = math.rsqrt %242 : vector<10x1xf32>
    %244 = vector.broadcast %243 : vector<10x1xf32> to vector<10x128xf32>
    %245 = arith.mulf %240, %244 : vector<10x128xf32>
    %246 = vector.broadcast %225 : vector<1x128xf32> to vector<10x128xf32>
    %247 = arith.mulf %245, %246 : vector<10x128xf32>
    %248 = vector.broadcast %227 : vector<1x128xf32> to vector<10x128xf32>
    %249 = arith.addf %247, %248 : vector<10x128xf32>
    %250 = arith.truncf %249 : vector<10x128xf32> to vector<10x128xbf16>
    %c0_77 = arith.constant 0 : index
    %c0_78 = arith.constant 0 : index
    %c0_79 = arith.constant 0 : index
    %251 = vector.load %arg10[%c0_77, %c0_78, %c0_79] : memref<1x128x512xbf16, #tpu.memory_space<vmem>>, vector<1x128x512xbf16>
    %252 = vector.shape_cast %251 : vector<1x128x512xbf16> to vector<128x512xbf16>
    %cst_80 = arith.constant dense<0.000000e+00> : vector<10x512xf32>
    %253 = tpu.matmul %250, %252, %cst_80 {dimension_numbers = #tpu.dot_dimension_numbers<[1], [0], [0], [1], [0, 0, 1, 1], [], []>} : vector<10x128xbf16>, vector<128x512xbf16>, vector<10x512xf32> -> vector<10x512xf32>
    %c0_81 = arith.constant 0 : index
    %c0_82 = arith.constant 0 : index
    %c0_83 = arith.constant 0 : index
    %254 = vector.load %arg11[%c0_81, %c0_82, %c0_83] : memref<1x1x512xf32, #tpu.memory_space<vmem>>, vector<1x1x512xf32>
    %255 = vector.shape_cast %254 : vector<1x1x512xf32> to vector<1x512xf32>
    %256 = vector.broadcast %255 : vector<1x512xf32> to vector<10x512xf32>
    %257 = arith.addf %253, %256 : vector<10x512xf32>
    %cst_84 = arith.constant 1.702000e+00 : f32
    %258 = vector.broadcast %cst_84 : f32 to vector<10x512xf32>
    %259 = arith.mulf %258, %257 : vector<10x512xf32>
    %260 = arith.negf %259 : vector<10x512xf32>
    %261 = math.exp %260 : vector<10x512xf32>
    %cst_85 = arith.constant 1.000000e+00 : f32
    %262 = vector.broadcast %cst_85 : f32 to vector<10x512xf32>
    %263 = arith.addf %262, %261 : vector<10x512xf32>
    %264 = arith.divf %262, %263 : vector<10x512xf32>
    %265 = arith.mulf %257, %264 : vector<10x512xf32>
    %266 = arith.truncf %265 : vector<10x512xf32> to vector<10x512xbf16>
    %c0_86 = arith.constant 0 : index
    %c0_87 = arith.constant 0 : index
    %c0_88 = arith.constant 0 : index
    %267 = vector.load %arg12[%c0_86, %c0_87, %c0_88] : memref<1x512x128xbf16, #tpu.memory_space<vmem>>, vector<1x512x128xbf16>
    %268 = vector.shape_cast %267 : vector<1x512x128xbf16> to vector<512x128xbf16>
    %cst_89 = arith.constant dense<0.000000e+00> : vector<10x128xf32>
    %269 = tpu.matmul %266, %268, %cst_89 {dimension_numbers = #tpu.dot_dimension_numbers<[1], [0], [0], [1], [0, 0, 1, 1], [], []>} : vector<10x512xbf16>, vector<512x128xbf16>, vector<10x128xf32> -> vector<10x128xf32>
    %c0_90 = arith.constant 0 : index
    %c0_91 = arith.constant 0 : index
    %c0_92 = arith.constant 0 : index
    %270 = vector.load %arg13[%c0_90, %c0_91, %c0_92] : memref<1x1x128xf32, #tpu.memory_space<vmem>>, vector<1x1x128xf32>
    %271 = vector.shape_cast %270 : vector<1x1x128xf32> to vector<1x128xf32>
    %272 = vector.broadcast %271 : vector<1x128xf32> to vector<10x128xf32>
    %273 = arith.addf %269, %272 : vector<10x128xf32>
    %274 = arith.addf %223, %273 : vector<10x128xf32>
    %c0_93 = arith.constant 0 : index
    %c0_94 = arith.constant 0 : index
    %275 = vector.load %arg15[%c0_93, %c0_94] : memref<10x128xf32, #tpu.memory_space<vmem>>, vector<10x128xf32>
    tpu.vector_store %arg15[%c0_93, %c0_94], %274 {strides = array<i32>} : memref<10x128xf32, #tpu.memory_space<vmem>>, vector<10x128xf32>,
    %c1_i32 = arith.constant 1 : i32
    %276 = arith.cmpi eq, %arg0, %c1_i32 : i32
    %277 = arith.extui %276 : i1 to i32
    %c0_i32_95 = arith.constant 0 : i32
    %278 = arith.cmpi ne, %277, %c0_i32_95 : i32
    scf.if %278 {
      %c0_96 = arith.constant 0 : index
      %c0_97 = arith.constant 0 : index
      %279 = vector.load %arg14[%c0_96, %c0_97] : memref<10x128xf32, #tpu.memory_space<vmem>>, vector<10x128xf32>
      tpu.vector_store %arg14[%c0_96, %c0_97], %274 {strides = array<i32>} : memref<10x128xf32, #tpu.memory_space<vmem>>, vector<10x128xf32>,
    } else {
    }
    return
  }
  func.func @transform_0(%arg0: i32) -> (i32, i32) {
    %c0_i32 = arith.constant 0 : i32
    %c0_i32_0 = arith.constant 0 : i32
    %c0_i32_1 = arith.constant 0 : i32
    return %c0_i32, %c0_i32_0 : i32, i32
  }
  func.func @transform_1(%arg0: i32) -> (i32, i32, i32) {
    %c0_i32 = arith.constant 0 : i32
    %c0_i32_0 = arith.constant 0 : i32
    %c0_i32_1 = arith.constant 0 : i32
    return %arg0, %c0_i32, %c0_i32_0 : i32, i32, i32
  }
  func.func @transform_2(%arg0: i32) -> (i32, i32, i32) {
    %c0_i32 = arith.constant 0 : i32
    %c0_i32_0 = arith.constant 0 : i32
    %c0_i32_1 = arith.constant 0 : i32
    return %arg0, %c0_i32, %c0_i32_0 : i32, i32, i32
  }
  func.func @transform_3(%arg0: i32) -> (i32, i32, i32) {
    %c0_i32 = arith.constant 0 : i32
    %c0_i32_0 = arith.constant 0 : i32
    %c0_i32_1 = arith.constant 0 : i32
    return %arg0, %c0_i32, %c0_i32_0 : i32, i32, i32
  }
  func.func @transform_4(%arg0: i32) -> (i32, i32, i32) {
    %c0_i32 = arith.constant 0 : i32
    %c0_i32_0 = arith.constant 0 : i32
    %c0_i32_1 = arith.constant 0 : i32
    return %arg0, %c0_i32, %c0_i32_0 : i32, i32, i32
  }
  func.func @transform_5(%arg0: i32) -> (i32, i32, i32) {
    %c0_i32 = arith.constant 0 : i32
    %c0_i32_0 = arith.constant 0 : i32
    %c0_i32_1 = arith.constant 0 : i32
    return %arg0, %c0_i32, %c0_i32_0 : i32, i32, i32
  }
  func.func @transform_6(%arg0: i32) -> (i32, i32, i32) {
    %c0_i32 = arith.constant 0 : i32
    %c0_i32_0 = arith.constant 0 : i32
    %c0_i32_1 = arith.constant 0 : i32
    return %arg0, %c0_i32, %c0_i32_0 : i32, i32, i32
  }
  func.func @transform_7(%arg0: i32) -> (i32, i32, i32) {
    %c0_i32 = arith.constant 0 : i32
    %c0_i32_0 = arith.constant 0 : i32
    %c0_i32_1 = arith.constant 0 : i32
    return %arg0, %c0_i32, %c0_i32_0 : i32, i32, i32
  }
  func.func @transform_8(%arg0: i32) -> (i32, i32, i32) {
    %c0_i32 = arith.constant 0 : i32
    %c0_i32_0 = arith.constant 0 : i32
    %c0_i32_1 = arith.constant 0 : i32
    return %arg0, %c0_i32, %c0_i32_0 : i32, i32, i32
  }
  func.func @transform_9(%arg0: i32) -> (i32, i32, i32) {
    %c0_i32 = arith.constant 0 : i32
    %c0_i32_0 = arith.constant 0 : i32
    %c0_i32_1 = arith.constant 0 : i32
    return %arg0, %c0_i32, %c0_i32_0 : i32, i32, i32
  }
  func.func @transform_10(%arg0: i32) -> (i32, i32, i32) {
    %c0_i32 = arith.constant 0 : i32
    %c0_i32_0 = arith.constant 0 : i32
    %c0_i32_1 = arith.constant 0 : i32
    return %arg0, %c0_i32, %c0_i32_0 : i32, i32, i32
  }
  func.func @transform_11(%arg0: i32) -> (i32, i32, i32) {
    %c0_i32 = arith.constant 0 : i32
    %c0_i32_0 = arith.constant 0 : i32
    %c0_i32_1 = arith.constant 0 : i32
    return %arg0, %c0_i32, %c0_i32_0 : i32, i32, i32
  }
  func.func @transform_12(%arg0: i32) -> (i32, i32, i32) {
    %c0_i32 = arith.constant 0 : i32
    %c0_i32_0 = arith.constant 0 : i32
    %c0_i32_1 = arith.constant 0 : i32
    return %arg0, %c0_i32, %c0_i32_0 : i32, i32, i32
  }
  func.func @transform_13(%arg0: i32) -> (i32, i32) {
    %c0_i32 = arith.constant 0 : i32
    %c0_i32_0 = arith.constant 0 : i32
    %c0_i32_1 = arith.constant 0 : i32
    return %c0_i32, %c0_i32_0 : i32, i32
  }
}

module attributes {stable_mosaic.version = 11 : i64} {
  func.func @_head_kernel(%arg0: i32, %arg1: memref<10x128xf32, #tpu.memory_space<vmem>>, %arg2: memref<1x128xf32, #tpu.memory_space<vmem>>, %arg3: memref<1x128xf32, #tpu.memory_space<vmem>>, %arg4: memref<128x64xbf16, #tpu.memory_space<vmem>>, %arg5: memref<1x128xf32, #tpu.memory_space<vmem>>, %arg6: memref<1x128xf32, #tpu.memory_space<vmem>>, %arg7: memref<1x64xf32, #tpu.memory_space<vmem>>, %arg8: memref<1x64xf32, #tpu.memory_space<vmem>>, %arg9: memref<128x8xbf16, #tpu.memory_space<vmem>>, %arg10: memref<64x8xbf16, #tpu.memory_space<vmem>>, %arg11: memref<2x8xf32, #tpu.memory_space<vmem>>, %arg12: memref<2x8xf32, #tpu.memory_space<vmem>>, %arg13: memref<2x128xf32, #tpu.memory_space<vmem>>, %arg14: memref<2x64xf32, #tpu.memory_space<vmem>>) attributes {dimension_semantics = [#tpu.dimension_semantics<arbitrary>], iteration_bounds = array<i64: 1>, scalar_prefetch = 0 : i64, scratch_operands = 0 : i64, tpu.core_type = #tpu.core_type<tc>, window_params = [{pipeline_mode = #tpu.pipeline_mode<synchronous>, transform_indices = @transform_0, window_bounds = array<i64: 10, 128>}, {pipeline_mode = #tpu.pipeline_mode<synchronous>, transform_indices = @transform_1, window_bounds = array<i64: 1, 128>}, {pipeline_mode = #tpu.pipeline_mode<synchronous>, transform_indices = @transform_2, window_bounds = array<i64: 1, 128>}, {pipeline_mode = #tpu.pipeline_mode<synchronous>, transform_indices = @transform_3, window_bounds = array<i64: 128, 64>}, {pipeline_mode = #tpu.pipeline_mode<synchronous>, transform_indices = @transform_4, window_bounds = array<i64: 1, 128>}, {pipeline_mode = #tpu.pipeline_mode<synchronous>, transform_indices = @transform_5, window_bounds = array<i64: 1, 128>}, {pipeline_mode = #tpu.pipeline_mode<synchronous>, transform_indices = @transform_6, window_bounds = array<i64: 1, 64>}, {pipeline_mode = #tpu.pipeline_mode<synchronous>, transform_indices = @transform_7, window_bounds = array<i64: 1, 64>}, {pipeline_mode = #tpu.pipeline_mode<synchronous>, transform_indices = @transform_8, window_bounds = array<i64: 128, 8>}, {pipeline_mode = #tpu.pipeline_mode<synchronous>, transform_indices = @transform_9, window_bounds = array<i64: 64, 8>}, {pipeline_mode = #tpu.pipeline_mode<synchronous>, transform_indices = @transform_10, window_bounds = array<i64: 2, 8>}, {pipeline_mode = #tpu.pipeline_mode<synchronous>, transform_indices = @transform_11, window_bounds = array<i64: 2, 8>}, {pipeline_mode = #tpu.pipeline_mode<synchronous>, transform_indices = @transform_12, window_bounds = array<i64: 2, 128>}, {pipeline_mode = #tpu.pipeline_mode<synchronous>, transform_indices = @transform_13, window_bounds = array<i64: 2, 64>}]} {
    %c0 = arith.constant 0 : index
    %c0_0 = arith.constant 0 : index
    %0 = vector.load %arg1[%c0, %c0_0] : memref<10x128xf32, #tpu.memory_space<vmem>>, vector<10x128xf32>
    %1 = vector.extract_strided_slice %0 {offsets = [0, 0], sizes = [1, 128], strides = [1, 1]} : vector<10x128xf32> to vector<1x128xf32>
    %2 = vector.extract_strided_slice %0 {offsets = [5, 0], sizes = [1, 128], strides = [1, 1]} : vector<10x128xf32> to vector<1x128xf32>
    %3 = tpu.concatenate %1, %2 in 0 : vector<1x128xf32>, vector<1x128xf32> -> vector<2x128xf32>
    %c0_1 = arith.constant 0 : index
    %c0_2 = arith.constant 0 : index
    %4 = vector.load %arg2[%c0_1, %c0_2] : memref<1x128xf32, #tpu.memory_space<vmem>>, vector<1x128xf32>
    %c0_3 = arith.constant 0 : index
    %c0_4 = arith.constant 0 : index
    %5 = vector.load %arg3[%c0_3, %c0_4] : memref<1x128xf32, #tpu.memory_space<vmem>>, vector<1x128xf32>
    %cst = arith.constant dense<0.000000e+00> : vector<2xf32>
    %6 = vector.multi_reduction <add>, %3, %cst [1] : vector<2x128xf32> to vector<2xf32>
    %7 = vector.shape_cast %6 : vector<2xf32> to vector<2x1xf32>
    %cst_5 = arith.constant 1.280000e+02 : f32
    %8 = vector.broadcast %cst_5 : f32 to vector<2x1xf32>
    %9 = arith.divf %7, %8 : vector<2x1xf32>
    %10 = vector.broadcast %9 : vector<2x1xf32> to vector<2x128xf32>
    %11 = arith.subf %3, %10 : vector<2x128xf32>
    %12 = arith.mulf %11, %11 : vector<2x128xf32>
    %cst_6 = arith.constant dense<0.000000e+00> : vector<2xf32>
    %13 = vector.multi_reduction <add>, %12, %cst_6 [1] : vector<2x128xf32> to vector<2xf32>
    %14 = vector.shape_cast %13 : vector<2xf32> to vector<2x1xf32>
    %cst_7 = arith.constant 1.280000e+02 : f32
    %15 = vector.broadcast %cst_7 : f32 to vector<2x1xf32>
    %16 = arith.divf %14, %15 : vector<2x1xf32>
    %17 = vector.broadcast %9 : vector<2x1xf32> to vector<2x128xf32>
    %18 = arith.subf %3, %17 : vector<2x128xf32>
    %cst_8 = arith.constant 9.99999974E-6 : f32
    %19 = vector.broadcast %cst_8 : f32 to vector<2x1xf32>
    %20 = arith.addf %16, %19 : vector<2x1xf32>
    %21 = math.rsqrt %20 : vector<2x1xf32>
    %22 = vector.broadcast %21 : vector<2x1xf32> to vector<2x128xf32>
    %23 = arith.mulf %18, %22 : vector<2x128xf32>
    %24 = vector.broadcast %4 : vector<1x128xf32> to vector<2x128xf32>
    %25 = arith.mulf %23, %24 : vector<2x128xf32>
    %26 = vector.broadcast %5 : vector<1x128xf32> to vector<2x128xf32>
    %27 = arith.addf %25, %26 : vector<2x128xf32>
    %28 = arith.truncf %27 : vector<2x128xf32> to vector<2x128xbf16>
    %c0_9 = arith.constant 0 : index
    %c0_10 = arith.constant 0 : index
    %29 = vector.load %arg4[%c0_9, %c0_10] : memref<128x64xbf16, #tpu.memory_space<vmem>>, vector<128x64xbf16>
    %cst_11 = arith.constant dense<0.000000e+00> : vector<2x64xf32>
    %30 = tpu.matmul %28, %29, %cst_11 {dimension_numbers = #tpu.dot_dimension_numbers<[1], [0], [0], [1], [0, 0, 1, 1], [], []>} : vector<2x128xbf16>, vector<128x64xbf16>, vector<2x64xf32> -> vector<2x64xf32>
    %c0_12 = arith.constant 0 : index
    %c0_13 = arith.constant 0 : index
    %31 = vector.load %arg13[%c0_12, %c0_13] : memref<2x128xf32, #tpu.memory_space<vmem>>, vector<2x128xf32>
    tpu.vector_store %arg13[%c0_12, %c0_13], %27 {strides = array<i32>} : memref<2x128xf32, #tpu.memory_space<vmem>>, vector<2x128xf32>,
    %c0_14 = arith.constant 0 : index
    %c0_15 = arith.constant 0 : index
    %32 = vector.load %arg14[%c0_14, %c0_15] : memref<2x64xf32, #tpu.memory_space<vmem>>, vector<2x64xf32>
    tpu.vector_store %arg14[%c0_14, %c0_15], %30 {strides = array<i32>} : memref<2x64xf32, #tpu.memory_space<vmem>>, vector<2x64xf32>,
    %cst_16 = arith.constant dense<0.000000e+00> : vector<128xf32>
    %33 = vector.multi_reduction <add>, %27, %cst_16 [0] : vector<2x128xf32> to vector<128xf32>
    %34 = vector.shape_cast %33 : vector<128xf32> to vector<1x128xf32>
    %cst_17 = arith.constant 2.000000e+00 : f32
    %35 = vector.broadcast %cst_17 : f32 to vector<1x128xf32>
    %36 = arith.divf %34, %35 : vector<1x128xf32>
    %37 = vector.broadcast %36 : vector<1x128xf32> to vector<2x128xf32>
    %38 = arith.subf %27, %37 : vector<2x128xf32>
    %39 = arith.mulf %38, %38 : vector<2x128xf32>
    %cst_18 = arith.constant dense<0.000000e+00> : vector<128xf32>
    %40 = vector.multi_reduction <add>, %39, %cst_18 [0] : vector<2x128xf32> to vector<128xf32>
    %41 = vector.shape_cast %40 : vector<128xf32> to vector<1x128xf32>
    %cst_19 = arith.constant 2.000000e+00 : f32
    %42 = vector.broadcast %cst_19 : f32 to vector<1x128xf32>
    %43 = arith.divf %41, %42 : vector<1x128xf32>
    %44 = vector.broadcast %36 : vector<1x128xf32> to vector<2x128xf32>
    %45 = arith.subf %27, %44 : vector<2x128xf32>
    %cst_20 = arith.constant 9.99999974E-6 : f32
    %46 = vector.broadcast %cst_20 : f32 to vector<1x128xf32>
    %47 = arith.addf %43, %46 : vector<1x128xf32>
    %48 = math.rsqrt %47 : vector<1x128xf32>
    %49 = vector.broadcast %48 : vector<1x128xf32> to vector<2x128xf32>
    %50 = arith.mulf %45, %49 : vector<2x128xf32>
    %c0_21 = arith.constant 0 : index
    %c0_22 = arith.constant 0 : index
    %51 = vector.load %arg5[%c0_21, %c0_22] : memref<1x128xf32, #tpu.memory_space<vmem>>, vector<1x128xf32>
    %52 = vector.broadcast %51 : vector<1x128xf32> to vector<2x128xf32>
    %53 = arith.mulf %50, %52 : vector<2x128xf32>
    %c0_23 = arith.constant 0 : index
    %c0_24 = arith.constant 0 : index
    %54 = vector.load %arg6[%c0_23, %c0_24] : memref<1x128xf32, #tpu.memory_space<vmem>>, vector<1x128xf32>
    %55 = vector.broadcast %54 : vector<1x128xf32> to vector<2x128xf32>
    %56 = arith.addf %53, %55 : vector<2x128xf32>
    %57 = arith.truncf %56 : vector<2x128xf32> to vector<2x128xbf16>
    %c0_25 = arith.constant 0 : index
    %c0_26 = arith.constant 0 : index
    %58 = vector.load %arg9[%c0_25, %c0_26] : memref<128x8xbf16, #tpu.memory_space<vmem>>, vector<128x8xbf16>
    %cst_27 = arith.constant dense<0.000000e+00> : vector<2x8xf32>
    %59 = tpu.matmul %57, %58, %cst_27 {dimension_numbers = #tpu.dot_dimension_numbers<[1], [0], [0], [1], [0, 0, 1, 1], [], []>} : vector<2x128xbf16>, vector<128x8xbf16>, vector<2x8xf32> -> vector<2x8xf32>
    %c0_28 = arith.constant 0 : index
    %c0_29 = arith.constant 0 : index
    %60 = vector.load %arg11[%c0_28, %c0_29] : memref<2x8xf32, #tpu.memory_space<vmem>>, vector<2x8xf32>
    tpu.vector_store %arg11[%c0_28, %c0_29], %59 {strides = array<i32>} : memref<2x8xf32, #tpu.memory_space<vmem>>, vector<2x8xf32>,
    %cst_30 = arith.constant dense<0.000000e+00> : vector<64xf32>
    %61 = vector.multi_reduction <add>, %30, %cst_30 [0] : vector<2x64xf32> to vector<64xf32>
    %62 = vector.shape_cast %61 : vector<64xf32> to vector<1x64xf32>
    %cst_31 = arith.constant 2.000000e+00 : f32
    %63 = vector.broadcast %cst_31 : f32 to vector<1x64xf32>
    %64 = arith.divf %62, %63 : vector<1x64xf32>
    %65 = vector.broadcast %64 : vector<1x64xf32> to vector<2x64xf32>
    %66 = arith.subf %30, %65 : vector<2x64xf32>
    %67 = arith.mulf %66, %66 : vector<2x64xf32>
    %cst_32 = arith.constant dense<0.000000e+00> : vector<64xf32>
    %68 = vector.multi_reduction <add>, %67, %cst_32 [0] : vector<2x64xf32> to vector<64xf32>
    %69 = vector.shape_cast %68 : vector<64xf32> to vector<1x64xf32>
    %cst_33 = arith.constant 2.000000e+00 : f32
    %70 = vector.broadcast %cst_33 : f32 to vector<1x64xf32>
    %71 = arith.divf %69, %70 : vector<1x64xf32>
    %72 = vector.broadcast %64 : vector<1x64xf32> to vector<2x64xf32>
    %73 = arith.subf %30, %72 : vector<2x64xf32>
    %cst_34 = arith.constant 9.99999974E-6 : f32
    %74 = vector.broadcast %cst_34 : f32 to vector<1x64xf32>
    %75 = arith.addf %71, %74 : vector<1x64xf32>
    %76 = math.rsqrt %75 : vector<1x64xf32>
    %77 = vector.broadcast %76 : vector<1x64xf32> to vector<2x64xf32>
    %78 = arith.mulf %73, %77 : vector<2x64xf32>
    %c0_35 = arith.constant 0 : index
    %c0_36 = arith.constant 0 : index
    %79 = vector.load %arg7[%c0_35, %c0_36] : memref<1x64xf32, #tpu.memory_space<vmem>>, vector<1x64xf32>
    %80 = vector.broadcast %79 : vector<1x64xf32> to vector<2x64xf32>
    %81 = arith.mulf %78, %80 : vector<2x64xf32>
    %c0_37 = arith.constant 0 : index
    %c0_38 = arith.constant 0 : index
    %82 = vector.load %arg8[%c0_37, %c0_38] : memref<1x64xf32, #tpu.memory_space<vmem>>, vector<1x64xf32>
    %83 = vector.broadcast %82 : vector<1x64xf32> to vector<2x64xf32>
    %84 = arith.addf %81, %83 : vector<2x64xf32>
    %85 = arith.truncf %84 : vector<2x64xf32> to vector<2x64xbf16>
    %c0_39 = arith.constant 0 : index
    %c0_40 = arith.constant 0 : index
    %86 = vector.load %arg10[%c0_39, %c0_40] : memref<64x8xbf16, #tpu.memory_space<vmem>>, vector<64x8xbf16>
    %cst_41 = arith.constant dense<0.000000e+00> : vector<2x8xf32>
    %87 = tpu.matmul %85, %86, %cst_41 {dimension_numbers = #tpu.dot_dimension_numbers<[1], [0], [0], [1], [0, 0, 1, 1], [], []>} : vector<2x64xbf16>, vector<64x8xbf16>, vector<2x8xf32> -> vector<2x8xf32>
    %c0_42 = arith.constant 0 : index
    %c0_43 = arith.constant 0 : index
    %88 = vector.load %arg12[%c0_42, %c0_43] : memref<2x8xf32, #tpu.memory_space<vmem>>, vector<2x8xf32>
    tpu.vector_store %arg12[%c0_42, %c0_43], %87 {strides = array<i32>} : memref<2x8xf32, #tpu.memory_space<vmem>>, vector<2x8xf32>,
    return
  }
  func.func @transform_0(%arg0: i32) -> (i32, i32) {
    %c0_i32 = arith.constant 0 : i32
    %c0_i32_0 = arith.constant 0 : i32
    %c0_i32_1 = arith.constant 0 : i32
    return %c0_i32, %c0_i32_0 : i32, i32
  }
  func.func @transform_1(%arg0: i32) -> (i32, i32) {
    %c0_i32 = arith.constant 0 : i32
    %c0_i32_0 = arith.constant 0 : i32
    %c0_i32_1 = arith.constant 0 : i32
    return %c0_i32, %c0_i32_0 : i32, i32
  }
  func.func @transform_2(%arg0: i32) -> (i32, i32) {
    %c0_i32 = arith.constant 0 : i32
    %c0_i32_0 = arith.constant 0 : i32
    %c0_i32_1 = arith.constant 0 : i32
    return %c0_i32, %c0_i32_0 : i32, i32
  }
  func.func @transform_3(%arg0: i32) -> (i32, i32) {
    %c0_i32 = arith.constant 0 : i32
    %c0_i32_0 = arith.constant 0 : i32
    %c0_i32_1 = arith.constant 0 : i32
    return %c0_i32, %c0_i32_0 : i32, i32
  }
  func.func @transform_4(%arg0: i32) -> (i32, i32) {
    %c0_i32 = arith.constant 0 : i32
    %c0_i32_0 = arith.constant 0 : i32
    %c0_i32_1 = arith.constant 0 : i32
    return %c0_i32, %c0_i32_0 : i32, i32
  }
  func.func @transform_5(%arg0: i32) -> (i32, i32) {
    %c0_i32 = arith.constant 0 : i32
    %c0_i32_0 = arith.constant 0 : i32
    %c0_i32_1 = arith.constant 0 : i32
    return %c0_i32, %c0_i32_0 : i32, i32
  }
  func.func @transform_6(%arg0: i32) -> (i32, i32) {
    %c0_i32 = arith.constant 0 : i32
    %c0_i32_0 = arith.constant 0 : i32
    %c0_i32_1 = arith.constant 0 : i32
    return %c0_i32, %c0_i32_0 : i32, i32
  }
  func.func @transform_7(%arg0: i32) -> (i32, i32) {
    %c0_i32 = arith.constant 0 : i32
    %c0_i32_0 = arith.constant 0 : i32
    %c0_i32_1 = arith.constant 0 : i32
    return %c0_i32, %c0_i32_0 : i32, i32
  }
  func.func @transform_8(%arg0: i32) -> (i32, i32) {
    %c0_i32 = arith.constant 0 : i32
    %c0_i32_0 = arith.constant 0 : i32
    %c0_i32_1 = arith.constant 0 : i32
    return %c0_i32, %c0_i32_0 : i32, i32
  }
  func.func @transform_9(%arg0: i32) -> (i32, i32) {
    %c0_i32 = arith.constant 0 : i32
    %c0_i32_0 = arith.constant 0 : i32
    %c0_i32_1 = arith.constant 0 : i32
    return %c0_i32, %c0_i32_0 : i32, i32
  }
  func.func @transform_10(%arg0: i32) -> (i32, i32) {
    %c0_i32 = arith.constant 0 : i32
    %c0_i32_0 = arith.constant 0 : i32
    %c0_i32_1 = arith.constant 0 : i32
    return %c0_i32, %c0_i32_0 : i32, i32
  }
  func.func @transform_11(%arg0: i32) -> (i32, i32) {
    %c0_i32 = arith.constant 0 : i32
    %c0_i32_0 = arith.constant 0 : i32
    %c0_i32_1 = arith.constant 0 : i32
    return %c0_i32, %c0_i32_0 : i32, i32
  }
  func.func @transform_12(%arg0: i32) -> (i32, i32) {
    %c0_i32 = arith.constant 0 : i32
    %c0_i32_0 = arith.constant 0 : i32
    %c0_i32_1 = arith.constant 0 : i32
    return %c0_i32, %c0_i32_0 : i32, i32
  }
  func.func @transform_13(%arg0: i32) -> (i32, i32) {
    %c0_i32 = arith.constant 0 : i32
    %c0_i32_0 = arith.constant 0 : i32
    %c0_i32_1 = arith.constant 0 : i32
    return %c0_i32, %c0_i32_0 : i32, i32
  }
}

</mosaic_0001>

<bundles_post_ra>
// kernel: model_forward.3
= control target key start
LH: loop header
LB: loop body
LE: loop exit
PB: predicated region body
PF: predicated region fallthrough
CT: control target
= control target key end

     0   :  { %vm563_vm0 = vcmask 1041408   ;;  %vm553_vm1 = vcmask 1040384   ;;  %vm555_vm2 = vcmask 1044480   ;;  %vm557_vm3 = vcmask 1045504   ;;  %s986_s1 = inlined_call_operand.vmem [shape: bf16[768,128], index: 1, kind: input, shape index: {}]   ;;  %s987_s0 = inlined_call_operand.vmem [shape: f32[8,768], index: 0, kind: input, shape index: {}]   ;;  %s988_s2 = inlined_call_operand.vmem [shape: f32[5,128], index: 2, kind: input, shape index: {}]   ;;  %s989_s3 = inlined_call_operand.vmem [shape: f32[1,128], index: 3, kind: input, shape index: {}]   ;;  %s990_s4 = inlined_call_operand.vmem [shape: f32[1,128], index: 4, kind: input, shape index: {}]   ;;  %s991_s5 = inlined_call_operand.vmem [shape: f32[10,128], index: 5, kind: output, shape index: {}]  }
   0x1   :  { %v725_v0 = vld [vmem:[%s986_s1 + $0x40] sm:$0xff]   ;;  %v729_v4 = vld [vmem:[%s986_s1 + $0x48] sm:$0xff]   ;;  %v733_v8 = vld [vmem:[%s986_s1 + $0x50] sm:$0xff]  }
   0x2   :  { %v726_v1 = vld [vmem:[%s986_s1 + $0xc0] sm:$0xff]   ;;  %659 = vmatprep.subr.bf16.mxu0 %v725_v0  ;;  %v730_v5 = vld [vmem:[%s986_s1 + $0xc8] sm:$0xff]   ;;  %v734_v9 = vld [vmem:[%s986_s1 + $0xd0] sm:$0xff]  }
   0x3   :  { %v727_v2 = vld [vmem:[%s986_s1] sm:$0xff]   ;;  %681 = vmatprep.subr.bf16.mxu1 %v726_v1  ;;  %v731_v6 = vld [vmem:[%s986_s1 + $0x8] sm:$0xff]   ;;  %v735_v10 = vld [vmem:[%s986_s1 + $0x10] sm:$0xff]  }
   0x4   :  { %v728_v3 = vld [vmem:[%s986_s1 + $0x80] sm:$0xff]   ;;  %660 = vmatpush3.bf16.msra.mxu0 %v727_v2  ;;  %v732_v7 = vld [vmem:[%s986_s1 + $0x88] sm:$0xff]   ;;  %v736_v11 = vld [vmem:[%s986_s1 + $0x90] sm:$0xff]  }
   0x5   :  { %682 = vmatpush3.bf16.msra.mxu1 %v728_v3  ;;  %661 = vmatprep.subr.bf16.mxu0 %v729_v4  ;;  %v737_v12 = vld [vmem:[%s986_s1 + $0x58] sm:$0xff]   ;;  %v741_v16 = vld [vmem:[%s986_s1 + $0x60] sm:$0xff]   ;;  %v745_v20 = vld [vmem:[%s986_s1 + $0x68] sm:$0xff]  }
   0x6   :  { %683 = vmatprep.subr.bf16.mxu1 %v730_v5  ;;  %v738_v13 = vld [vmem:[%s986_s1 + $0xd8] sm:$0xff]   ;;  %v742_v17 = vld [vmem:[%s986_s1 + $0xe0] sm:$0xff]   ;;  %v746_v21 = vld [vmem:[%s986_s1 + $0xe8] sm:$0xff]  }
   0x7   :  { %v739_v14 = vld [vmem:[%s986_s1 + $0x18] sm:$0xff]   ;;  %v743_v18 = vld [vmem:[%s986_s1 + $0x20] sm:$0xff]   ;;  %v747_v22 = vld [vmem:[%s986_s1 + $0x28] sm:$0xff]  }
   0x8   :  { %662 = vmatpush3.bf16.msra.mxu0 %v731_v6  ;;  %v740_v15 = vld [vmem:[%s986_s1 + $0x98] sm:$0xff]   ;;  %v744_v19 = vld [vmem:[%s986_s1 + $0xa0] sm:$0xff]   ;;  %v748_v23 = vld [vmem:[%s986_s1 + $0xa8] sm:$0xff]  }
   0x9   :  { %684 = vmatpush3.bf16.msra.mxu1 %v732_v7  ;;  %663 = vmatprep.subr.bf16.mxu0 %v733_v8  ;;  %v749_v24 = vld [vmem:[%s986_s1 + $0x70] sm:$0xff]   ;;  %v753_v28 = vld [vmem:[%s986_s1 + $0x78] sm:$0xff]   ;;  %v22_v32 = vld [vmem:[%s987_s0 + $0x8] sm:$0xff] }
   0xa   :  { %685 = vmatprep.subr.bf16.mxu1 %v734_v9  ;;  %v750_v25 = vld [vmem:[%s986_s1 + $0xf0] sm:$0xff]   ;;  %v754_v29 = vld [vmem:[%s986_s1 + $0xf8] sm:$0xff]   ;;  %v21_v34 = vld [vmem:[%s987_s0] sm:$0xff]  ;;  %v28_v35 = vpack.c.bf16 %v22_v32, %v22_v32 }
   0xb   :  { %v751_v26 = vld [vmem:[%s986_s1 + $0x30] sm:$0xff]   ;;  %v755_v30 = vld [vmem:[%s986_s1 + $0x38] sm:$0xff]   ;;  %v27_v37 = vpack.c.bf16 %v21_v34, %v21_v34  ;;  %v757_v40 = vld [vmem:[%s986_s1 + $0x140] sm:$0xff]  }
   0xc   :  { %664 = vmatpush3.bf16.msra.mxu0 %v735_v10  ;;  %v752_v27 = vld [vmem:[%s986_s1 + $0xb0] sm:$0xff]   ;;  %v756_v31 = vld [vmem:[%s986_s1 + $0xb8] sm:$0xff]   ;;  %449 = vmatprep.mubr.bf16.mxu0 %v28_v35  ;;  %v758_v41 = vld [vmem:[%s986_s1 + $0x100] sm:$0xff]  }
   0xd   :  { %686 = vmatpush3.bf16.msra.mxu1 %v736_v11  ;;  %665 = vmatprep.subr.bf16.mxu0 %v737_v12  ;;  %v24_v33 = vld [vmem:[%s987_s0 + $0x18] sm:$0xff]  ;;  %v23_v38 = vld [vmem:[%s987_s0 + $0x10] sm:$0xff]  ;;  %v759_v42 = vld [vmem:[%s986_s1 + $0x148] sm:$0xff]  }
   0xe   :  { %687 = vmatprep.subr.bf16.mxu1 %v738_v13  ;;  %v30_v36 = vpack.c.bf16 %v24_v33, %v24_v33  ;;  %v29_v39 = vpack.c.bf16 %v23_v38, %v23_v38  ;;  %v760_v43 = vld [vmem:[%s986_s1 + $0x108] sm:$0xff]   ;;  %v761_v44 = vld [vmem:[%s986_s1 + $0x150] sm:$0xff]   ;;  %v763_v46 = vld [vmem:[%s986_s1 + $0x158] sm:$0xff]  }
   0xf   :  { %v762_v45 = vld [vmem:[%s986_s1 + $0x110] sm:$0xff]   ;;  %v764_v47 = vld [vmem:[%s986_s1 + $0x118] sm:$0xff]   ;;  %v765_v48 = vld [vmem:[%s986_s1 + $0x160] sm:$0xff]  }
  0x10   :  { %666 = vmatpush3.bf16.msra.mxu0 %v739_v14  ;;  %489 = vmatprep.mubr.bf16.mxu1 %v30_v36  ;;  %v26_v49 = vld [vmem:[%s987_s0 + $0x28] sm:$0xff]  ;;  %v766_v50 = vld [vmem:[%s986_s1 + $0x120] sm:$0xff]   ;;  %v769_v54 = vld [vmem:[%s986_s1 + $0x170] sm:$0xff]  }
  0x11   :  { %688 = vmatpush3.bf16.msra.mxu1 %v740_v15  ;;  %667 = vmatprep.subr.bf16.mxu0 %v741_v16  ;;  %v32_v51 = vpack.c.bf16 %v26_v49, %v26_v49  ;;  %v767_v52 = vld [vmem:[%s986_s1 + $0x168] sm:$0xff]   ;;  %v770_v55 = vld [vmem:[%s986_s1 + $0x130] sm:$0xff]   ;;  %v771_v56 = vld [vmem:[%s986_s1 + $0x178] sm:$0xff]  }
  0x12   :  { %689 = vmatprep.subr.bf16.mxu1 %v742_v17  ;;  %v768_v53 = vld [vmem:[%s986_s1 + $0x128] sm:$0xff]   ;;  %v772_v57 = vld [vmem:[%s986_s1 + $0x138] sm:$0xff]   ;;  %v25_v58 = vld [vmem:[%s987_s0 + $0x20] sm:$0xff] }
  0x13   :  { %v31_v59 = vpack.c.bf16 %v25_v58, %v25_v58  ;;  %v537_v7 = vld [vmem:[%s988_s2] sm:$0x1f] }
  0x14   :  { %668 = vmatpush3.bf16.msra.mxu0 %v743_v18  ;;  %v539_v11 = vrot.slane %v537_v7, 1  ;;  %v542_v12 = vrot.slane %v537_v7, 5  ;;  %v548_v18 = vrot.slane %v537_v7, 3 }
  0x15   :  { %690 = vmatpush3.bf16.msra.mxu1 %v744_v19  ;;  %669 = vmatprep.subr.bf16.mxu0 %v745_v20 }
  0x16   :  { %691 = vmatprep.subr.bf16.mxu1 %v746_v21 }
  0x18   :  { %670 = vmatpush3.bf16.msra.mxu0 %v747_v22 }
  0x19   :  { %692 = vmatpush3.bf16.msra.mxu1 %v748_v23  ;;  %671 = vmatprep.subr.bf16.mxu0 %v749_v24 }
  0x1a   :  { %693 = vmatprep.subr.bf16.mxu1 %v750_v25 }
  0x1c   :  { %672 = vmatpush3.bf16.msra.mxu0 %v751_v26 }
  0x1d   :  { %694 = vmatpush3.bf16.msra.mxu1 %v752_v27  ;;  %673 = vmatprep.subr.bf16.mxu0 %v753_v28 }
  0x1e   :  { %695 = vmatprep.subr.bf16.mxu1 %v754_v29 }
  0x20   :  { %674 = vmatpush3.bf16.msra.mxu0 %v755_v30 }
  0x21   :  { %696 = vmatpush3.bf16.msra.mxu1 %v756_v31  ;;  %703 = vmatprep.subr.bf16.mxu0 %v757_v40 }
  0x23   :  { %450 = vmatmul.mubr.bf16.vlgmr.msra.gmra.mrb[0].mxu0 %v27_v37 }
  0x24   :  { %490 = vmatmul.mubr.bf16.vlgmr.msra.gmra.mrb[0].mxu1 %v29_v39  ;;  %704 = vmatpush3.bf16.msra.mxu0 %v758_v41  ;;  %v657_v41 = vld [vmem:[%s989_s3] ss:$0 sm:$0xff] }
  0x25   :  { %705 = vmatprep.subr.bf16.mxu0 %v759_v42  ;;  %529 = vmatprep.mubr.bf16.mxu0 %v32_v51 }
  0x28   :  { %706 = vmatpush3.bf16.msra.mxu0 %v760_v43  ;;  %v658_v43 = vld [vmem:[%s990_s4] ss:$0 sm:$0xff] }
  0x29   :  { %707 = vmatprep.subr.bf16.mxu0 %v761_v44 }
  0x2c   :  { %708 = vmatpush3.bf16.msra.mxu0 %v762_v45 }
  0x2d   :  { %709 = vmatprep.subr.bf16.mxu0 %v763_v46 }
  0x30   :  { %710 = vmatpush3.bf16.msra.mxu0 %v764_v47 }
  0x31   :  { %711 = vmatprep.subr.bf16.mxu0 %v765_v48 }
  0x34   :  { %712 = vmatpush3.bf16.msra.mxu0 %v766_v50 }
  0x35   :  { %713 = vmatprep.subr.bf16.mxu0 %v767_v52 }
  0x38   :  { %714 = vmatpush3.bf16.msra.mxu0 %v768_v53 }
  0x39   :  { %715 = vmatprep.subr.bf16.mxu0 %v769_v54 }
  0x3c   :  { %716 = vmatpush3.bf16.msra.mxu0 %v770_v55 }
  0x3d   :  { %717 = vmatprep.subr.bf16.mxu0 %v771_v56 }
  0x40   :  { %718 = vmatpush3.bf16.msra.mxu0 %v772_v57 }
  0x43   :  { %530 = vmatmul.mubr.bf16.vlgmr.msra.gmra.mrb[4].mxu0 %v31_v59 }
  0xf6   :  { %v675_v60 = vpop.f32.mrb[0].mxu0 }
  0xf7   :  { %v697_v61 = vpop.f32.mrb[0].mxu1  ;;  %v676_v62 = vpop.f32.mrb[1].mxu0 }
  0xf8   :  { %v698_v63 = vpop.f32.mrb[1].mxu1  ;;  %v677_v0 = vadd.f32 %v676_v62, %v675_v60  ;;  %v678_v2 = vpop.f32.mrb[2].mxu0 }
  0xf9   :  { %v699_v1 = vadd.f32 %v698_v63, %v697_v61  ;;  %v700_v3 = vpop.f32.mrb[2].mxu1  ;;  %v679_v4 = vpop.f32.mrb[3].mxu0 }
  0xfa   :  { %v701_v5 = vpop.f32.mrb[3].mxu1 }
  0xfb   :  { %v492_v6 = vadd.f32 %v699_v1, %v677_v0 }
 0x116   :  { %v719_v8 = vpop.f32.mrb[4].mxu0 }
 0x117   :  { %v720_v9 = vpop.f32.mrb[5].mxu0 }
 0x118   :  { %v721_v10 = vadd.f32 %v720_v9, %v719_v8  ;;  %v722_v13 = vpop.f32.mrb[6].mxu0 }
 0x119   :  { %v723_v14 = vpop.f32.mrb[7].mxu0 }
 0x11a   :  { %v532_v15 = vadd.f32 %v721_v10, %v492_v6 }
 0x11c   :  { %v541_v16 = vadd.f32 %v539_v11, %v532_v15  ;;  %v544_v17 = vadd.f32 %v542_v12, %v532_v15 }
 0x11e   :  { %v546_v19 = vrot.slane %v541_v16, 7  ;;  %v551_v20 = vrot.slane %v544_v17, 6 }
 0x120   :  { %v564_v21 = vsel %vm563_vm0, %v551_v20, 0.0  ;;  %v554_v22 = vsel %vm553_vm1, %v537_v7, %v546_v19 }
 0x121   :  { %565 = vadd.xlane.f32.xlu0 %v564_v21  ;;  %v556_v23 = vsel %vm555_vm2, %v554_v22, %v548_v18 }
 0x122   :  { %v558_v24 = vsel %vm557_vm3, %v556_v23, %v551_v20 }
 0x125   :  { %561 = vadd.xlane.f32.xlu0 %v558_v24 }
 0x1ae   :  { %v566_v25 = vpop.xlane.xlu0 %565 }
 0x1af   :  { %v569_v26 = vmul.f32 0.0078125, %v566_v25 }
 0x1b1   :  { %v571_v29 = vsub.f32 %v551_v20, %v569_v26 }
 0x1b2   :  { %v562_v27 = vpop.xlane.xlu0 %561 }
 0x1b3   :  { %v568_v28 = vmul.f32 0.0078125, %v562_v27  ;;  %v573_v32 = vmul.f32 %v571_v29, %v571_v29 }
 0x1b5   :  { %v570_v30 = vsub.f32 %v558_v24, %v568_v28  ;;  %v576_v33 = vsel %vm563_vm0, %v573_v32, 0.0 }
 0x1b7   :  { %v572_v31 = vmul.f32 %v570_v30, %v570_v30 }
 0x1b9   :  { %574 = vadd.xlane.f32.xlu1 %v572_v31 }
 0x1bd   :  { %577 = vadd.xlane.f32.xlu1 %v576_v33 }
 0x246   :  { %v575_v34 = vpop.xlane.xlu1 %574 }
 0x247   :  { %v579_v35 = vmul.f32 0.0078125, %v575_v34 }
 0x249   :  { %v581_v36 = vadd.f32 1e-05, %v579_v35 }
 0x24a   :  { %v578_v37 = vpop.xlane.xlu1 %577 }
 0x24b   :  { %773 = vrsqrt.f32 %v581_v36  ;;  %v580_v38 = vmul.f32 0.0078125, %v578_v37 }
 0x24d   :  { %v582_v39 = vadd.f32 1e-05, %v580_v38 }
 0x24f   :  { %775 = vrsqrt.f32 %v582_v39 }
 0x255   :  { %v774_v40 = vpop.eup %773 }
 0x256   :  { %v585_v42 = vmul.f32 %v774_v40, %v570_v30 }
 0x258   :  { %v593_v44 = vmul.f32 %v657_v41, %v585_v42 }
 0x259   :  { %v776_v45 = vpop.eup %775 }
 0x25a   :  { %v601_v46 = vadd.f32 %v658_v43, %v593_v44  ;;  %v586_v47 = vmul.f32 %v776_v45, %v571_v29 }
 0x25c   :  { %603 = vst [vmem:[%s991_s5] sm:$0xff] %v601_v46  ;;  %v594_v48 = vmul.f32 %v657_v41, %v586_v47 }
 0x25e   :  { %v602_v49 = vadd.f32 %v658_v43, %v594_v48 }
 0x260   :  { %604 = vst [vmem:[%s991_s5 + $0x8] sm:$0x3] %v602_v49 }

// kernel: model_forward.5
= control target key start
LH: loop header
LB: loop body
LE: loop exit
PB: predicated region body
PF: predicated region fallthrough
CT: control target
= control target key end

     0   :  { %19 = vsyncpa [#allocation3], 0  ;;  %vm46_vm0 = vcmask 1040384   ;;  %vm50_vm1 = vcmask 1041408   ;;  %s932_s0 = inlined_call_operand.vmem [shape: f32[10,128], index: 0, kind: input, shape index: {}]   ;;  %s933_s1 = inlined_call_operand.vmem [shape: f32[1,128], index: 1, kind: input, shape index: {}]   ;;  %s934_s2 = inlined_call_operand.vmem [shape: f32[1,128], index: 2, kind: input, shape index: {}]   ;;  %s935_s3 = inlined_call_operand.vmem [shape: bf16[128,64], index: 3, kind: input, shape index: {}]   ;;  %s936_s4 = inlined_call_operand.vmem [shape: f32[1,128], index: 4, kind: input, shape index: {}]   ;;  %s937_s5 = inlined_call_operand.vmem [shape: f32[1,128], index: 5, kind: input, shape index: {}]   ;;  %s938_s6 = inlined_call_operand.vmem [shape: f32[1,64], index: 6, kind: input, shape index: {}]   ;;  %s939_s7 = inlined_call_operand.vmem [shape: f32[1,64], index: 7, kind: input, shape index: {}]   ;;  %s940_s8 = inlined_call_operand.vmem [shape: bf16[128,8], index: 8, kind: input, shape index: {}]   ;;  %s941_s9 = inlined_call_operand.vmem [shape: bf16[64,8], index: 9, kind: input, shape index: {}]   ;;  %s942_s10 = inlined_call_operand.hbm [shape: f32[2,8], index: 10, kind: output, shape index: {0}]   ;;  %s943_s11 = inlined_call_operand.hbm [shape: f32[2,8], index: 11, kind: output, shape index: {1}]   ;;  %s944_s12 = inlined_call_operand.hbm [shape: f32[2,128], index: 12, kind: output, shape index: {2}]   ;;  %s945_s13 = inlined_call_operand.vmem [shape: f32[2,64], index: 13, kind: output, shape index: {3}]  }
   0x1   :  { %v42_v0 = vld [vmem:[%s932_s0] sm:$0xff] }
   0x2   :  { %v44_v1 = vrot.slane %v42_v0, 4 }
   0x4   :  { %v47_v2 = vsel %vm46_vm0, %v42_v0, %v44_v1 }
   0x5   :  { %v51_v3 = vsel %vm50_vm1, %v47_v2, 0.0 }
   0x6   :  { %52 = vadd.xlane.f32.xlu0 %v51_v3 }
   0x7   :  { %20 = vsyncpa [#allocation5], 0  ;;  %v599_v4 = vld [vmem:[%s935_s3] sm:$0xff]   ;;  %v695_v5 = vmov 0.0   ;;  %v600_v6 = vld [vmem:[%s935_s3 + $0x8] sm:$0xff]   ;;  %vm696_vm2 = vmmov 0  }
   0x8   :  { %542 = vmatprep.subr.bf16.mxu0 %v695_v5  ;;  %562 = vmatprep.subr.bf16.mxu1 %v695_v5  ;;  %v601_v12 = vld [vmem:[%s935_s3 + $0x10] sm:$0xff]   ;;  %v602_v13 = vld [vmem:[%s935_s3 + $0x18] sm:$0xff]   ;;  %v603_v14 = vld [vmem:[%s935_s3 + $0x20] sm:$0xff]   ;;  %vm185_vm3 = vcmask 517120   ;;  %vm330_vm4 = vcmask 58368   ;;  %vm402_vm5 = vcmask 523264  }
   0x9   :  { %543 = vmatpush3.bf16.msra.mxu0 %v599_v4  ;;  %v604_v15 = vld [vmem:[%s935_s3 + $0x28] sm:$0xff]   ;;  %v605_v16 = vld [vmem:[%s935_s3 + $0x30] sm:$0xff]   ;;  %v606_v17 = vld [vmem:[%s935_s3 + $0x38] sm:$0xff]   ;;  %558 = vmatprep.mubr.msk.bf16.mxu0 %vm696_vm2, %v695_v5  ;;  %s697_s18 = smov [#allocation2]  }
   0xa   :  { %544 = vmatprep.subr.bf16.mxu0 %v695_v5  ;;  %578 = vmatprep.mubr.msk.bf16.mxu1 %vm696_vm2, %v695_v5  ;;  %v607_v18 = vld [vmem:[%s940_s8] sm:$0xff]   ;;  %v608_v19 = vld [vmem:[%s940_s8 + $0x8] sm:$0xff]   ;;  %v609_v20 = vld [vmem:[%s940_s8 + $0x10] sm:$0xff]   ;;  %s453_s19 = sshll.u32 %s697_s18, 4  ;;  %s454_s19 = int_to_ptr.vmem [resolvable:$true] %s453_s19 }
   0xb   :  { %563 = vmatpush3.bf16.msra.mxu1 %v607_v18  ;;  %v610_v21 = vld [vmem:[%s940_s8 + $0x18] sm:$0xff]   ;;  %v611_v22 = vld [vmem:[%s940_s8 + $0x20] sm:$0xff]   ;;  %v612_v23 = vld [vmem:[%s940_s8 + $0x28] sm:$0xff]   ;;  %p630_p1 = scmp.lt.s32.totalorder %s454_s19, %s454_s19 }
   0xc   :  { %564 = vmatprep.subr.bf16.mxu1 %v695_v5  ;;  %v613_v24 = vld [vmem:[%s940_s8 + $0x30] sm:$0xff]   ;;  %v614_v25 = vld [vmem:[%s940_s8 + $0x38] sm:$0xff]   ;;  %v492_v30 = vld [vmem:[%s933_s1] ss:$0 sm:$0xff] }
   0xd   :  { %545 = vmatpush3.bf16.msra.mxu0 %v600_v6  ;;  %v493_v32 = vld [vmem:[%s934_s2] ss:$0 sm:$0xff]  ;;  %v616_v63 = vld [vmem:[%s941_s9 + $0x8] sm:$0xff]   ;;  %v617_v0 = vld [vmem:[%s941_s9 + $0x10] sm:$0xff]  }
   0xe   :  { %546 = vmatprep.subr.bf16.mxu0 %v695_v5  ;;  %v502_v56 = vld [vmem:[%s936_s4] ss:$0 sm:$0xff]  ;;  %v618_v1 = vld [vmem:[%s941_s9 + $0x18] sm:$0xff]  }
   0xf   :  { %565 = vmatpush3.bf16.msra.mxu1 %v608_v19  ;;  %v503_v58 = vld [vmem:[%s937_s5] ss:$0 sm:$0xff] }
  0x10   :  { %566 = vmatprep.subr.bf16.mxu1 %v695_v5  ;;  %v615_v62 = vld [vmem:[%s941_s9] sm:$0xff]  }
  0x11   :  { %547 = vmatpush3.bf16.msra.mxu0 %v601_v12 }
  0x12   :  { %548 = vmatprep.subr.bf16.mxu0 %v695_v5 }
  0x13   :  { %567 = vmatpush3.bf16.msra.mxu1 %v609_v20 }
  0x14   :  { %568 = vmatprep.subr.bf16.mxu1 %v695_v5 }
  0x15   :  { %549 = vmatpush3.bf16.msra.mxu0 %v602_v13 }
  0x16   :  { %550 = vmatprep.subr.bf16.mxu0 %v695_v5 }
  0x17   :  { %569 = vmatpush3.bf16.msra.mxu1 %v610_v21 }
  0x18   :  { %570 = vmatprep.subr.bf16.mxu1 %v695_v5 }
  0x19   :  { %551 = vmatpush3.bf16.msra.mxu0 %v603_v14 }
  0x1a   :  { %552 = vmatprep.subr.bf16.mxu0 %v695_v5 }
  0x1b   :  { %571 = vmatpush3.bf16.msra.mxu1 %v611_v22 }
  0x1c   :  { %572 = vmatprep.subr.bf16.mxu1 %v695_v5 }
  0x1d   :  { %553 = vmatpush3.bf16.msra.mxu0 %v604_v15 }
  0x1e   :  { %554 = vmatprep.subr.bf16.mxu0 %v695_v5 }
  0x1f   :  { %573 = vmatpush3.bf16.msra.mxu1 %v612_v23 }
  0x20   :  { %574 = vmatprep.subr.bf16.mxu1 %v695_v5 }
  0x21   :  { %555 = vmatpush3.bf16.msra.mxu0 %v605_v16 }
  0x22   :  { %556 = vmatprep.subr.bf16.mxu0 %v695_v5 }
  0x23   :  { %575 = vmatpush3.bf16.msra.mxu1 %v613_v24 }
  0x24   :  { %576 = vmatprep.subr.bf16.mxu1 %v695_v5 }
  0x25   :  { %557 = vmatpush3.bf16.msra.mxu0 %v606_v17 }
  0x26   :  { %582 = vmatprep.subr.bf16.mxu0 %v695_v5 }
  0x27   :  { %577 = vmatpush3.bf16.msra.mxu1 %v614_v25 }
  0x93   :  { %v53_v7 = vpop.xlane.xlu0 %52 }
  0x94   :  { %v55_v8 = vmul.f32 0.0078125, %v53_v7 }
  0x96   :  { %v56_v9 = vsub.f32 %v47_v2, %v55_v8 }
  0x98   :  { %v57_v10 = vmul.f32 %v56_v9, %v56_v9 }
  0x9a   :  { %v58_v11 = vsel %vm50_vm1, %v57_v10, 0.0 }
  0x9b   :  { %59 = vadd.xlane.f32.xlu0 %v58_v11 }
 0x128   :  { %v60_v26 = vpop.xlane.xlu0 %59 }
 0x129   :  { %v61_v27 = vmul.f32 0.0078125, %v60_v26  ;;  %v512_v26 = vld [vmem:[%s938_s6] ss:$0 sm:$0xff]  ;;  %s625_s6 = scalar_lea.vmem %s454_s19, 32 }
 0x12a   :  { %p626_p0 = scmp.ne.s32.totalorder %s454_s19, %s625_s6  ;;  %p631_p2 = scmp.lt.s32.totalorder %s625_s6, %s625_s6 }
 0x12b   :  { %v62_v28 = vadd.f32 1e-05, %v61_v27 }
 0x12c   :  { %p632_p3 = por %p631_p2, %p630_p1 }
 0x12d   :  { %619 = vrsqrt.f32 %v62_v28  ;;  %v513_v28 = vld [vmem:[%s939_s7] ss:$0 sm:$0xff] }
 0x12e   :  { %p633_p4 = pnand %p632_p3, %p626_p0 }
 0x137   :  { %v620_v29 = vpop.eup %619 }
 0x138   :  { %v64_v31 = vmul.f32 %v620_v29, %v56_v9 }
 0x13a   :  { %v71_v33 = vmul.f32 %v492_v30, %v64_v31 }
 0x13c   :  { %v78_v34 = vadd.f32 %v493_v32, %v71_v33 }
 0x13e   :  { %v79_v35 = vpack.c.bf16 %v78_v34, %v78_v34  ;;  %184 = vst [vmem:[#allocation6] sm:$0x3] %v78_v34  ;;  %v187_v36 = vsel %vm50_vm1, %v78_v34, 0.0 }
 0x13f   :  { %v188_v37 = vrot.slane %v187_v36, 4 }
 0x140   :  { %559 = vmatmul.mubr.bf16.vlgmr.msra.gmra.mrb[0].mxu0 %v79_v35 }
 0x141   :  { %v189_v38 = vadd.f32 %v188_v37, %v187_v36  ;;  %590 = vmatprep.mubr.msk.bf16.mxu0 %vm696_vm2, %v695_v5  ;;  %583 = vmatpush3.bf16.msra.mxu0 %v615_v62 }
 0x142   :  { %584 = vmatprep.subr.bf16.mxu0 %v695_v5 }
 0x143   :  { %v190_v39 = vrot.slane %v189_v38, 2 }
 0x145   :  { %v191_v40 = vadd.f32 %v190_v39, %v189_v38  ;;  %585 = vmatpush3.bf16.msra.mxu0 %v616_v63 }
 0x146   :  { %586 = vmatprep.subr.bf16.mxu0 %v695_v5 }
 0x147   :  { %v192_v41 = vrot.slane %v191_v40, 1 }
 0x149   :  { %v193_v42 = vadd.f32 %v192_v41, %v191_v40  ;;  %587 = vmatpush3.bf16.msra.mxu0 %v617_v0 }
 0x14a   :  { %588 = vmatprep.subr.bf16.mxu0 %v695_v5 }
 0x14b   :  { %v195_v43 = vmul.f32 0.5, %v193_v42 }
 0x14d   :  { %v196_v44 = vsub.f32 %v78_v34, %v195_v43  ;;  %589 = vmatpush3.bf16.msra.mxu0 %v618_v1 }
 0x14f   :  { %v197_v45 = vmul.f32 %v196_v44, %v196_v44 }
 0x151   :  { %v198_v46 = vsel %vm50_vm1, %v197_v45, 0.0 }
 0x152   :  { %v199_v47 = vrot.slane %v198_v46, 4 }
 0x154   :  { %v200_v48 = vadd.f32 %v199_v47, %v198_v46 }
 0x156   :  { %v201_v49 = vrot.slane %v200_v48, 2 }
 0x158   :  { %v202_v50 = vadd.f32 %v201_v49, %v200_v48 }
 0x15a   :  { %v203_v51 = vrot.slane %v202_v50, 1 }
 0x15c   :  { %v204_v52 = vadd.f32 %v203_v51, %v202_v50 }
 0x15e   :  { %v205_v53 = vmul.f32 0.5, %v204_v52 }
 0x160   :  { %v206_v54 = vadd.f32 1e-05, %v205_v53 }
 0x162   :  { %621 = vrsqrt.f32 %v206_v54 }
 0x16c   :  { %v622_v55 = vpop.eup %621 }
 0x16d   :  { %v208_v57 = vmul.f32 %v622_v55, %v196_v44 }
 0x16f   :  { %v216_v59 = vmul.f32 %v502_v56, %v208_v57 }
 0x171   :  { %v224_v60 = vadd.f32 %v503_v58, %v216_v59 }
 0x173   :  { %v225_v61 = vpack.c.bf16 %v224_v60, %v224_v60 }
 0x175   :  { %579 = vmatmul.mubr.bf16.vlgmr.msra.gmra.mrb[0].mxu1 %v225_v61 }
 0x213   :  { %v178_v2 = vpop.f32.mrb[0].mxu0 }
 0x214   :  { %186 = vst.msk [vmem:[%s945_s13] sm:$0x3] %vm185_vm3, %v178_v2  ;;  %v332_v3 = vsel %vm185_vm3, %v178_v2, 0.0  ;;  %v560_v4 = vpop.f32.mrb[1].mxu0 }
 0x215   :  { %v333_v6 = vrot.slane %v332_v3, 4  ;;  %v181_v7 = vpop.f32.mrb[2].mxu0 }
 0x216   :  { %v561_v8 = vpop.f32.mrb[3].mxu0 }
 0x217   :  { %v334_v9 = vadd.f32 %v333_v6, %v332_v3 }
 0x219   :  { %v335_v5 = vrot.slane %v334_v9, 2 }
 0x21b   :  { %v336_v10 = vadd.f32 %v335_v5, %v334_v9 }
 0x21d   :  { %v337_v11 = vrot.slane %v336_v10, 1 }
 0x21f   :  { %v338_v12 = vadd.f32 %v337_v11, %v336_v10 }
 0x221   :  { %v339_v13 = vmul.f32 0.5, %v338_v12 }
 0x223   :  { %v340_v14 = vsub.f32 %v178_v2, %v339_v13 }
 0x225   :  { %v341_v15 = vmul.f32 %v340_v14, %v340_v14 }
 0x227   :  { %v342_v16 = vsel %vm185_vm3, %v341_v15, 0.0 }
 0x228   :  { %v343_v17 = vrot.slane %v342_v16, 4 }
 0x22a   :  { %v344_v18 = vadd.f32 %v343_v17, %v342_v16 }
 0x22c   :  { %v345_v19 = vrot.slane %v344_v18, 2 }
 0x22e   :  { %v346_v20 = vadd.f32 %v345_v19, %v344_v18 }
 0x230   :  { %v347_v21 = vrot.slane %v346_v20, 1 }
 0x232   :  { %v348_v22 = vadd.f32 %v347_v21, %v346_v20 }
 0x234   :  { %v349_v23 = vmul.f32 0.5, %v348_v22 }
 0x236   :  { %v350_v24 = vadd.f32 1e-05, %v349_v23 }
 0x238   :  { %623 = vrsqrt.f32 %v350_v24 }
 0x242   :  { %v624_v25 = vpop.eup %623 }
 0x243   :  { %v352_v27 = vmul.f32 %v624_v25, %v340_v14 }
 0x245   :  { %v360_v29 = vmul.f32 %v512_v26, %v352_v27 }
 0x247   :  { %v368_v30 = vadd.f32 %v513_v28, %v360_v29 }
 0x248   :  { %v324_v31 = vpop.f32.mrb[0].mxu1 }
 0x249   :  { %v369_v32 = vpack.c.bf16 %v368_v30, %v368_v30  ;;  %v580_v33 = vpop.f32.mrb[1].mxu1  ;;  %331 = vst.msk [vmem:[#allocation2] sm:$0x3] %vm330_vm4, %v324_v31 }
 0x24a   :  { %v327_v34 = vpop.f32.mrb[2].mxu1 }
 0x24b   :  { %v581_v35 = vpop.f32.mrb[3].mxu1  ;;  %591 = vmatmul.mubr.msk.bf16.vlgmr.msra.gmra.mrb[4].mxu0 %vm402_vm5, %v369_v32 }
 0x24c   :  { %636 = shalt.err (!%p633_p4)
}
 0x24d   :  { %s637_s21 = scalar_lea.hbm %s942_s10, 32 }
 0x24e   :  { %p638_p5 = scmp.ne.s32.totalorder %s942_s10, %s637_s21  ;;  %p641_p6 = scmp.lt.u32.totalorder %s637_s21, %s942_s10 }
 0x250   :  { %p643_p7 = pnand %p641_p6, %p638_p5 }
 0x252   :  { %646 = shalt.err (!%p643_p7)
}
 0x253   :  { %456 = dma.vmem_to_hbm [thread:$0]  %s454_s19, 32, %s942_s10, [#allocation3]  }
 0x254   :  { %s698_s8 = smov [#allocation4]   ;;  %s699_s27 = smov [#allocation6]  }
 0x255   :  { %s463_s26 = sshll.u32 %s698_s8, 4  ;;  %s473_s28 = sshll.u32 %s699_s27, 4  ;;  %s464_s26 = int_to_ptr.vmem [resolvable:$true] %s463_s26  ;;  %s900_s28 = int_to_ptr.vmem [resolvable:$true] %s473_s28 }
 0x256   :  { %s647_s3 = scalar_lea.vmem %s464_s26, 32  ;;  %p652_p9 = scmp.lt.s32.totalorder %s464_s26, %s464_s26 }
 0x257   :  { %p648_p8 = scmp.ne.s32.totalorder %s464_s26, %s647_s3  ;;  %p653_p10 = scmp.lt.s32.totalorder %s647_s3, %s647_s3 }
 0x259   :  { %p654_p11 = por %p653_p10, %p652_p9 }
 0x25b   :  { %p655_p12 = pnand %p654_p11, %p648_p8 }
 0x31e   :  { %v440_v36 = vpop.f32.mrb[4].mxu0 }
 0x31f   :  { %446 = vst.msk [vmem:[#allocation4] sm:$0x3] %vm330_vm4, %v440_v36  ;;  %v592_v37 = vpop.f32.mrb[5].mxu0 }
 0x320   :  { %v443_v38 = vpop.f32.mrb[6].mxu0 }
 0x321   :  { %658 = shalt.err (!%p655_p12)
}
 0x322   :  { %s659_s4 = scalar_lea.hbm %s943_s11, 32 }
 0x323   :  { %p660_p13 = scmp.ne.s32.totalorder %s943_s11, %s659_s4  ;;  %p663_p0 = scmp.lt.u32.totalorder %s659_s4, %s943_s11 }
 0x325   :  { %p665_p1 = pnand %p663_p0, %p660_p13 }
 0x327   :  { %668 = shalt.err (!%p665_p1)
}
 0x328   :  { %466 = dma.vmem_to_hbm [thread:$0]  %s464_s26, 32, %s943_s11, [#allocation5]   ;;  %v593_v39 = vpop.f32.mrb[7].mxu0 }
 0x329   :  { %s669_s13 = scalar_lea.vmem %s900_s28, 32  ;;  %p674_p3 = scmp.lt.s32.totalorder %s900_s28, %s900_s28 }
 0x32a   :  { %p670_p2 = scmp.ne.s32.totalorder %s900_s28, %s669_s13  ;;  %p675_p4 = scmp.lt.s32.totalorder %s669_s13, %s669_s13 }
 0x32c   :  { %p676_p5 = por %p675_p4, %p674_p3 }
 0x32e   :  { %p677_p6 = pnand %p676_p5, %p670_p2 }
 0x330   :  { %680 = shalt.err (!%p677_p6)
}
 0x331   :  { %s681_s18 = scalar_lea.hbm %s944_s12, 32 }
 0x332   :  { %p682_p7 = scmp.ne.s32.totalorder %s944_s12, %s681_s18  ;;  %p685_p8 = scmp.lt.u32.totalorder %s681_s18, %s944_s12 }
 0x334   :  { %p687_p9 = pnand %p685_p8, %p682_p7 }
 0x336   :  { %690 = shalt.err (!%p687_p9)
}
 0x337   :  { %476 = dma.vmem_to_hbm [thread:$0]  %s900_s28, 32, %s944_s12, [#allocation5]  }
 0x338   :  { %691 = dma.done.wait [#allocation3], 32  }
 0x339   :  { %692 = vsyncadd [#allocation3], 4294967264 }
 0x33a   :  { %693 = dma.done.wait [#allocation5], 64  }
 0x33b   :  { %694 = vsyncadd [#allocation5], 4294967232 }
 0x33c   :  { %490 = vsyncpa [#allocation3], 1 }
 0x33d   :  { %491 = vsyncpa [#allocation5], 1 }

// kernel: model_forward.4
= control target key start
LH: loop header
LB: loop body
LE: loop exit
PB: predicated region body
PF: predicated region fallthrough
CT: control target
= control target key end

     0   :  { %s3579_s25 = smov 0   ;;  %s4048_s0 = inlined_call_operand.vmem [shape: f32[10,128], index: 0, kind: input, shape index: {}]   ;;  %s4049_s1 = inlined_call_operand.vmem [shape: f32[2,1,128], index: 1, kind: input, shape index: {}]   ;;  %s4050_s2 = inlined_call_operand.vmem [shape: f32[2,1,128], index: 2, kind: input, shape index: {}]   ;;  %s4051_s3 = inlined_call_operand.vmem [shape: bf16[2,128,384], index: 3, kind: input, shape index: {}]   ;;  %s4052_s4 = inlined_call_operand.vmem [shape: f32[2,1,384], index: 4, kind: input, shape index: {}]   ;;  %s4053_s5 = inlined_call_operand.vmem [shape: bf16[2,128,128], index: 5, kind: input, shape index: {}]   ;;  %s4054_s6 = inlined_call_operand.vmem [shape: f32[2,1,128], index: 6, kind: input, shape index: {}]   ;;  %s4055_s7 = inlined_call_operand.vmem [shape: f32[2,1,128], index: 7, kind: input, shape index: {}]   ;;  %s4056_s8 = inlined_call_operand.vmem [shape: f32[2,1,128], index: 8, kind: input, shape index: {}]   ;;  %s4057_s9 = inlined_call_operand.vmem [shape: bf16[2,128,512], index: 9, kind: input, shape index: {}]   ;;  %s4058_s10 = inlined_call_operand.vmem [shape: f32[2,1,512], index: 10, kind: input, shape index: {}]   ;;  %s4059_s11 = inlined_call_operand.vmem [shape: bf16[2,512,128], index: 11, kind: input, shape index: {}]   ;;  %s4060_s12 = inlined_call_operand.vmem [shape: f32[2,1,128], index: 12, kind: input, shape index: {}]   ;;  %s4061_s13 = inlined_call_operand.vmem [shape: f32[10,128], index: 13, kind: output, shape index: {}]  }
   0x1   :  { %4064 = sst [smem:[#allocation4_spill]] %s4050_s2 }
   0x2   :  { %4065 = sst [smem:[#allocation5_spill]] %s4051_s3 }
   0x3   :  { %4066 = sst [smem:[#allocation6_spill]] %s4053_s5 }
   0x4   :  { %4067 = sst [smem:[#allocation7_spill]] %s4061_s13 }
   0x5 LB: > { %4068 = sst [smem:[#allocation3_spill]] %s3500_s25  ;;  %s3585_s26 = sadd.s32 4294967295, %s3500_s25   ;;  %s3500_s25 = sphi %s3579_s25, %s23_s25  }
   0x6   : > { %p2901_p0 = scmp.ge.s32.totalorder %s3500_s25, 1  ;;  %p478_p1 = scmp.lt.s32.totalorder %s3500_s25, 3 }
   0x8   : > { %p479_p2 = pnand %p2901_p0, %p478_p1 }
   0x9   : > { %p558_p3 = scmp.lt.s32.totalorder (!%p479_p2), %s3585_s26, 1  ;;  %s4070_s5 = sld [smem:[#allocation6_spill]] (!%p479_p2) }
   0xa   : > { %482 = sbr.rel (%p479_p2) target bundleno = 3073 (0xc01), region = 72  ;;  %s4071_s3 = sld [smem:[#allocation5_spill]] (!%p479_p2) }
   0xb   : > { %p2910_p4 = scmp.ne.s32.totalorder (!%p479_p2), %s3585_s26, 0 }
  0x11   : > { %s3591_s27 = scalar_select %p558_p3, %s3585_s26, 1 }
  0x12   : > { %v609_v0 = vld [vmem:[%s4048_s0] sm:$0xff] (!%p2910_p4)  ;;  %v610_v1 = vld [vmem:[%s4048_s0 + $0x8] sm:$0x3] (!%p2910_p4) }
  0x13   : > { %s3273_s17 = smul.u32 192, %s3591_s27  ;;  %s3040_s18 = sshll.u32 %s3591_s27, 6  ;;  %611 = vst [vmem:[#allocation2] sm:$0xff] (!%p2910_p4), %v609_v0  ;;  %612 = vst [vmem:[#allocation2 + $0x8] sm:$0x3] (!%p2910_p4), %v610_v1 }
  0x14   : > { %s3274_s19 = smul.u32 3, %s3591_s27  ;;  %s3607_s22 = scalar_lea.vmem %s4070_s5, %s3040_s18 }
  0x15   : > { %s3612_s28 = scalar_lea.vmem %s4071_s3, %s3273_s17  ;;  %s583_s20 = scalar_lea.vmem %s4055_s7, %s3591_s27 }
  0x16   : > { %s3621_s16 = scalar_lea.vmem %s4052_s4, %s3274_s19  ;;  %s3041_s23 = sshll.u32 %s3591_s27, 8 }
  0x17   : > { %s3635_s3 = scalar_lea.vmem %s4057_s9, %s3041_s23  ;;  %s2907_s30 = sshll.u32 %s3591_s27, 2 }
  0x18   : > { %s3641_s19 = scalar_lea.vmem %s4058_s10, %s2907_s30  ;;  %s3646_s2 = scalar_lea.vmem %s4059_s11, %s3041_s23 }
  0x19   : > { %s603_s21 = scalar_lea.vmem %s4060_s12, %s3591_s27  ;;  %608 = sbr.rel (%p2910_p4) target bundleno = 32 (0x20), region = 76 }
  0x20 PF: > { %v614_v2 = vld [vmem:[#allocation2 + $0x8] sm:$0x3]  ;;  %vm619_vm0 = vcmask 1041408   ;;  %v613_v4 = vld [vmem:[#allocation2] sm:$0xff]  ;;  %v3502_v7 = vmov 0.0   ;;  %v3503_v34 = vmov 0   ;;  %s4072_s23 = scalar_lea.vmem %s4049_s1, %s3591_s27  ;;  %v694_v57 = vlaneseq  ;;  %s4075_s24 = scalar_lea.vmem %s4054_s6, %s3591_s27 }
  0x21   : > { %v620_v3 = vsel %vm619_vm0, %v614_v2, 0.0  ;;  %v3300_v5 = vld [vmem:[%s3612_s28 + $0x4] ss:$12 sps:$4 sm:$0xff]   ;;  %v3302_v6 = vld [vmem:[%s3612_s28] ss:$12 sps:$4 sm:$0xff]   ;;  %3137 = vmatprep.subr.bf16.mxu1 %v3502_v7  ;;  %869 = vmatprep.mubr.bf16.mxu0 %v3503_v34  ;;  %vm3504_vm1 = vmmov 0  }
  0x22   : > { %621 = vadd.xlane.f32.xlu0 %v620_v3  ;;  %v3303_v8 = vld [vmem:[%s3612_s28 + $0x8] ss:$12 sps:$4 sm:$0xff]   ;;  %837 = vmatprep.subr.bf16.mxu0 %v3300_v5  ;;  %v3306_v19 = vld [vmem:[%s3612_s28 + $0x18] ss:$12 sps:$4 sm:$0xff]   ;;  %v3307_v20 = vld [vmem:[%s3612_s28 + $0x20] ss:$12 sps:$4 sm:$0xff]  }
  0x23   : > { %v3304_v9 = vld [vmem:[%s3612_s28 + $0x1c] ss:$12 sps:$4 sm:$0xff]   ;;  %838 = vmatpush1.bf16.msra.mxu0 %v3302_v6  ;;  %3138 = vmatpush3.bf16.msra.mxu1 %v3303_v8  ;;  %v3308_v21 = vld [vmem:[%s3612_s28 + $0x34] ss:$12 sps:$4 sm:$0xff]   ;;  %v3311_v23 = vld [vmem:[%s3612_s28 + $0x38] ss:$12 sps:$4 sm:$0xff]  }
  0x24   : > { %839 = vmatprep.subr.bf16.mxu0 %v3304_v9  ;;  %3139 = vmatprep.subr.bf16.mxu1 %v3502_v7  ;;  %v3310_v22 = vld [vmem:[%s3612_s28 + $0x30] ss:$12 sps:$4 sm:$0xff]   ;;  %v3312_v24 = vld [vmem:[%s3612_s28 + $0x4c] ss:$12 sps:$4 sm:$0xff]   ;;  %v3314_v25 = vld [vmem:[%s3612_s28 + $0x48] ss:$12 sps:$4 sm:$0xff]  }
  0x25   : > { %v3315_v26 = vld [vmem:[%s3612_s28 + $0x50] ss:$12 sps:$4 sm:$0xff]   ;;  %v3318_v28 = vld [vmem:[%s3612_s28 + $0x60] ss:$12 sps:$4 sm:$0xff]   ;;  %v3319_v29 = vld [vmem:[%s3612_s28 + $0x68] ss:$12 sps:$4 sm:$0xff]   ;;  %3153 = vmatprep.mubr.msk.bf16.mxu1 %vm3504_vm1, %v3502_v7 }
  0x26   : > { %617 = vadd.xlane.f32.xlu0 %v613_v4  ;;  %v3316_v27 = vld [vmem:[%s3612_s28 + $0x64] ss:$12 sps:$4 sm:$0xff]   ;;  %v3320_v30 = vld [vmem:[%s3612_s28 + $0x7c] ss:$12 sps:$4 sm:$0xff]   ;;  %v3323_v32 = vld [vmem:[%s3612_s28 + $0x80] ss:$12 sps:$4 sm:$0xff]  }
  0x27   : > { %840 = vmatpush1.bf16.msra.mxu0 %v3306_v19  ;;  %3140 = vmatpush3.bf16.msra.mxu1 %v3307_v20  ;;  %v3322_v31 = vld [vmem:[%s3612_s28 + $0x78] ss:$12 sps:$4 sm:$0xff]   ;;  %v3324_v33 = vld [vmem:[%s3612_s28 + $0x94] ss:$12 sps:$4 sm:$0xff]   ;;  %v3326_v35 = vld [vmem:[%s3612_s28 + $0x90] ss:$12 sps:$4 sm:$0xff]  }
  0x28   : > { %3141 = vmatprep.subr.bf16.mxu1 %v3502_v7  ;;  %841 = vmatprep.subr.bf16.mxu0 %v3308_v21  ;;  %v3327_v36 = vld [vmem:[%s3612_s28 + $0x98] ss:$12 sps:$4 sm:$0xff]   ;;  %v3330_v38 = vld [vmem:[%s3612_s28 + $0xa8] ss:$12 sps:$4 sm:$0xff]   ;;  %v3331_v39 = vld [vmem:[%s3612_s28 + $0xb0] ss:$12 sps:$4 sm:$0xff]  }
  0x29   : > { %v3328_v37 = vld [vmem:[%s3612_s28 + $0xac] ss:$12 sps:$4 sm:$0xff]   ;;  %v2911_v48 = vld [vmem:[%s4072_s23] ss:$0 sm:$0xff]  ;;  %s4073_s14 = sld [smem:[#allocation4_spill]]  ;;  %v3722_v58 = vshrl.u32 %v694_v57, 7  ;;  %s4076_s23 = scalar_lea.vmem %s4056_s8, %s3591_s27 }
  0x2a   : > { %v692_v60 = vld [vmem:[%s3621_s16] sm:$0x7]  ;;  %vm923_vm2 = vcmask 261120   ;;  %vm989_vm3 = vcmask 1042432   ;;  %vm971_vm4 = vcmask 36864   ;;  %s3506_s16 = smov 96  }
  0x2b   : > { %842 = vmatpush1.bf16.msra.mxu0 %v3310_v22  ;;  %3142 = vmatpush3.bf16.msra.mxu1 %v3311_v23  ;;  %v700_v59 = vsub.s32 1, %v3722_v58  ;;  %v696_v61 = vsub.s32 0, %v3722_v58  ;;  %v704_v62 = vsub.s32 2, %v3722_v58  ;;  %v3505_v22 = vmov 65535   ;;  %s3507_s13 = smov 32   ;;  %s3508_s18 = smov 64  }
  0x2c   : > { %3143 = vmatprep.subr.bf16.mxu1 %v3502_v7  ;;  %843 = vmatprep.subr.bf16.mxu0 %v3312_v24  ;;  %v990_v23 = vsel %vm619_vm0, 4294967295, %v3505_v22  ;;  %vm985_vm5 = vcmask 39936   ;;  %vm1384_vm6 = vcmask 523264   ;;  %vm1386_vm7 = vcmask 785408   ;;  %p3037_p5 = scmp.ne.s32.totalorder %s3585_s26, 1 }
  0x2d   : > { %v701_v63 = vrot.slane %v692_v60, %v700_v59  ;;  %v697_v0 = vrot.slane %v692_v60, %v696_v61  ;;  %v705_v1 = vrot.slane %v692_v60, %v704_v62  ;;  %vm1871_vm8 = vcmask 1044480  }
  0x2f   : > { %844 = vmatpush1.bf16.msra.mxu0 %v3314_v25  ;;  %3144 = vmatpush3.bf16.msra.mxu1 %v3315_v26  ;;  %s4074_s15 = scalar_lea.vmem %s4073_s14, %s3591_s27  ;;  %v3741_v25 = vsel %vm989_vm3, %v990_v23, 0 }
  0x30   : > { %3145 = vmatprep.subr.bf16.mxu1 %v3502_v7  ;;  %845 = vmatprep.subr.bf16.mxu0 %v3316_v27  ;;  %v2912_v52 = vld [vmem:[%s4074_s15] ss:$0 sm:$0xff] }
  0x33   : > { %846 = vmatpush1.bf16.msra.mxu0 %v3318_v28  ;;  %3146 = vmatpush3.bf16.msra.mxu1 %v3319_v29 }
  0x34   : > { %847 = vmatprep.subr.bf16.mxu0 %v3320_v30  ;;  %3147 = vmatprep.subr.bf16.mxu1 %v3502_v7 }
  0x37   : > { %848 = vmatpush1.bf16.msra.mxu0 %v3322_v31  ;;  %3148 = vmatpush3.bf16.msra.mxu1 %v3323_v32 }
  0x38   : > { %849 = vmatprep.subr.bf16.mxu0 %v3324_v33  ;;  %3149 = vmatprep.subr.bf16.mxu1 %v3502_v7 }
  0x3b   : > { %850 = vmatpush1.bf16.msra.mxu0 %v3326_v35  ;;  %3150 = vmatpush3.bf16.msra.mxu1 %v3327_v36 }
  0x3c   : > { %851 = vmatprep.subr.bf16.mxu0 %v3328_v37  ;;  %3151 = vmatprep.subr.bf16.mxu1 %v3502_v7 }
  0x3f   : > { %852 = vmatpush1.bf16.msra.mxu0 %v3330_v38  ;;  %3152 = vmatpush3.bf16.msra.mxu1 %v3331_v39 }
  0x40   : > { %3157 = vmatprep.subr.bf16.mxu1 %v3502_v7  ;;  %3181 = vmatprep.subr.bf16.mxu0 %v3502_v7 }
  0xaf   : > { %v622_v10 = vpop.xlane.xlu0 %621 }
  0xb0   : > { %v625_v11 = vmul.f32 0.0078125, %v622_v10 }
  0xb2   : > { %v3666_v14 = vsub.f32 %v614_v2, %v625_v11 }
  0xb3   : > { %v618_v12 = vpop.xlane.xlu0 %617 }
  0xb4   : > { %v624_v13 = vmul.f32 0.0078125, %v618_v12  ;;  %v629_v17 = vmul.f32 %v3666_v14, %v3666_v14 }
  0xb6   : > { %v3668_v15 = vsub.f32 %v613_v4, %v624_v13  ;;  %v632_v18 = vsel %vm619_vm0, %v629_v17, 0.0 }
  0xb8   : > { %v628_v16 = vmul.f32 %v3668_v15, %v3668_v15 }
  0xba   : > { %630 = vadd.xlane.f32.xlu1 %v628_v16 }
  0xbe   : > { %633 = vadd.xlane.f32.xlu1 %v632_v18 }
 0x147   : > { %v631_v40 = vpop.xlane.xlu1 %630 }
 0x148   : > { %v635_v41 = vmul.f32 0.0078125, %v631_v40 }
 0x14a   : > { %v637_v42 = vadd.f32 1e-05, %v635_v41 }
 0x14b   : > { %v634_v43 = vpop.xlane.xlu1 %633 }
 0x14c   : > { %3420 = vrsqrt.f32 %v637_v42  ;;  %v636_v44 = vmul.f32 0.0078125, %v634_v43 }
 0x14e   : > { %v638_v45 = vadd.f32 1e-05, %v636_v44 }
 0x150   : > { %3422 = vrsqrt.f32 %v638_v45 }
 0x156   : > { %v3421_v46 = vpop.eup %3420 }
 0x157   : > { %v641_v47 = vmul.f32 %v3421_v46, %v3668_v15 }
 0x159   : > { %v649_v51 = vmul.f32 %v2911_v48, %v641_v47 }
 0x15a   : > { %v3423_v49 = vpop.eup %3422 }
 0x15b   : > { %v642_v50 = vmul.f32 %v3423_v49, %v3666_v14  ;;  %v657_v54 = vadd.f32 %v2912_v52, %v649_v51 }
 0x15d   : > { %v650_v53 = vmul.f32 %v2911_v48, %v642_v50 }
 0x15f   : > { %v658_v55 = vadd.f32 %v2912_v52, %v650_v53 }
 0x161   : > { %v659_v56 = vpack.c.bf16 %v658_v55, %v657_v54 }
 0x163   : > { %870 = vmatmul.mubr.bf16.vlgmr.msra.gmra.mrb[0].mxu0 %v659_v56  ;;  %3154 = vmatmul.mubr.bf16.vlgmr.msra.gmra.mrb[0].mxu1 %v659_v56 }
 0x164   : > { %3159 = vmatprep.mubr.msk.bf16.mxu1 %vm3504_vm1, %v3502_v7  ;;  %3183 = vmatprep.mubr.msk.bf16.mxu0 %vm3504_vm1, %v3502_v7 }
 0x236   : > { %v871_v2 = vpop.f32.mrb[0].mxu0  ;;  %v914_v3 = vpop.f32.mrb[0].mxu1 }
 0x237   : > { %v873_v4 = vpop.f32.mrb[1].mxu0  ;;  %v3155_v5 = vpop.f32.mrb[1].mxu1  ;;  %v872_v10 = vadd.f32 %v871_v2, %v697_v0  ;;  %v915_v11 = vadd.f32 %v914_v3, %v705_v1 }
 0x238   : > { %v874_v6 = vadd.f32 %v873_v4, %v701_v63  ;;  %v875_v8 = vpop.f32.mrb[2].mxu0  ;;  %v917_v9 = vpop.f32.mrb[2].mxu1 }
 0x239   : > { %v876_v12 = vadd.f32 %v875_v8, %v697_v0  ;;  %v918_v13 = vadd.f32 %v917_v9, %v705_v1  ;;  %v877_v14 = vpop.f32.mrb[3].mxu0  ;;  %v3156_v15 = vpop.f32.mrb[3].mxu1  ;;  %v3739_v24 = vpack.c.bf16 %v915_v11, %v915_v11  ;;  %v921_v26 = vpack.c.bf16 %v872_v10, %v872_v10 }
 0x23a   : > { %v922_v16 = vpack.c.bf16 %v874_v6, %v874_v6  ;;  %v878_v17 = vadd.f32 %v877_v14, %v701_v63 }
 0x23b   : > { %v1388_v18 = vpack.c.bf16 %v876_v12, %v872_v10  ;;  %v3734_v19 = vpack.c.bf16 %v918_v13, %v915_v11  ;;  %v993_v27 = vand.u32 %v3741_v25, %v3739_v24 }
 0x23c   : > { %v1389_v20 = vpack.c.bf16 %v878_v17, %v874_v6  ;;  %v928_v21 = vsel %vm923_vm2, %v922_v16, 0 }
 0x23d   : > { %3158 = vmatpush3.bf16.xpose.msra.mxu1 %v928_v21  ;;  %v1391_v45 = vshrl.u32 %v1388_v18, 16  ;;  %v1394_v46 = vshll.u32 %v1388_v18, 16 }
 0x23e   : > { %3163 = vmatprep.subr.bf16.mxu1 %v3502_v7  ;;  %v1399_v35 = vshrl.u32 %v1389_v20, 16  ;;  %v1402_v36 = vshll.u32 %v1389_v20, 16 }
 0x23f   : > { %v1393_v47 = vrot.slane %v1391_v45, 2  ;;  %v1396_v48 = vrot.slane %v1394_v46, 3 }
 0x240   : > { %v1401_v37 = vrot.slane %v1399_v35, 2  ;;  %v1404_v38 = vrot.slane %v1402_v36, 3 }
 0x241   : > { %v1397_v49 = vor.u32 %v1396_v48, %v1393_v47 }
 0x242   : > { %v1405_v39 = vor.u32 %v1404_v38, %v1401_v37 }
 0x244   : > { %3160 = vmatmul.mubr.msk.bf16.vlgmr.msra.gmra.mrb[4].mxu1 %vm923_vm2, %v921_v26  ;;  %v1410_v3 = vsel %vm923_vm2, %v1405_v39, 0 }
 0x245   : > { %3164 = vmatpush3.bf16.msra.mxu1 %v993_v27  ;;  %3165 = vmatprep.mubr.msk.bf16.mxu1 %vm3504_vm1, %v3502_v7 }
 0x246   : > { %3169 = vmatprep.subr.bf16.mxu1 %v3502_v7 }
 0x317   : > { %v964_v28 = vpop.f32.mrb[4].mxu1 }
 0x318   : > { %v970_v29 = vmul.f32 0.17677669, %v964_v28  ;;  %v3161_v30 = vpop.f32.mrb[5].mxu1 }
 0x319   : > { %v967_v31 = vpop.f32.mrb[6].mxu1 }
 0x31a   : > { %v3162_v32 = vpop.f32.mrb[7].mxu1  ;;  %v972_v33 = vsel %vm971_vm4, %v970_v29, -inf }
 0x31b   : > { %973 = vmax.xlane.f32.xlu0 %v972_v33 }
 0x331   : > { %1039 = vrot.lane.b32.xlu0 %v922_v16, %s3506_s16 }
 0x335   : > { %1262 = vrot.lane.b32.xlu0 %v922_v16, %s3507_s13 }
 0x339   : > { %1522 = vrot.lane.b32.xlu0 %v1405_v39, %s3506_s16 }
 0x33d   : > { %1633 = vrot.lane.b32.xlu0 %v1405_v39, %s3508_s18 }
 0x341   : > { %1744 = vrot.lane.b32.xlu0 %v1405_v39, %s3507_s13 }
 0x3a8   : > { %v974_v40 = vpop.xlane.xlu0 %973 }
 0x3a9   : > { %v975_v41 = vsub.f32 %v970_v29, %v974_v40 }
 0x3ab   : > { %v976_v42 = vmul.f32 1.442695, %v975_v41 }
 0x3ac   : > { %v1040_v52 = vpop.permute.xlu0 %1039 }
 0x3ad   : > { %3424 = vpow2.f32 %v976_v42  ;;  %v1045_v63 = vsel %vm923_vm2, %v1040_v52, 0 }
 0x3b0   : > { %v1263_v57 = vpop.permute.xlu0 %1262 }
 0x3b1   : > { %v1268_v1 = vsel %vm923_vm2, %v1263_v57, 0 }
 0x3b4   : > { %v1523_v4 = vpop.permute.xlu0 %1522 }
 0x3b5   : > { %v1528_v5 = vsel %vm923_vm2, %v1523_v4, 0 }
 0x3b7   : > { %v3425_v43 = vpop.eup %3424 }
 0x3b8   : > { %v978_v44 = vsel %vm971_vm4, %v3425_v43, 0.0  ;;  %v1634_v6 = vpop.permute.xlu0 %1633 }
 0x3b9   : > { %979 = vadd.xlane.f32.xlu1 %v978_v44  ;;  %v1639_v9 = vsel %vm923_vm2, %v1634_v6, 0 }
 0x3bc   : > { %v1745_v10 = vpop.permute.xlu0 %1744 }
 0x3bd   : > { %v1750_v12 = vsel %vm923_vm2, %v1745_v10, 0 }
 0x3ca   : > { %1036 = vrot.lane.b32.xlu1 %v921_v26, %s3506_s16 }
 0x3ce   : > { %1151 = vrot.lane.b32.xlu1 %v922_v16, %s3508_s18 }
 0x3d2   : > { %1149 = vrot.lane.b32.xlu1 %v921_v26, %s3508_s18 }
 0x3d6   : > { %1260 = vrot.lane.b32.xlu1 %v921_v26, %s3507_s13 }
 0x3da   : > { %1520 = vrot.lane.b32.xlu1 %v1397_v49, %s3506_s16 }
 0x3de   : > { %1631 = vrot.lane.b32.xlu1 %v1397_v49, %s3508_s18 }
 0x3e2   : > { %1742 = vrot.lane.b32.xlu1 %v1397_v49, %s3507_s13 }
 0x446   : > { %v980_v50 = vpop.xlane.xlu1 %979 }
 0x447   : > { %3426 = vrcp.f32 %v980_v50 }
 0x44a   : > { %v1037_v51 = vpop.permute.xlu1 %1036 }
 0x44e   : > { %v1152_v53 = vpop.permute.xlu1 %1151 }
 0x44f   : > { %v1157_v54 = vsel %vm923_vm2, %v1152_v53, 0 }
 0x450   : > { %3182 = vmatpush3.bf16.xpose.msra.mxu0 %v1157_v54 }
 0x451   : > { %v3427_v55 = vpop.eup %3426  ;;  %3193 = vmatprep.subr.bf16.mxu0 %v3502_v7 }
 0x452   : > { %v982_v56 = vmul.f32 %v3427_v55, %v3425_v43  ;;  %v1150_v0 = vpop.permute.xlu1 %1149 }
 0x454   : > { %v983_v60 = vpack.c.bf16 %v982_v56, %v982_v56 }
 0x456   : > { %3166 = vmatmul.mubr.msk.bf16.vlgmr.msra.gmra.mrb[8].mxu1 %vm985_vm5, %v983_v60  ;;  %v1261_v2 = vpop.permute.xlu1 %1260 }
 0x457   : > { %3170 = vmatpush3.bf16.xpose.msra.mxu1 %v1045_v63  ;;  %3184 = vmatmul.mubr.msk.bf16.vlgmr.msra.gmra.mrb[4].mxu0 %vm923_vm2, %v1150_v0 }
 0x458   : > { %3194 = vmatpush3.bf16.xpose.msra.mxu0 %v1268_v1  ;;  %3171 = vmatprep.mubr.msk.bf16.mxu1 %vm3504_vm1, %v3502_v7 }
 0x459   : > { %3195 = vmatprep.mubr.msk.bf16.mxu0 %vm3504_vm1, %v3502_v7  ;;  %3205 = vmatprep.subr.bf16.mxu0 %v3502_v7 }
 0x45a   : > { %3175 = vmatprep.subr.bf16.mxu1 %v3502_v7  ;;  %v1521_v8 = vpop.permute.xlu1 %1520 }
 0x45e   : > { %3172 = vmatmul.mubr.msk.bf16.vlgmr.msra.gmra.mrb[12].mxu1 %vm923_vm2, %v1037_v51  ;;  %v1632_v11 = vpop.permute.xlu1 %1631 }
 0x45f   : > { %3196 = vmatmul.mubr.msk.bf16.vlgmr.msra.gmra.mrb[8].mxu0 %vm923_vm2, %v1261_v2  ;;  %3177 = vmatprep.mubr.msk.bf16.mxu1 %vm3504_vm1, %v3502_v7 }
 0x460   : > { %3206 = vmatpush3.bf16.xpose.msra.mxu0 %v1410_v3  ;;  %3207 = vmatprep.mubr.msk.bf16.mxu0 %vm3504_vm1, %v3502_v7 }
 0x461   : > { %3217 = vmatprep.subr.bf16.mxu0 %v3502_v7 }
 0x462   : > { %v1743_v13 = vpop.permute.xlu1 %1742 }
 0x467   : > { %3208 = vmatmul.mubr.msk.bf16.vlgmr.msra.gmra.mrb[12].mxu0 %vm923_vm2, %v1397_v49 }
 0x468   : > { %3218 = vmatpush3.bf16.xpose.msra.mxu0 %v1528_v5  ;;  %3219 = vmatprep.mubr.msk.bf16.mxu0 %vm3504_vm1, %v3502_v7 }
 0x469   : > { %3229 = vmatprep.subr.bf16.mxu0 %v3502_v7 }
 0x46f   : > { %3220 = vmatmul.mubr.msk.bf16.vlgmr.msra.gmra.mrb[16].mxu0 %vm923_vm2, %v1521_v8 }
 0x470   : > { %3230 = vmatpush3.bf16.xpose.msra.mxu0 %v1639_v9  ;;  %3231 = vmatprep.mubr.msk.bf16.mxu0 %vm3504_vm1, %v3502_v7 }
 0x471   : > { %3241 = vmatprep.subr.bf16.mxu0 %v3502_v7 }
 0x477   : > { %3232 = vmatmul.mubr.msk.bf16.vlgmr.msra.gmra.mrb[20].mxu0 %vm923_vm2, %v1632_v11 }
 0x478   : > { %3242 = vmatpush3.bf16.xpose.msra.mxu0 %v1750_v12  ;;  %3243 = vmatprep.mubr.msk.bf16.mxu0 %vm3504_vm1, %v3502_v7 }
 0x479   : > { %3253 = vmatprep.subr.bf16.mxu0 %v3502_v7 }
 0x47f   : > { %3244 = vmatmul.mubr.msk.bf16.vlgmr.msra.gmra.mrb[24].mxu0 %vm923_vm2, %v1743_v13 }
 0x480   : > { %3269 = vmatprep.mubr.msk.bf16.mxu0 %vm3504_vm1, %v3502_v7 }
 0x529   : > { %v3801_v14 = vpop.f32.mrb[8].mxu1 }
 0x52a   : > { %v3167_v15 = vpop.f32.mrb[9].mxu1  ;;  %v1193_v16 = vpop.f32.mrb[4].mxu0 }
 0x52b   : > { %v1199_v17 = vmul.f32 0.17677669, %v1193_v16  ;;  %v1032_v18 = vpop.f32.mrb[10].mxu1  ;;  %v3185_v20 = vpop.f32.mrb[5].mxu0 }
 0x52c   : > { %v3168_v21 = vpop.f32.mrb[11].mxu1  ;;  %v1196_v22 = vpop.f32.mrb[6].mxu0 }
 0x52d   : > { %v3186_v23 = vpop.f32.mrb[7].mxu0  ;;  %v1200_v26 = vsel %vm971_vm4, %v1199_v17, -inf }
 0x52e   : > { %1201 = vmax.xlane.f32.xlu1 %v1200_v26 }
 0x531   : > { %v1081_v27 = vpop.f32.mrb[12].mxu1 }
 0x532   : > { %v1087_v28 = vmul.f32 0.17677669, %v1081_v27  ;;  %v3173_v29 = vpop.f32.mrb[13].mxu1  ;;  %v1304_v30 = vpop.f32.mrb[8].mxu0 }
 0x533   : > { %v1084_v31 = vpop.f32.mrb[14].mxu1  ;;  %v3197_v32 = vpop.f32.mrb[9].mxu0  ;;  %v1310_v33 = vmul.f32 0.17677669, %v1304_v30 }
 0x534   : > { %v3174_v35 = vpop.f32.mrb[15].mxu1  ;;  %v1307_v36 = vpop.f32.mrb[10].mxu0  ;;  %v1088_v37 = vsel %vm971_vm4, %v1087_v28, -inf }
 0x535   : > { %v3198_v38 = vpop.f32.mrb[11].mxu0  ;;  %1089 = vmax.xlane.f32.xlu0 %v1088_v37  ;;  %v1311_v39 = vsel %vm971_vm4, %v1310_v33, -inf }
 0x539   : > { %1312 = vmax.xlane.f32.xlu0 %v1311_v39 }
 0x53a   : > { %v1446_v40 = vpop.f32.mrb[12].mxu0 }
 0x53b   : > { %v1452_v41 = vmul.f32 0.17677669, %v1446_v40  ;;  %v3209_v42 = vpop.f32.mrb[13].mxu0 }
 0x53c   : > { %v1449_v43 = vpop.f32.mrb[14].mxu0 }
 0x53d   : > { %v3210_v44 = vpop.f32.mrb[15].mxu0  ;;  %v1453_v45 = vsel %vm971_vm4, %v1452_v41, -inf }
 0x53e   : > { %1454 = vmax.xlane.f32.xlu0 %v1453_v45  ;;  %v1467_v44 = vshrl.u32 %v3734_v19, 16  ;;  %v1470_v45 = vshll.u32 %v3734_v19, 16 }
 0x542   : > { %v1564_v46 = vpop.f32.mrb[16].mxu0 }
 0x543   : > { %v1570_v47 = vmul.f32 0.17677669, %v1564_v46  ;;  %v3221_v48 = vpop.f32.mrb[17].mxu0  ;;  %v1469_v46 = vrot.slane %v1467_v44, 2 }
 0x544   : > { %v1567_v49 = vpop.f32.mrb[18].mxu0 }
 0x545   : > { %v3222_v50 = vpop.f32.mrb[19].mxu0  ;;  %v1571_v51 = vsel %vm971_vm4, %v1570_v47, -inf }
 0x546   : > { %1572 = vmax.xlane.f32.xlu0 %v1571_v51 }
 0x54a   : > { %v1675_v52 = vpop.f32.mrb[20].mxu0 }
 0x54b   : > { %v1681_v53 = vmul.f32 0.17677669, %v1675_v52  ;;  %v3233_v54 = vpop.f32.mrb[21].mxu0 }
 0x54c   : > { %v1678_v55 = vpop.f32.mrb[22].mxu0 }
 0x54d   : > { %v3234_v56 = vpop.f32.mrb[23].mxu0  ;;  %v1682_v57 = vsel %vm971_vm4, %v1681_v53, -inf }
 0x54e   : > { %1683 = vmax.xlane.f32.xlu1 %v1682_v57 }
 0x552   : > { %v1786_v60 = vpop.f32.mrb[24].mxu0 }
 0x553   : > { %v1792_v63 = vmul.f32 0.17677669, %v1786_v60  ;;  %v3245_v0 = vpop.f32.mrb[25].mxu0 }
 0x554   : > { %v1789_v1 = vpop.f32.mrb[26].mxu0 }
 0x555   : > { %v3246_v2 = vpop.f32.mrb[27].mxu0  ;;  %v1793_v3 = vsel %vm971_vm4, %v1792_v63, -inf }
 0x556   : > { %1794 = vmax.xlane.f32.xlu0 %v1793_v3 }
 0x5bb   : > { %v1202_v4 = vpop.xlane.xlu1 %1201 }
 0x5bc   : > { %v1203_v5 = vsub.f32 %v1199_v17, %v1202_v4 }
 0x5be   : > { %v1204_v6 = vmul.f32 1.442695, %v1203_v5 }
 0x5c0   : > { %3428 = vpow2.f32 %v1204_v6 }
 0x5c2   : > { %v1090_v8 = vpop.xlane.xlu0 %1089 }
 0x5c3   : > { %v1091_v13 = vsub.f32 %v1087_v28, %v1090_v8 }
 0x5c5   : > { %v1092_v20 = vmul.f32 1.442695, %v1091_v13 }
 0x5c6   : > { %v1313_v9 = vpop.xlane.xlu0 %1312 }
 0x5c7   : > { %v1314_v10 = vsub.f32 %v1310_v33, %v1313_v9 }
 0x5c9   : > { %v1315_v11 = vmul.f32 1.442695, %v1314_v10 }
 0x5ca   : > { %v3810_v12 = vpop.eup %3428 }
 0x5cb   : > { %3430 = vpow2.f32 %v1315_v11  ;;  %v1455_v15 = vpop.xlane.xlu0 %1454  ;;  %v1206_v16 = vsel %vm971_vm4, %v3810_v12, 0.0 }
 0x5cc   : > { %v1456_v18 = vsub.f32 %v1452_v41, %v1455_v15  ;;  %1207 = vadd.xlane.f32.xlu0 %v1206_v16 }
 0x5ce   : > { %v1457_v21 = vmul.f32 1.442695, %v1456_v18 }
 0x5d0   : > { %3432 = vpow2.f32 %v1457_v21 }
 0x5d1   : > { %3434 = vpow2.f32 %v1092_v20 }
 0x5d3   : > { %v1573_v29 = vpop.xlane.xlu0 %1572 }
 0x5d4   : > { %v1574_v37 = vsub.f32 %v1570_v47, %v1573_v29  ;;  %v1472_v47 = vrot.slane %v1470_v45, 3 }
 0x5d5   : > { %v3814_v17 = vpop.eup %3430 }
 0x5d6   : > { %v1317_v22 = vsel %vm971_vm4, %v3814_v17, 0.0  ;;  %v1575_v39 = vmul.f32 1.442695, %v1574_v37  ;;  %v1473_v48 = vor.u32 %v1472_v47, %v1469_v46 }
 0x5d7   : > { %1318 = vadd.xlane.f32.xlu1 %v1317_v22 }
 0x5d8   : > { %v1478_v9 = vand.u32 %v1473_v48, %v3741_v25 }
 0x5da   : > { %v3818_v23 = vpop.eup %3432 }
 0x5db   : > { %v1459_v26 = vsel %vm971_vm4, %v3818_v23, 0.0  ;;  %v3435_v27 = vpop.eup %3434  ;;  %v1684_v30 = vpop.xlane.xlu1 %1683 }
 0x5dc   : > { %1460 = vadd.xlane.f32.xlu1 %v1459_v26  ;;  %v1094_v28 = vsel %vm971_vm4, %v3435_v27, 0.0  ;;  %v1685_v31 = vsub.f32 %v1681_v53, %v1684_v30 }
 0x5de   : > { %v1686_v33 = vmul.f32 1.442695, %v1685_v31 }
 0x5e0   : > { %1095 = vadd.xlane.f32.xlu1 %v1094_v28  ;;  %3436 = vpow2.f32 %v1686_v33 }
 0x5e2   : > { %1101 = vrot.lane.b32.xlu0 %v3739_v24, %s3506_s16 }
 0x5e3   : > { %v1795_v32 = vpop.xlane.xlu0 %1794 }
 0x5e4   : > { %v1796_v35 = vsub.f32 %v1792_v63, %v1795_v32 }
 0x5e6   : > { %1323 = vrot.lane.b32.xlu0 %v3739_v24, %s3507_s13  ;;  %v1797_v36 = vmul.f32 1.442695, %v1796_v35  ;;  %v3332_v35 = vld [vmem:[%s3607_s22] sm:$0xff]  }
 0x5e7   : > { %3254 = vmatpush3.bf16.msra.mxu0 %v3332_v35 }
 0x5e8   : > { %3438 = vpow2.f32 %v1797_v36  ;;  %v3333_v36 = vld [vmem:[%s3607_s22 + $0x8] sm:$0xff]   ;;  %3255 = vmatprep.subr.bf16.mxu0 %v3502_v7 }
 0x5e9   : > { %3440 = vpow2.f32 %v1575_v39 }
 0x5ea   : > { %v3829_v38 = vpop.eup %3436 }
 0x5eb   : > { %v1688_v40 = vsel %vm971_vm4, %v3829_v38, 0.0  ;;  %3256 = vmatpush3.bf16.msra.mxu0 %v3333_v36 }
 0x5ec   : > { %3257 = vmatprep.subr.bf16.mxu0 %v3502_v7 }
 0x5f1   : > { %1212 = vrot.lane.b32.xlu1 %v3739_v24, %s3508_s18 }
 0x5f2   : > { %v3833_v41 = vpop.eup %3438 }
 0x5f3   : > { %v1799_v42 = vsel %vm971_vm4, %v3833_v41, 0.0  ;;  %v3837_v24 = vpop.eup %3440 }
 0x5f4   : > { %v1577_v43 = vsel %vm971_vm4, %v3837_v24, 0.0 }
 0x605   : > { %1689 = vadd.xlane.f32.xlu0 %v1688_v40 }
 0x609   : > { %1800 = vadd.xlane.f32.xlu0 %v1799_v42 }
 0x615   : > { %1578 = vadd.xlane.f32.xlu1 %v1577_v43 }
 0x61f   : > { %1694 = vrot.lane.b32.xlu0 %v1473_v48, %s3508_s18 }
 0x626   : > { %1583 = vrot.lane.b32.xlu1 %v1473_v48, %s3506_s16 }
 0x62a   : > { %1805 = vrot.lane.b32.xlu1 %v1473_v48, %s3507_s13 }
 0x659   : > { %v1208_v49 = vpop.xlane.xlu0 %1207 }
 0x65d   : > { %v1102_v50 = vpop.permute.xlu0 %1101 }
 0x65e   : > { %v1107_v51 = vand.u32 %v1102_v50, %v3741_v25 }
 0x660   : > { %3176 = vmatpush3.bf16.msra.mxu1 %v1107_v51 }
 0x661   : > { %3187 = vmatprep.subr.bf16.mxu1 %v3502_v7  ;;  %v1324_v1 = vpop.permute.xlu0 %1323 }
 0x662   : > { %v1329_v4 = vand.u32 %v1324_v1, %v3741_v25 }
 0x664   : > { %v1319_v52 = vpop.xlane.xlu1 %1318 }
 0x669   : > { %v1461_v53 = vpop.xlane.xlu1 %1460 }
 0x66d   : > { %v1096_v19 = vpop.xlane.xlu1 %1095 }
 0x66e   : > { %3442 = vrcp.f32 %v1096_v19  ;;  %v3337_v19 = vld [vmem:[%s3607_s22 + $0x28] sm:$0xff]  }
 0x66f   : > { %3444 = vrcp.f32 %v1208_v49 }
 0x670   : > { %3446 = vrcp.f32 %v1319_v52  ;;  %v3335_v52 = vld [vmem:[%s3607_s22 + $0x18] sm:$0xff]  }
 0x671   : > { %v1213_v56 = vpop.permute.xlu1 %1212  ;;  %3448 = vrcp.f32 %v1461_v53  ;;  %v3336_v53 = vld [vmem:[%s3607_s22 + $0x20] sm:$0xff]  }
 0x672   : > { %v1218_v63 = vand.u32 %v1213_v56, %v3741_v25 }
 0x678   : > { %v3443_v54 = vpop.eup %3442 }
 0x679   : > { %v1098_v55 = vmul.f32 %v3443_v54, %v3435_v27  ;;  %v3445_v60 = vpop.eup %3444 }
 0x67a   : > { %v1210_v0 = vmul.f32 %v3445_v60, %v3810_v12  ;;  %v3447_v3 = vpop.eup %3446  ;;  %v3338_v60 = vld [vmem:[%s3607_s22 + $0x30] sm:$0xff]  }
 0x67b   : > { %v1099_v57 = vpack.c.bf16 %v1098_v55, %v1098_v55  ;;  %v1321_v5 = vmul.f32 %v3447_v3, %v3814_v17  ;;  %v3449_v8 = vpop.eup %3448 }
 0x67c   : > { %v1211_v2 = vpack.c.bf16 %v1210_v0, %v1210_v0  ;;  %v1463_v10 = vmul.f32 %v3449_v8, %v3818_v23  ;;  %v3339_v0 = vld [vmem:[%s3607_s22 + $0x38] sm:$0xff]  }
 0x67d   : > { %3178 = vmatmul.mubr.msk.bf16.vlgmr.msra.gmra.mrb[16].mxu1 %vm985_vm5, %v1099_v57  ;;  %v1322_v6 = vpack.c.bf16 %v1321_v5, %v1321_v5 }
 0x67e   : > { %3188 = vmatpush3.bf16.msra.mxu1 %v1218_v63  ;;  %3189 = vmatprep.mubr.msk.bf16.mxu1 %vm3504_vm1, %v3502_v7  ;;  %v1464_v11 = vpack.c.bf16 %v1463_v10, %v1463_v10 }
 0x67f   : > { %3199 = vmatprep.subr.bf16.mxu1 %v3502_v7 }
 0x685   : > { %3190 = vmatmul.mubr.msk.bf16.vlgmr.msra.gmra.mrb[20].mxu1 %vm985_vm5, %v1211_v2 }
 0x686   : > { %3200 = vmatpush3.bf16.msra.mxu1 %v1329_v4  ;;  %3201 = vmatprep.mubr.msk.bf16.mxu1 %vm3504_vm1, %v3502_v7 }
 0x687   : > { %3211 = vmatprep.subr.bf16.mxu1 %v3502_v7 }
 0x68d   : > { %3202 = vmatmul.mubr.msk.bf16.vlgmr.msra.gmra.mrb[24].mxu1 %vm985_vm5, %v1322_v6 }
 0x68e   : > { %3212 = vmatpush3.bf16.msra.mxu1 %v1478_v9  ;;  %3213 = vmatprep.mubr.msk.bf16.mxu1 %vm3504_vm1, %v3502_v7 }
 0x68f   : > { %3223 = vmatprep.subr.bf16.mxu1 %v3502_v7 }
 0x692   : > { %v1690_v12 = vpop.xlane.xlu0 %1689 }
 0x695   : > { %3214 = vmatmul.mubr.msk.bf16.vlgmr.msra.gmra.mrb[28].mxu1 %vm985_vm5, %v1464_v11 }
 0x696   : > { %3225 = vmatprep.mubr.msk.bf16.mxu1 %vm3504_vm1, %v3502_v7  ;;  %v1801_v18 = vpop.xlane.xlu0 %1800 }
 0x69a   : > { %v1695_v21 = vpop.permute.xlu0 %1694 }
 0x69b   : > { %v1700_v26 = vand.u32 %v1695_v21, %v3741_v25 }
 0x6a2   : > { %v1579_v13 = vpop.xlane.xlu1 %1578 }
 0x6a3   : > { %3450 = vrcp.f32 %v1579_v13 }
 0x6a4   : > { %3452 = vrcp.f32 %v1690_v12 }
 0x6a5   : > { %3454 = vrcp.f32 %v1801_v18 }
 0x6a6   : > { %v1584_v15 = vpop.permute.xlu1 %1583 }
 0x6a7   : > { %v1589_v16 = vand.u32 %v1584_v15, %v3741_v25 }
 0x6a9   : > { %3224 = vmatpush3.bf16.msra.mxu1 %v1589_v16 }
 0x6aa   : > { %3235 = vmatprep.subr.bf16.mxu1 %v3502_v7  ;;  %v1806_v28 = vpop.permute.xlu1 %1805 }
 0x6ab   : > { %v1811_v31 = vand.u32 %v1806_v28, %v3741_v25  ;;  %v3334_v25 = vld [vmem:[%s3607_s22 + $0x10] sm:$0xff]  }
 0x6ac   : > { %3258 = vmatpush3.bf16.msra.mxu0 %v3334_v25 }
 0x6ad   : > { %v3451_v20 = vpop.eup %3450  ;;  %3259 = vmatprep.subr.bf16.mxu0 %v3502_v7 }
 0x6ae   : > { %v1581_v17 = vmul.f32 %v3451_v20, %v3837_v24  ;;  %v3453_v23 = vpop.eup %3452 }
 0x6af   : > { %v1692_v27 = vmul.f32 %v3453_v23, %v3829_v38  ;;  %v3455_v30 = vpop.eup %3454 }
 0x6b0   : > { %v1582_v22 = vpack.c.bf16 %v1581_v17, %v1581_v17  ;;  %v1803_v32 = vmul.f32 %v3455_v30, %v3833_v41  ;;  %3260 = vmatpush3.bf16.msra.mxu0 %v3335_v52 }
 0x6b1   : > { %v1693_v29 = vpack.c.bf16 %v1692_v27, %v1692_v27  ;;  %3261 = vmatprep.subr.bf16.mxu0 %v3502_v7 }
 0x6b2   : > { %3226 = vmatmul.mubr.msk.bf16.vlgmr.msra.gmra.mrb[32].mxu1 %vm985_vm5, %v1582_v22  ;;  %v1804_v33 = vpack.c.bf16 %v1803_v32, %v1803_v32  ;;  %v3492_v32 = vld [vmem:[#allocation2] sm:$0xff] }
 0x6b3   : > { %3236 = vmatpush3.bf16.msra.mxu1 %v1700_v26  ;;  %3237 = vmatprep.mubr.msk.bf16.mxu1 %vm3504_vm1, %v3502_v7 }
 0x6b4   : > { %3247 = vmatprep.subr.bf16.mxu1 %v3502_v7  ;;  %3262 = vmatpush3.bf16.msra.mxu0 %v3336_v53 }
 0x6b5   : > { %3263 = vmatprep.subr.bf16.mxu0 %v3502_v7 }
 0x6b8   : > { %3264 = vmatpush3.bf16.msra.mxu0 %v3337_v19 }
 0x6b9   : > { %3265 = vmatprep.subr.bf16.mxu0 %v3502_v7 }
 0x6ba   : > { %3238 = vmatmul.mubr.msk.bf16.vlgmr.msra.gmra.mrb[36].mxu1 %vm985_vm5, %v1693_v29 }
 0x6bb   : > { %3248 = vmatpush3.bf16.msra.mxu1 %v1811_v31  ;;  %3249 = vmatprep.mubr.msk.bf16.mxu1 %vm3504_vm1, %v3502_v7  ;;  %v2961_v31 = vld [vmem:[%s4075_s24] ss:$0 sm:$0xff] }
 0x6bc   : > { %3266 = vmatpush3.bf16.msra.mxu0 %v3338_v60  ;;  %v3352_v60 = vld [vmem:[%s3635_s3 + $0x40] ss:$16 sps:$4 sm:$0xff]  }
 0x6bd   : > { %3267 = vmatprep.subr.bf16.mxu0 %v3502_v7 }
 0x6c0   : > { %3268 = vmatpush3.bf16.msra.mxu0 %v3339_v0  ;;  %v3360_v0 = vld [vmem:[%s3635_s3 + $0x64] ss:$16 sps:$4 sm:$0xff]  }
 0x6c2   : > { %3250 = vmatmul.mubr.msk.bf16.vlgmr.msra.gmra.mrb[40].mxu1 %vm985_vm5, %v1804_v33 }
 0x6c3   : > { %2279 = vmatprep.mubr.bf16.mxu1 %v3503_v34 }
 0x750   : > { %v1143_v37 = vpop.f32.mrb[16].mxu1 }
 0x751   : > { %v3179_v38 = vpop.f32.mrb[17].mxu1 }
 0x752   : > { %v1146_v39 = vpop.f32.mrb[18].mxu1 }
 0x753   : > { %v3180_v40 = vpop.f32.mrb[19].mxu1 }
 0x758   : > { %v1254_v41 = vpop.f32.mrb[20].mxu1 }
 0x759   : > { %v3191_v42 = vpop.f32.mrb[21].mxu1 }
 0x75a   : > { %v1257_v24 = vpop.f32.mrb[22].mxu1  ;;  %v3342_v42 = vld [vmem:[%s3635_s3 + $0x4] ss:$16 sps:$4 sm:$0xff]  }
 0x75b   : > { %v3192_v43 = vpop.f32.mrb[23].mxu1  ;;  %v3343_v24 = vld [vmem:[%s3635_s3 + $0x8] ss:$16 sps:$4 sm:$0xff]   ;;  %2247 = vmatprep.subr.bf16.mxu1 %v3342_v42  ;;  %v3389_v42 = vld [vmem:[%s3646_s2 + $0xc0] sm:$0xff]  }
 0x75c   : > { %v3345_v43 = vld [vmem:[%s3635_s3 + $0xc] ss:$16 sps:$4 sm:$0xff]  }
 0x75d   : > { %2290 = vmatprep.subr.bf16.mxu0 %v3345_v43  ;;  %v3391_v43 = vld [vmem:[%s3646_s2 + $0x80] sm:$0xff]  }
 0x760   : > { %v1365_v44 = vpop.f32.mrb[24].mxu1 }
 0x761   : > { %v3203_v45 = vpop.f32.mrb[25].mxu1 }
 0x762   : > { %v1368_v46 = vpop.f32.mrb[26].mxu1  ;;  %v3351_v45 = vld [vmem:[%s3635_s3 + $0x2c] ss:$16 sps:$4 sm:$0xff]  }
 0x763   : > { %v3204_v47 = vpop.f32.mrb[27].mxu1  ;;  %v3346_v46 = vld [vmem:[%s3635_s3 + $0x20] ss:$16 sps:$4 sm:$0xff]  }
 0x764   : > { %v3349_v47 = vld [vmem:[%s3635_s3 + $0x28] ss:$16 sps:$4 sm:$0xff]  }
 0x768   : > { %v1514_v48 = vpop.f32.mrb[28].mxu1 }
 0x769   : > { %v3215_v49 = vpop.f32.mrb[29].mxu1 }
 0x76a   : > { %v1517_v50 = vpop.f32.mrb[30].mxu1 }
 0x76b   : > { %v3216_v51 = vpop.f32.mrb[31].mxu1 }
 0x785   : > { %v1625_v54 = vpop.f32.mrb[32].mxu1 }
 0x786   : > { %v3290_v55 = vpack.i.bf16 %v1143_v37, %v1625_v54  ;;  %v3227_v56 = vpop.f32.mrb[33].mxu1  ;;  %v3493_v37 = vld [vmem:[#allocation2 + $0x8] sm:$0x3] }
 0x787   : > { %v1628_v57 = vpop.f32.mrb[34].mxu1  ;;  %v3354_v56 = vld [vmem:[%s3635_s3 + $0x44] ss:$16 sps:$4 sm:$0xff]  }
 0x788   : > { %3291 = vrot.lane.b32.xlu1 %v3290_v55, %s3507_s13  ;;  %v3228_v63 = vpop.f32.mrb[35].mxu1  ;;  %v3357_v57 = vld [vmem:[%s3635_s3 + $0x4c] ss:$16 sps:$4 sm:$0xff]  }
 0x789   : > { %v3355_v63 = vld [vmem:[%s3635_s3 + $0x48] ss:$16 sps:$4 sm:$0xff]  }
 0x78d   : > { %v1736_v1 = vpop.f32.mrb[36].mxu1 }
 0x78e   : > { %v3295_v2 = vpack.i.bf16 %v1254_v41, %v1736_v1  ;;  %v3239_v3 = vpop.f32.mrb[37].mxu1  ;;  %v3340_v41 = vld [vmem:[%s3635_s3] ss:$16 sps:$4 sm:$0xff]   ;;  %v3363_v1 = vld [vmem:[%s3635_s3 + $0x6c] ss:$16 sps:$4 sm:$0xff]  }
 0x78f   : > { %v1739_v4 = vpop.f32.mrb[38].mxu1  ;;  %2248 = vmatpush1.bf16.msra.mxu1 %v3340_v41  ;;  %v3361_v3 = vld [vmem:[%s3635_s3 + $0x68] ss:$16 sps:$4 sm:$0xff]   ;;  %v3388_v41 = vld [vmem:[%s3646_s2 + $0x40] sm:$0xff]  }
 0x790   : > { %3296 = vrot.lane.b32.xlu1 %v3295_v2, %s3508_s18  ;;  %v3240_v5 = vpop.f32.mrb[39].mxu1  ;;  %v3358_v2 = vld [vmem:[%s3635_s3 + $0x60] ss:$16 sps:$4 sm:$0xff]   ;;  %v3366_v4 = vld [vmem:[%s3635_s3 + $0x84] ss:$16 sps:$4 sm:$0xff]  }
 0x791   : > { %v3369_v5 = vld [vmem:[%s3635_s3 + $0x8c] ss:$16 sps:$4 sm:$0xff]  }
 0x794   : > { %1380 = vrot.lane.b32.xlu1 %v1365_v44, %s3506_s16  ;;  %v3348_v44 = vld [vmem:[%s3635_s3 + $0x24] ss:$16 sps:$4 sm:$0xff]  }
 0x795   : > { %v1847_v6 = vpop.f32.mrb[40].mxu1  ;;  %2249 = vmatprep.subr.bf16.mxu1 %v3348_v44  ;;  %v3392_v44 = vld [vmem:[%s3646_s2 + $0x48] sm:$0xff]  }
 0x796   : > { %1862 = vrot.lane.b32.xlu0 %v1847_v6, %s3506_s16  ;;  %v3251_v8 = vpop.f32.mrb[41].mxu1  ;;  %2250 = vmatpush1.bf16.msra.mxu1 %v3346_v46  ;;  %v3364_v6 = vld [vmem:[%s3635_s3 + $0x80] ss:$16 sps:$4 sm:$0xff]   ;;  %v3394_v46 = vld [vmem:[%s3646_s2 + $0x8] sm:$0xff]  }
 0x797   : > { %v1850_v9 = vpop.f32.mrb[42].mxu1  ;;  %2251 = vmatprep.subr.bf16.mxu1 %v3354_v56  ;;  %v3367_v8 = vld [vmem:[%s3635_s3 + $0x88] ss:$16 sps:$4 sm:$0xff]   ;;  %v3405_v56 = vld [vmem:[%s3646_s2 + $0xe0] sm:$0xff]  }
 0x798   : > { %v3252_v10 = vpop.f32.mrb[43].mxu1  ;;  %v3372_v9 = vld [vmem:[%s3635_s3 + $0xa4] ss:$16 sps:$4 sm:$0xff]  }
 0x799   : > { %v3375_v10 = vld [vmem:[%s3635_s3 + $0xac] ss:$16 sps:$4 sm:$0xff]  }
 0x79a   : > { %2252 = vmatpush1.bf16.msra.mxu1 %v3352_v60  ;;  %v3407_v60 = vld [vmem:[%s3646_s2 + $0xa0] sm:$0xff]  }
 0x79b   : > { %2253 = vmatprep.subr.bf16.mxu1 %v3360_v0  ;;  %v3409_v0 = vld [vmem:[%s3646_s2 + $0xe8] sm:$0xff]  }
 0x79e   : > { %2254 = vmatpush1.bf16.msra.mxu1 %v3358_v2  ;;  %v3411_v2 = vld [vmem:[%s3646_s2 + $0xa8] sm:$0xff]  }
 0x79f   : > { %2255 = vmatprep.subr.bf16.mxu1 %v3366_v4  ;;  %v3413_v4 = vld [vmem:[%s3646_s2 + $0xf0] sm:$0xff]  }
 0x7a2   : > { %2256 = vmatpush1.bf16.msra.mxu1 %v3364_v6  ;;  %v3415_v6 = vld [vmem:[%s3646_s2 + $0xb0] sm:$0xff]  }
 0x7a3   : > { %2257 = vmatprep.subr.bf16.mxu1 %v3372_v9  ;;  %v3417_v9 = vld [vmem:[%s3646_s2 + $0xf8] sm:$0xff]  }
 0x7fa   : > { %v3292_v11 = vpop.permute.xlu1 %3291 }
 0x7fb   : > { %v3294_v7 = vunpack.i.h.bf16 %v3292_v11  ;;  %v3293_v13 = vunpack.i.l.bf16 %v3292_v11  ;;  %v3370_v11 = vld [vmem:[%s3635_s3 + $0xa0] ss:$16 sps:$4 sm:$0xff]  }
 0x7fc   : > { %2258 = vmatpush1.bf16.msra.mxu1 %v3370_v11  ;;  %v3419_v11 = vld [vmem:[%s3646_s2 + $0xb8] sm:$0xff]  }
 0x7fd   : > { %v1383_v18 = vsel %vm923_vm2, %v3801_v14, %v3294_v7  ;;  %v1865_v20 = vsel %vm923_vm2, %v1514_v48, %v3293_v13  ;;  %v3378_v7 = vld [vmem:[%s3635_s3 + $0xc4] ss:$16 sps:$4 sm:$0xff]   ;;  %v3381_v13 = vld [vmem:[%s3635_s3 + $0xcc] ss:$16 sps:$4 sm:$0xff]  }
 0x7fe   : > { %2259 = vmatprep.subr.bf16.mxu1 %v3378_v7  ;;  %v2081_v7 = vsub.s32 3, %v3722_v58 }
 0x802   : > { %v3297_v12 = vpop.permute.xlu1 %3296 }
 0x803   : > { %v3299_v15 = vunpack.i.h.bf16 %v3297_v12  ;;  %v3298_v16 = vunpack.i.l.bf16 %v3297_v12  ;;  %v3373_v12 = vld [vmem:[%s3635_s3 + $0xa8] ss:$16 sps:$4 sm:$0xff]  }
 0x805   : > { %v1385_v17 = vsel %vm1384_vm6, %v1383_v18, %v3299_v15  ;;  %v1866_v22 = vsel %vm1384_vm6, %v1865_v20, %v3298_v16  ;;  %v3376_v15 = vld [vmem:[%s3635_s3 + $0xc0] ss:$16 sps:$4 sm:$0xff]   ;;  %v3379_v16 = vld [vmem:[%s3635_s3 + $0xc8] ss:$16 sps:$4 sm:$0xff]   ;;  %v3384_v18 = vld [vmem:[%s3635_s3 + $0xe4] ss:$16 sps:$4 sm:$0xff]  }
 0x806   : > { %v1381_v21 = vpop.permute.xlu1 %1380  ;;  %v3387_v20 = vld [vmem:[%s3635_s3 + $0xec] ss:$16 sps:$4 sm:$0xff]   ;;  %2260 = vmatpush1.bf16.msra.mxu1 %v3376_v15 }
 0x807   : > { %v1387_v28 = vsel %vm1386_vm7, %v1385_v17, %v1381_v21  ;;  %v3382_v21 = vld [vmem:[%s3635_s3 + $0xe0] ss:$16 sps:$4 sm:$0xff]   ;;  %v3385_v17 = vld [vmem:[%s3635_s3 + $0xe8] ss:$16 sps:$4 sm:$0xff]   ;;  %2261 = vmatprep.subr.bf16.mxu1 %v3384_v18 }
 0x808   : > { %v1863_v23 = vpop.permute.xlu0 %1862 }
 0x809   : > { %v1867_v26 = vsel %vm1386_vm7, %v1866_v22, %v1863_v23 }
 0x80a   : > { %v1869_v27 = vrot.slane %v1867_v26, 3  ;;  %2262 = vmatpush1.bf16.msra.mxu1 %v3382_v21 }
 0x80b   : > { %3093 = vmatprep.subr.bf16.mxu1 %v3388_v41 }
 0x80c   : > { %v1872_v29 = vsel %vm1871_vm8, %v1387_v28, %v1869_v27 }
 0x80d   : > { %v1873_v30 = vpack.c.bf16 %v1869_v27, %v1872_v29 }
 0x80f   : > { %3270 = vmatmul.mubr.bf16.vlgmr.msra.gmra.mrb[28].mxu0 %v1873_v30 }
 0x810   : > { %2322 = vmatprep.mubr.bf16.mxu0 %v3503_v34  ;;  %2291 = vmatpush1.bf16.msra.mxu0 %v3343_v24  ;;  %v3390_v24 = vld [vmem:[%s3646_s2] sm:$0xff]  }
 0x811   : > { %2292 = vmatprep.subr.bf16.mxu0 %v3351_v45  ;;  %v3393_v45 = vld [vmem:[%s3646_s2 + $0xc8] sm:$0xff]  }
 0x814   : > { %2293 = vmatpush1.bf16.msra.mxu0 %v3349_v47  ;;  %v3395_v47 = vld [vmem:[%s3646_s2 + $0x88] sm:$0xff]  }
 0x815   : > { %2294 = vmatprep.subr.bf16.mxu0 %v3357_v57  ;;  %v3406_v57 = vld [vmem:[%s3646_s2 + $0x20] sm:$0xff]  }
 0x818   : > { %2295 = vmatpush1.bf16.msra.mxu0 %v3355_v63  ;;  %v3408_v63 = vld [vmem:[%s3646_s2 + $0x68] sm:$0xff]  }
 0x819   : > { %2296 = vmatprep.subr.bf16.mxu0 %v3363_v1  ;;  %v3410_v1 = vld [vmem:[%s3646_s2 + $0x28] sm:$0xff]  }
 0x81c   : > { %2297 = vmatpush1.bf16.msra.mxu0 %v3361_v3  ;;  %v3412_v3 = vld [vmem:[%s3646_s2 + $0x70] sm:$0xff]  }
 0x81d   : > { %2298 = vmatprep.subr.bf16.mxu0 %v3369_v5  ;;  %v3414_v5 = vld [vmem:[%s3646_s2 + $0x30] sm:$0xff]  }
 0x820   : > { %2299 = vmatpush1.bf16.msra.mxu0 %v3367_v8  ;;  %v3416_v8 = vld [vmem:[%s3646_s2 + $0x78] sm:$0xff]  }
 0x821   : > { %2300 = vmatprep.subr.bf16.mxu0 %v3375_v10  ;;  %v3418_v10 = vld [vmem:[%s3646_s2 + $0x38] sm:$0xff]  }
 0x824   : > { %2301 = vmatpush1.bf16.msra.mxu0 %v3373_v12  ;;  %v2065_v12 = vld [vmem:[%s3641_s19] sm:$0xf] }
 0x825   : > { %2302 = vmatprep.subr.bf16.mxu0 %v3381_v13  ;;  %v2070_v13 = vrot.slane %v2065_v12, %v696_v61  ;;  %v2078_v15 = vrot.slane %v2065_v12, %v704_v62  ;;  %v2082_v18 = vrot.slane %v2065_v12, %v2081_v7 }
 0x828   : > { %2303 = vmatpush1.bf16.msra.mxu0 %v3379_v16  ;;  %v2074_v16 = vrot.slane %v2065_v12, %v700_v59 }
 0x829   : > { %2304 = vmatprep.subr.bf16.mxu0 %v3387_v20 }
 0x82c   : > { %2305 = vmatpush1.bf16.msra.mxu0 %v3385_v17 }
 0x82d   : > { %3115 = vmatprep.subr.bf16.mxu0 %v3389_v42 }
 0x8e2   : > { %v1972_v14 = vpop.f32.mrb[28].mxu0 }
 0x8e3   : > { %v1979_v33 = vadd.f32 %v3492_v32, %v1972_v14  ;;  %v3271_v35 = vpop.f32.mrb[29].mxu0 }
 0x8e4   : > { %v1975_v36 = vpop.f32.mrb[30].mxu0 }
 0x8e5   : > { %v3913_v25 = vadd.f32 %v2961_v31, %v1979_v33  ;;  %v1980_v34 = vadd.f32 %v3493_v37, %v1975_v36  ;;  %v3272_v38 = vpop.f32.mrb[31].mxu0  ;;  %v2963_v36 = vld [vmem:[%s4076_s23] ss:$0 sm:$0xff] }
 0x8e7   : > { %v3915_v39 = vadd.f32 %v2961_v31, %v1980_v34  ;;  %1992 = vadd.xlane.f32.xlu1 %v3913_v25  ;;  %v2962_v31 = vld [vmem:[%s583_s20] ss:$0 sm:$0xff] }
 0x8e9   : > { %v1994_v40 = vsel %vm619_vm0, %v3915_v39, 0.0 }
 0x8ea   : > { %1995 = vadd.xlane.f32.xlu0 %v1994_v40 }
 0x974   : > { %v1993_v48 = vpop.xlane.xlu1 %1992 }
 0x975   : > { %v1997_v49 = vmul.f32 0.0078125, %v1993_v48  ;;  %v3396_v48 = vld [vmem:[%s3646_s2 + $0x50] sm:$0xff]  }
 0x977   : > { %v3929_v50 = vsub.f32 %v3913_v25, %v1997_v49  ;;  %v1996_v51 = vpop.xlane.xlu0 %1995  ;;  %v3397_v49 = vld [vmem:[%s3646_s2 + $0xd0] sm:$0xff]  }
 0x978   : > { %v1998_v52 = vmul.f32 0.0078125, %v1996_v51  ;;  %v3399_v51 = vld [vmem:[%s3646_s2 + $0x90] sm:$0xff]  }
 0x979   : > { %v2001_v53 = vmul.f32 %v3929_v50, %v3929_v50 }
 0x97a   : > { %v3934_v19 = vsub.f32 %v3915_v39, %v1998_v52  ;;  %v3400_v52 = vld [vmem:[%s3646_s2 + $0x58] sm:$0xff]  }
 0x97b   : > { %2003 = vadd.xlane.f32.xlu0 %v2001_v53  ;;  %v3401_v53 = vld [vmem:[%s3646_s2 + $0xd8] sm:$0xff]  }
 0x97c   : > { %v2002_v54 = vmul.f32 %v3934_v19, %v3934_v19 }
 0x97e   : > { %v2005_v55 = vsel %vm619_vm0, %v2002_v54, 0.0  ;;  %v3403_v54 = vld [vmem:[%s3646_s2 + $0x98] sm:$0xff]  }
 0x97f   : > { %2006 = vadd.xlane.f32.xlu0 %v2005_v55  ;;  %v3404_v55 = vld [vmem:[%s3646_s2 + $0x60] sm:$0xff]  }
 0xa08   : > { %v2004_v22 = vpop.xlane.xlu0 %2003 }
 0xa09   : > { %v2008_v23 = vmul.f32 0.0078125, %v2004_v22 }
 0xa0b   : > { %v2010_v26 = vadd.f32 1e-05, %v2008_v23 }
 0xa0c   : > { %v2007_v27 = vpop.xlane.xlu0 %2006 }
 0xa0d   : > { %3456 = vrsqrt.f32 %v2010_v26  ;;  %v2009_v28 = vmul.f32 0.0078125, %v2007_v27 }
 0xa0f   : > { %v2011_v29 = vadd.f32 1e-05, %v2009_v28 }
 0xa11   : > { %3458 = vrsqrt.f32 %v2011_v29 }
 0xa17   : > { %v3457_v30 = vpop.eup %3456 }
 0xa18   : > { %v2014_v14 = vmul.f32 %v3457_v30, %v3929_v50  ;;  %v3398_v50 = vld [vmem:[%s3646_s2 + $0x10] sm:$0xff]  }
 0xa1a   : > { %v2022_v35 = vmul.f32 %v2962_v31, %v2014_v14 }
 0xa1b   : > { %v3459_v32 = vpop.eup %3458 }
 0xa1c   : > { %v2015_v33 = vmul.f32 %v3459_v32, %v3934_v19  ;;  %v2030_v34 = vadd.f32 %v2963_v36, %v2022_v35  ;;  %v3402_v19 = vld [vmem:[%s3646_s2 + $0x18] sm:$0xff]  }
 0xa1e   : > { %v2023_v37 = vmul.f32 %v2962_v31, %v2015_v33 }
 0xa20   : > { %v2031_v38 = vadd.f32 %v2963_v36, %v2023_v37 }
 0xa22   : > { %v2032_v40 = vpack.c.bf16 %v2031_v38, %v2030_v34 }
 0xa24   : > { %2280 = vmatmul.mubr.bf16.vlgmr.msra.gmra.mrb[44].mxu1 %v2032_v40  ;;  %2323 = vmatmul.mubr.bf16.vlgmr.msra.gmra.mrb[32].mxu0 %v2032_v40 }
 0xa25   : > { %3094 = vmatpush3.bf16.msra.mxu1 %v3390_v24  ;;  %3116 = vmatpush3.bf16.msra.mxu0 %v3391_v43 }
 0xa26   : > { %3095 = vmatprep.subr.bf16.mxu1 %v3392_v44  ;;  %3117 = vmatprep.subr.bf16.mxu0 %v3393_v45 }
 0xa29   : > { %3096 = vmatpush3.bf16.msra.mxu1 %v3394_v46  ;;  %3118 = vmatpush3.bf16.msra.mxu0 %v3395_v47 }
 0xa2a   : > { %3097 = vmatprep.subr.bf16.mxu1 %v3396_v48  ;;  %3119 = vmatprep.subr.bf16.mxu0 %v3397_v49 }
 0xa2d   : > { %3098 = vmatpush3.bf16.msra.mxu1 %v3398_v50  ;;  %3120 = vmatpush3.bf16.msra.mxu0 %v3399_v51 }
 0xa2e   : > { %3099 = vmatprep.subr.bf16.mxu1 %v3400_v52  ;;  %3121 = vmatprep.subr.bf16.mxu0 %v3401_v53 }
 0xa31   : > { %3100 = vmatpush3.bf16.msra.mxu1 %v3402_v19  ;;  %3122 = vmatpush3.bf16.msra.mxu0 %v3403_v54 }
 0xa32   : > { %3101 = vmatprep.subr.bf16.mxu1 %v3404_v55  ;;  %3123 = vmatprep.subr.bf16.mxu0 %v3405_v56 }
 0xa35   : > { %3102 = vmatpush3.bf16.msra.mxu1 %v3406_v57  ;;  %3124 = vmatpush3.bf16.msra.mxu0 %v3407_v60 }
 0xa36   : > { %3103 = vmatprep.subr.bf16.mxu1 %v3408_v63  ;;  %3125 = vmatprep.subr.bf16.mxu0 %v3409_v0 }
 0xa39   : > { %3104 = vmatpush3.bf16.msra.mxu1 %v3410_v1  ;;  %3126 = vmatpush3.bf16.msra.mxu0 %v3411_v2 }
 0xa3a   : > { %3105 = vmatprep.subr.bf16.mxu1 %v3412_v3  ;;  %3127 = vmatprep.subr.bf16.mxu0 %v3413_v4 }
 0xa3d   : > { %3106 = vmatpush3.bf16.msra.mxu1 %v3414_v5  ;;  %3128 = vmatpush3.bf16.msra.mxu0 %v3415_v6 }
 0xa3e   : > { %3107 = vmatprep.subr.bf16.mxu1 %v3416_v8  ;;  %3129 = vmatprep.subr.bf16.mxu0 %v3417_v9 }
 0xa41   : > { %3108 = vmatpush3.bf16.msra.mxu1 %v3418_v10  ;;  %3130 = vmatpush3.bf16.msra.mxu0 %v3419_v11 }
 0xaf7   : > { %v2281_v20 = vpop.f32.mrb[44].mxu1  ;;  %v2324_v21 = vpop.f32.mrb[32].mxu0 }
 0xaf8   : > { %v4015_v17 = vadd.f32 %v2281_v20, %v2070_v13  ;;  %v4017_v22 = vadd.f32 %v2324_v21, %v2078_v15  ;;  %v2283_v23 = vpop.f32.mrb[45].mxu1  ;;  %v2326_v26 = vpop.f32.mrb[33].mxu0 }
 0xaf9   : > { %v4019_v27 = vadd.f32 %v2283_v23, %v2074_v16  ;;  %v4021_v28 = vadd.f32 %v2326_v26, %v2082_v18  ;;  %v2285_v61 = vpop.f32.mrb[46].mxu1  ;;  %v2328_v29 = vpop.f32.mrb[34].mxu0 }
 0xafa   : > { %v2996_v62 = vmul.f32 -1.702, %v4015_v17  ;;  %v2998_v58 = vmul.f32 -1.702, %v4017_v22  ;;  %v2286_v59 = vadd.f32 %v2285_v61, %v2070_v13  ;;  %v2329_v30 = vadd.f32 %v2328_v29, %v2078_v15  ;;  %v2287_v14 = vpop.f32.mrb[47].mxu1  ;;  %v2330_v31 = vpop.f32.mrb[35].mxu0 }
 0xafb   : > { %v2997_v32 = vmul.f32 -1.702, %v4019_v27  ;;  %v2999_v33 = vmul.f32 -1.702, %v4021_v28  ;;  %v2288_v35 = vadd.f32 %v2287_v14, %v2074_v16  ;;  %v2331_v36 = vadd.f32 %v2330_v31, %v2082_v18 }
 0xafc   : > { %v2349_v37 = vmul.f32 1.442695, %v2996_v62  ;;  %v2353_v34 = vmul.f32 1.442695, %v2998_v58  ;;  %v3000_v38 = vmul.f32 -1.702, %v2286_v59 }
 0xafd   : > { %v2351_v40 = vmul.f32 1.442695, %v2997_v32  ;;  %v2355_v41 = vmul.f32 1.442695, %v2999_v33  ;;  %v3002_v42 = vmul.f32 -1.702, %v2329_v30 }
 0xafe   : > { %3460 = vpow2.f32 %v2349_v37  ;;  %v2357_v24 = vmul.f32 1.442695, %v3000_v38  ;;  %v3001_v43 = vmul.f32 -1.702, %v2288_v35  ;;  %v3003_v44 = vmul.f32 -1.702, %v2331_v36 }
 0xaff   : > { %3462 = vpow2.f32 %v2353_v34  ;;  %v2361_v45 = vmul.f32 1.442695, %v3002_v42 }
 0xb00   : > { %3464 = vpow2.f32 %v2351_v40  ;;  %v2359_v46 = vmul.f32 1.442695, %v3001_v43  ;;  %v2363_v47 = vmul.f32 1.442695, %v3003_v44 }
 0xb01   : > { %3466 = vpow2.f32 %v2355_v41 }
 0xb02   : > { %3468 = vpow2.f32 %v2357_v24 }
 0xb03   : > { %3470 = vpow2.f32 %v2361_v45 }
 0xb04   : > { %3472 = vpow2.f32 %v2359_v46 }
 0xb05   : > { %3474 = vpow2.f32 %v2363_v47 }
 0xb08   : > { %v3461_v48 = vpop.eup %3460 }
 0xb09   : > { %v3463_v49 = vpop.eup %3462  ;;  %v2365_v50 = vadd.f32 1.0, %v3461_v48 }
 0xb0a   : > { %v3465_v51 = vpop.eup %3464  ;;  %v2367_v52 = vadd.f32 1.0, %v3463_v49 }
 0xb0b   : > { %v3467_v53 = vpop.eup %3466  ;;  %3476 = vrcp.f32 %v2365_v50  ;;  %v2366_v19 = vadd.f32 1.0, %v3465_v51 }
 0xb0c   : > { %v3469_v54 = vpop.eup %3468  ;;  %3478 = vrcp.f32 %v2367_v52  ;;  %v2368_v55 = vadd.f32 1.0, %v3467_v53 }
 0xb0d   : > { %v3471_v56 = vpop.eup %3470  ;;  %3480 = vrcp.f32 %v2366_v19  ;;  %v2369_v57 = vadd.f32 1.0, %v3469_v54 }
 0xb0e   : > { %v3473_v60 = vpop.eup %3472  ;;  %3482 = vrcp.f32 %v2368_v55  ;;  %v2371_v63 = vadd.f32 1.0, %v3471_v56 }
 0xb0f   : > { %v3475_v0 = vpop.eup %3474  ;;  %3484 = vrcp.f32 %v2369_v57  ;;  %v2370_v1 = vadd.f32 1.0, %v3473_v60 }
 0xb10   : > { %3486 = vrcp.f32 %v2371_v63  ;;  %v2372_v2 = vadd.f32 1.0, %v3475_v0 }
 0xb11   : > { %3488 = vrcp.f32 %v2370_v1 }
 0xb12   : > { %3490 = vrcp.f32 %v2372_v2 }
 0xb15   : > { %v3477_v3 = vpop.eup %3476 }
 0xb16   : > { %v3479_v4 = vpop.eup %3478  ;;  %v2389_v10 = vmul.f32 %v3477_v3, %v4015_v17 }
 0xb17   : > { %v3481_v5 = vpop.eup %3480  ;;  %v2391_v7 = vmul.f32 %v3479_v4, %v4017_v22  ;;  %v3004_v22 = vld [vmem:[%s603_s21] ss:$0 sm:$0xff]  ;;  %s4077_s21 = sld [smem:[#allocation7_spill]] (!%p3037_p5) }
 0xb18   : > { %v3483_v6 = vpop.eup %3482  ;;  %v2390_v16 = vmul.f32 %v3481_v5, %v4019_v27 }
 0xb19   : > { %v3485_v8 = vpop.eup %3484  ;;  %v2392_v21 = vmul.f32 %v3483_v6, %v4021_v28 }
 0xb1a   : > { %v3487_v9 = vpop.eup %3486  ;;  %v2393_v11 = vmul.f32 %v3485_v8, %v2286_v59 }
 0xb1b   : > { %v3489_v12 = vpop.eup %3488  ;;  %v2395_v13 = vmul.f32 %v3487_v9, %v2329_v30 }
 0xb1c   : > { %v3491_v15 = vpop.eup %3490  ;;  %v2397_v18 = vpack.c.bf16 %v2393_v11, %v2389_v10  ;;  %v2394_v20 = vmul.f32 %v3489_v12, %v2288_v35 }
 0xb1d   : > { %v2399_v23 = vpack.c.bf16 %v2395_v13, %v2391_v7  ;;  %v2396_v26 = vmul.f32 %v3491_v15, %v2331_v36 }
 0xb1e   : > { %v2398_v61 = vpack.c.bf16 %v2394_v20, %v2390_v16 }
 0xb1f   : > { %v2400_v29 = vpack.c.bf16 %v2396_v26, %v2392_v21 }
 0xb20   : > { %2696 = vmatprep.mubr.bf16.mxu1 %v2398_v61 }
 0xb21   : > { %2737 = vmatprep.mubr.bf16.mxu0 %v2400_v29  ;;  %2697 = vmatmul.mubr.bf16.vlgmr.msra.gmra.mrb[48].mxu1 %v2397_v18 }
 0xb22   : > { %2738 = vmatmul.mubr.bf16.vlgmr.msra.gmra.mrb[36].mxu0 %v2399_v23 }
 0xbf4   : > { %v3109_v17 = vpop.f32.mrb[48].mxu1 }
 0xbf5   : > { %v3131_v62 = vpop.f32.mrb[36].mxu0  ;;  %v3110_v27 = vpop.f32.mrb[49].mxu1 }
 0xbf6   : > { %v3111_v58 = vadd.f32 %v3110_v27, %v3109_v17  ;;  %v3132_v59 = vpop.f32.mrb[37].mxu0  ;;  %v3112_v30 = vpop.f32.mrb[50].mxu1 }
 0xbf7   : > { %v3133_v28 = vadd.f32 %v3132_v59, %v3131_v62  ;;  %v3134_v14 = vpop.f32.mrb[38].mxu0  ;;  %v3113_v31 = vpop.f32.mrb[51].mxu1 }
 0xbf8   : > { %v2699_v32 = vadd.f32 %v3111_v58, %v3004_v22  ;;  %v3114_v33 = vadd.f32 %v3113_v31, %v3112_v30  ;;  %v3135_v35 = vpop.f32.mrb[39].mxu0 }
 0xbf9   : > { %v3136_v36 = vadd.f32 %v3135_v35, %v3134_v14 }
 0xbfa   : > { %v2740_v37 = vadd.f32 %v3133_v28, %v2699_v32  ;;  %v2702_v34 = vadd.f32 %v3114_v33, %v3004_v22  ;;  %2753 = sbr.rel (%p3037_p5) target bundleno = 3073 (0xc01), region = 80 }
 0xbfc   : > { %v2746_v38 = vadd.f32 %v2740_v37, %v3913_v25  ;;  %v2743_v40 = vadd.f32 %v3136_v36, %v2702_v34 }
 0xbfe   : > { %2748 = vst [vmem:[#allocation2] sm:$0xff] %v2746_v38  ;;  %v2747_v41 = vadd.f32 %v2743_v40, %v3915_v39  ;;  %2754 = vst [vmem:[%s4077_s21] sm:$0xff] (!%p3037_p5), %v2746_v38 }
 0xc00   : > { %2749 = vst [vmem:[#allocation2 + $0x8] sm:$0x3] %v2747_v41  ;;  %2755 = vst [vmem:[%s4077_s21 + $0x8] sm:$0x3] (!%p3037_p5), %v2747_v41 }
 0xc01 PF: > { %s4078_s14 = sld [smem:[#allocation3_spill]] }
 0xc07   : > { %s23_s25 = sadd.s32 1, %s4078_s14  }
 0xc08   : > { %p20_p6 = scmp.ge.s32.totalorder %s23_s25, 4  }
 0xc0a   :  { %22 = sbr.rel (!%p20_p6) target bundleno = 5 (0x5), region = 139 }

</bundles_post_ra>
